<compile_context>
chip_gen: v7x
topology: tpu7x:2x2x1
jax: 0.10.0
libtpu: 0.0.40
codegen_flags: <defaults>
</compile_context>

<pallas_src>
import functools

import jax
import jax.numpy as jnp
from jax import lax
from jax.experimental import pallas as pl
from jax.experimental.pallas import tpu as pltpu


# ------------------------------ Pallas kernel --------------------------------
def disc_fused_kernel(x_ref, upw_ref, ups_ref,
                      c1w_ref, c1s_ref, c2w_ref, c2s_ref, c3w_ref, c3s_ref,
                      finw_ref, fins_ref,
                      o_ref, *, S, hidden):
    """Whole Discriminator forward for one image (one grid step)."""
    f32 = jnp.float32

    # ---- upfeature: 1x1 conv == pointwise matmul (bias folded into shift) ----
    x2d = x_ref[0]                                                    # (S*S, Cin)
    a = jnp.dot(x2d, upw_ref[...], preferred_element_type=f32) + ups_ref[...]
    a = a.reshape(S, S, hidden)                                       # (S, S, h)

    def pad_hw(t):
        """Zero-pad spatial dims by 1 on each side via concatenation."""
        H, W, C = t.shape
        zc = jnp.zeros((H, 1, C), f32)
        t = jnp.concatenate([zc, t, zc], axis=1)                      # (H, W+2, C)
        zr = jnp.zeros((1, W + 2, C), f32)
        return jnp.concatenate([zr, t, zr], axis=0)                   # (H+2, W+2, C)

    def contract(t, w_ref, s_ref):
        """k=4, s=2, p=1 conv (+ folded bias/BN) + LeakyReLU(0.2)."""
        Hin, Win, C = t.shape
        Ho, Wo = Hin // 2, Win // 2
        p = pad_hw(t)                                                 # (2Ho+2, 2Wo+2, C)
        # Even/odd split of both spatial axes: p[2i+ph, 2j+pw, c] == r[i, ph, j, pw, c]
        r = p.reshape(Ho + 1, 2, Wo + 1, 2, C)
        taps = []
        for kh in range(4):
            for kw in range(4):
                # padded[2*oh+kh, 2*ow+kw, :] for all (oh, ow)
                taps.append(r[kh // 2:kh // 2 + Ho, kh % 2,
                              kw // 2:kw // 2 + Wo, kw % 2, :])       # (Ho, Wo, C)
        cols = jnp.concatenate(taps, axis=-1).reshape(Ho * Wo, 16 * C)
        y = jnp.dot(cols, w_ref[...], preferred_element_type=f32) + s_ref[...]
        y = jnp.where(y > 0, y, 0.2 * y)                              # LeakyReLU(0.2)
        return y.reshape(Ho, Wo, y.shape[-1])

    a = contract(a, c1w_ref, c1s_ref)                                 # (S/2, S/2, 2h)
    a = contract(a, c2w_ref, c2s_ref)                                 # (S/4, S/4, 4h)
    a = contract(a, c3w_ref, c3s_ref)                                 # (S/8, S/8, 8h)

    # ---- final 1x1 conv, OC=1: VPU multiply + lane reduction (no MXU) --------
    out = jnp.sum(a * finw_ref[...], axis=-1, keepdims=True) + fins_ref[...]
    o_ref[0] = out                                                    # (S/8, S/8, 1)


# ------------------------------ JAX wrapper -----------------------------------
def _fold_layer(w_oihw, bias, scale=None, shift=None):
    """Fold bias + eval-mode BatchNorm into (weight matrix, per-channel shift).

    (X @ Wm + b) * s + t  ==  X @ (Wm * s) + (b * s + t).
    Weight-matrix rows are ordered (kh, kw, c) to match the kernel's tap order.
    """
    OC, C, KH, KW = w_oihw.shape
    wm = jnp.transpose(w_oihw, (2, 3, 1, 0)).reshape(KH * KW * C, OC).astype(jnp.float32)
    if scale is None:
        scale = jnp.ones((OC,), jnp.float32)
        shift = jnp.zeros((OC,), jnp.float32)
    wm = wm * scale[None, :]
    sh = (bias * scale + shift).reshape(1, OC).astype(jnp.float32)
    return wm, sh


def discriminator_forward(x_nchw, p, hidden=8):
    B, Cin, S, S2 = x_nchw.shape
    assert S == S2 and S % 8 == 0, "spatial size must be divisible by 8"
    h = hidden
    Hf = S // 8

    # NCHW (PyTorch) -> (B, S*S, C) channel-last rows, ready for the MXU.
    x2d = jnp.transpose(x_nchw, (0, 2, 3, 1)).reshape(B, S * S, Cin).astype(jnp.float32)

    upw, ups = _fold_layer(p["up_w"], p["up_b"])
    c1w, c1s = _fold_layer(p["c1_w"], p["c1_b"])
    c2w, c2s = _fold_layer(p["c2_w"], p["c2_b"], p["c2_scale"], p["c2_shift"])
    c3w, c3s = _fold_layer(p["c3_w"], p["c3_b"], p["c3_scale"], p["c3_shift"])
    fw, fs = _fold_layer(p["fin_w"], p["fin_b"])
    fw_row = fw.reshape(1, 8 * h)            # final 1x1 conv as a lane row-vector

    def const(arr):
        n = arr.ndim
        return pl.BlockSpec(arr.shape, lambda b, _n=n: (0,) * _n)

    out = pl.pallas_call(
        functools.partial(disc_fused_kernel, S=S, hidden=h),
        out_shape=jax.ShapeDtypeStruct((B, Hf, Hf, 1), jnp.float32),
        grid_spec=pltpu.PrefetchScalarGridSpec(
            num_scalar_prefetch=0,
            grid=(B,),
            in_specs=[
                pl.BlockSpec((1, S * S, Cin), lambda b: (b, 0, 0)),
                const(upw), const(ups),
                const(c1w), const(c1s),
                const(c2w), const(c2s),
                const(c3w), const(c3s),
                const(fw_row), const(fs),
            ],
            out_specs=pl.BlockSpec((1, Hf, Hf, 1), lambda b: (b, 0, 0, 0)),
        ),
        compiler_params=pltpu.CompilerParams(
            dimension_semantics=("parallel",),   # batch axis -> both TCs on v7x
        ),
    )(x2d, upw, ups, c1w, c1s, c2w, c2s, c3w, c3s, fw_row, fs)

    return jnp.transpose(out, (0, 3, 1, 2))      # back to NCHW: (B, 1, S/8, S/8)


# --------------------------- Parameter creation --------------------------------
def make_conv_params(key, out_ch, in_ch, k):
    kw, kb = jax.random.split(key)
    fan_in = in_ch * k * k
    w = jax.random.normal(kw, (out_ch, in_ch, k, k), jnp.float32) / jnp.sqrt(fan_in)
    b = 0.01 * jax.random.normal(kb, (out_ch,), jnp.float32)
    return w, b


def make_bn_fold(key, ch, eps=1e-5):
    """Eval-mode BatchNorm2d folded into per-channel (scale, shift)."""
    k1, k2, k3, k4 = jax.random.split(key, 4)
    gamma = 1.0 + 0.1 * jax.random.normal(k1, (ch,), jnp.float32)
    beta = 0.1 * jax.random.normal(k2, (ch,), jnp.float32)
    running_mean = 0.05 * jax.random.normal(k3, (ch,), jnp.float32)
    running_var = 1.0 + 0.1 * jax.random.uniform(k4, (ch,), jnp.float32)
    scale = gamma / jnp.sqrt(running_var + eps)
    shift = beta - running_mean * scale
    return scale, shift


def identity_affine(ch):
    return jnp.ones((ch,), jnp.float32), jnp.zeros((ch,), jnp.float32)


def build_discriminator_params(in_channels=3, hidden=8, seed=0):
    keys = jax.random.split(jax.random.PRNGKey(seed), 8)
    p = {}
    p["up_w"], p["up_b"] = make_conv_params(keys[0], hidden, in_channels, 1)
    p["c1_w"], p["c1_b"] = make_conv_params(keys[1], hidden * 2, hidden, 4)
    p["c2_w"], p["c2_b"] = make_conv_params(keys[2], hidden * 4, hidden * 2, 4)
    p["c2_scale"], p["c2_shift"] = make_bn_fold(keys[3], hidden * 4)
    p["c3_w"], p["c3_b"] = make_conv_params(keys[4], hidden * 8, hidden * 4, 4)
    p["c3_scale"], p["c3_shift"] = make_bn_fold(keys[5], hidden * 8)
    p["fin_w"], p["fin_b"] = make_conv_params(keys[6], 1, hidden * 8, 1)
    return p


# --------------------------- Pure-JAX reference --------------------------------
def ref_conv(x_nhwc, w_oihw, b, scale, shift, *, stride, pad, use_lrelu):
    w_hwio = jnp.transpose(w_oihw, (2, 3, 1, 0))
    y = lax.conv_general_dilated(
        x_nhwc, w_hwio, window_strides=(stride, stride),
        padding=((pad, pad), (pad, pad)),
        dimension_numbers=("NHWC", "HWIO", "NHWC"))
    y = y + b.reshape(1, 1, 1, -1)
    y = y * scale.reshape(1, 1, 1, -1) + shift.reshape(1, 1, 1, -1)
    if use_lrelu:
        y = jnp.where(y > 0, y, 0.2 * y)
    return y


def discriminator_reference(x_nchw, p, hidden=8):
    x = jnp.transpose(x_nchw, (0, 2, 3, 1)).astype(jnp.float32)
    x = ref_conv(x, p["up_w"], p["up_b"], *identity_affine(hidden),
                 stride=1, pad=0, use_lrelu=False)
    x = ref_conv(x, p["c1_w"], p["c1_b"], *identity_affine(hidden * 2),
                 stride=2, pad=1, use_lrelu=True)
    x = ref_conv(x, p["c2_w"], p["c2_b"], p["c2_scale"], p["c2_shift"],
                 stride=2, pad=1, use_lrelu=True)
    x = ref_conv(x, p["c3_w"], p["c3_b"], p["c3_scale"], p["c3_shift"],
                 stride=2, pad=1, use_lrelu=True)
    x = ref_conv(x, p["fin_w"], p["fin_b"], *identity_affine(1),
                 stride=1, pad=0, use_lrelu=False)
    return jnp.transpose(x, (0, 3, 1, 2))


# ---------------------------------- main ---------------------------------------
if __name__ == "__main__":
    # TODO(synk): BatchNorm2d training-mode batch statistics are not reproduced;
    # BN is applied in eval mode, folded into the conv weights / per-channel shift.
    IN_CH, HIDDEN, B, S = 3, 8, 2, 16

    key = jax.random.PRNGKey(0)
    x = jax.random.normal(key, (B, IN_CH, S, S), jnp.float32)   # NCHW like PyTorch

    params = build_discriminator_params(in_channels=IN_CH, hidden=HIDDEN, seed=0)

    fwd = jax.jit(functools.partial(discriminator_forward, hidden=HIDDEN))
    out = jax.block_until_ready(fwd(x, params))
    assert out.shape == (B, 1, S // 8, S // 8), out.shape

    ref = jax.block_until_ready(discriminator_reference(x, params, hidden=HIDDEN))
    assert jnp.allclose(out, ref, rtol=1e-3, atol=1e-3), \
        float(jnp.max(jnp.abs(out - ref)))

    print("KERNEL_OK")
</pallas_src>

<mosaic_0001>
module attributes {stable_mosaic.version = 11 : i64} {
  func.func @disc_fused_kernel(%arg0: i32, %arg1: memref<1x256x3xf32, #tpu.memory_space<vmem>>, %arg2: memref<3x8xf32, #tpu.memory_space<vmem>>, %arg3: memref<1x8xf32, #tpu.memory_space<vmem>>, %arg4: memref<128x16xf32, #tpu.memory_space<vmem>>, %arg5: memref<1x16xf32, #tpu.memory_space<vmem>>, %arg6: memref<256x32xf32, #tpu.memory_space<vmem>>, %arg7: memref<1x32xf32, #tpu.memory_space<vmem>>, %arg8: memref<512x64xf32, #tpu.memory_space<vmem>>, %arg9: memref<1x64xf32, #tpu.memory_space<vmem>>, %arg10: memref<1x64xf32, #tpu.memory_space<vmem>>, %arg11: memref<1x1xf32, #tpu.memory_space<vmem>>, %arg12: memref<1x2x2x1xf32, #tpu.memory_space<vmem>>) attributes {dimension_semantics = [#tpu.dimension_semantics<parallel>], iteration_bounds = array<i64: 2>, scalar_prefetch = 0 : i64, scratch_operands = 0 : i64, tpu.core_type = #tpu.core_type<tc>, window_params = [{transform_indices = @transform_0, window_bounds = array<i64: 1, 256, 3>}, {pipeline_mode = #tpu.pipeline_mode<synchronous>, transform_indices = @transform_1, window_bounds = array<i64: 3, 8>}, {pipeline_mode = #tpu.pipeline_mode<synchronous>, transform_indices = @transform_2, window_bounds = array<i64: 1, 8>}, {pipeline_mode = #tpu.pipeline_mode<synchronous>, transform_indices = @transform_3, window_bounds = array<i64: 128, 16>}, {pipeline_mode = #tpu.pipeline_mode<synchronous>, transform_indices = @transform_4, window_bounds = array<i64: 1, 16>}, {pipeline_mode = #tpu.pipeline_mode<synchronous>, transform_indices = @transform_5, window_bounds = array<i64: 256, 32>}, {pipeline_mode = #tpu.pipeline_mode<synchronous>, transform_indices = @transform_6, window_bounds = array<i64: 1, 32>}, {pipeline_mode = #tpu.pipeline_mode<synchronous>, transform_indices = @transform_7, window_bounds = array<i64: 512, 64>}, {pipeline_mode = #tpu.pipeline_mode<synchronous>, transform_indices = @transform_8, window_bounds = array<i64: 1, 64>}, {pipeline_mode = #tpu.pipeline_mode<synchronous>, transform_indices = @transform_9, window_bounds = array<i64: 1, 64>}, {pipeline_mode = #tpu.pipeline_mode<synchronous>, transform_indices = @transform_10, window_bounds = array<i64: 1, 1>}, {transform_indices = @transform_11, window_bounds = array<i64: 1, 2, 2, 1>}]} {
    %c0 = arith.constant 0 : index
    %c0_0 = arith.constant 0 : index
    %c0_1 = arith.constant 0 : index
    %0 = vector.load %arg1[%c0, %c0_0, %c0_1] : memref<1x256x3xf32, #tpu.memory_space<vmem>>, vector<1x256x3xf32>
    %1 = vector.shape_cast %0 : vector<1x256x3xf32> to vector<256x3xf32>
    %c0_2 = arith.constant 0 : index
    %c0_3 = arith.constant 0 : index
    %2 = vector.load %arg2[%c0_2, %c0_3] : memref<3x8xf32, #tpu.memory_space<vmem>>, vector<3x8xf32>
    %cst = arith.constant dense<0.000000e+00> : vector<256x8xf32>
    %3 = tpu.matmul %1, %2, %cst {dimension_numbers = #tpu.dot_dimension_numbers<[1], [0], [0], [1], [0, 0, 1, 1], [], []>} : vector<256x3xf32>, vector<3x8xf32>, vector<256x8xf32> -> vector<256x8xf32>
    %c0_4 = arith.constant 0 : index
    %c0_5 = arith.constant 0 : index
    %4 = vector.load %arg3[%c0_4, %c0_5] : memref<1x8xf32, #tpu.memory_space<vmem>>, vector<1x8xf32>
    %5 = vector.broadcast %4 : vector<1x8xf32> to vector<256x8xf32>
    %6 = arith.addf %3, %5 : vector<256x8xf32>
    %7 = vector.shape_cast %6 : vector<256x8xf32> to vector<16x16x8xf32>
    %cst_6 = arith.constant 0.000000e+00 : f32
    %8 = vector.broadcast %cst_6 : f32 to vector<16x1x8xf32>
    %9 = tpu.concatenate %8, %7, %8 in 1 : vector<16x1x8xf32>, vector<16x16x8xf32>, vector<16x1x8xf32> -> vector<16x18x8xf32>
    %cst_7 = arith.constant 0.000000e+00 : f32
    %10 = vector.broadcast %cst_7 : f32 to vector<1x18x8xf32>
    %11 = tpu.concatenate %10, %9, %10 in 0 : vector<1x18x8xf32>, vector<16x18x8xf32>, vector<1x18x8xf32> -> vector<18x18x8xf32>
    %12 = vector.shape_cast %11 : vector<18x18x8xf32> to vector<9x2x9x2x8xf32>
    %13 = vector.extract_strided_slice %12 {offsets = [0, 0, 0, 0, 0], sizes = [8, 1, 8, 1, 8], strides = [1, 1, 1, 1, 1]} : vector<9x2x9x2x8xf32> to vector<8x1x8x1x8xf32>
    %14 = vector.shape_cast %13 : vector<8x1x8x1x8xf32> to vector<8x8x8xf32>
    %15 = vector.extract_strided_slice %12 {offsets = [0, 0, 0, 1, 0], sizes = [8, 1, 8, 1, 8], strides = [1, 1, 1, 1, 1]} : vector<9x2x9x2x8xf32> to vector<8x1x8x1x8xf32>
    %16 = vector.shape_cast %15 : vector<8x1x8x1x8xf32> to vector<8x8x8xf32>
    %17 = vector.extract_strided_slice %12 {offsets = [0, 0, 1, 0, 0], sizes = [8, 1, 8, 1, 8], strides = [1, 1, 1, 1, 1]} : vector<9x2x9x2x8xf32> to vector<8x1x8x1x8xf32>
    %18 = vector.shape_cast %17 : vector<8x1x8x1x8xf32> to vector<8x8x8xf32>
    %19 = vector.extract_strided_slice %12 {offsets = [0, 0, 1, 1, 0], sizes = [8, 1, 8, 1, 8], strides = [1, 1, 1, 1, 1]} : vector<9x2x9x2x8xf32> to vector<8x1x8x1x8xf32>
    %20 = vector.shape_cast %19 : vector<8x1x8x1x8xf32> to vector<8x8x8xf32>
    %21 = vector.extract_strided_slice %12 {offsets = [0, 1, 0, 0, 0], sizes = [8, 1, 8, 1, 8], strides = [1, 1, 1, 1, 1]} : vector<9x2x9x2x8xf32> to vector<8x1x8x1x8xf32>
    %22 = vector.shape_cast %21 : vector<8x1x8x1x8xf32> to vector<8x8x8xf32>
    %23 = vector.extract_strided_slice %12 {offsets = [0, 1, 0, 1, 0], sizes = [8, 1, 8, 1, 8], strides = [1, 1, 1, 1, 1]} : vector<9x2x9x2x8xf32> to vector<8x1x8x1x8xf32>
    %24 = vector.shape_cast %23 : vector<8x1x8x1x8xf32> to vector<8x8x8xf32>
    %25 = vector.extract_strided_slice %12 {offsets = [0, 1, 1, 0, 0], sizes = [8, 1, 8, 1, 8], strides = [1, 1, 1, 1, 1]} : vector<9x2x9x2x8xf32> to vector<8x1x8x1x8xf32>
    %26 = vector.shape_cast %25 : vector<8x1x8x1x8xf32> to vector<8x8x8xf32>
    %27 = vector.extract_strided_slice %12 {offsets = [0, 1, 1, 1, 0], sizes = [8, 1, 8, 1, 8], strides = [1, 1, 1, 1, 1]} : vector<9x2x9x2x8xf32> to vector<8x1x8x1x8xf32>
    %28 = vector.shape_cast %27 : vector<8x1x8x1x8xf32> to vector<8x8x8xf32>
    %29 = vector.extract_strided_slice %12 {offsets = [1, 0, 0, 0, 0], sizes = [8, 1, 8, 1, 8], strides = [1, 1, 1, 1, 1]} : vector<9x2x9x2x8xf32> to vector<8x1x8x1x8xf32>
    %30 = vector.shape_cast %29 : vector<8x1x8x1x8xf32> to vector<8x8x8xf32>
    %31 = vector.extract_strided_slice %12 {offsets = [1, 0, 0, 1, 0], sizes = [8, 1, 8, 1, 8], strides = [1, 1, 1, 1, 1]} : vector<9x2x9x2x8xf32> to vector<8x1x8x1x8xf32>
    %32 = vector.shape_cast %31 : vector<8x1x8x1x8xf32> to vector<8x8x8xf32>
    %33 = vector.extract_strided_slice %12 {offsets = [1, 0, 1, 0, 0], sizes = [8, 1, 8, 1, 8], strides = [1, 1, 1, 1, 1]} : vector<9x2x9x2x8xf32> to vector<8x1x8x1x8xf32>
    %34 = vector.shape_cast %33 : vector<8x1x8x1x8xf32> to vector<8x8x8xf32>
    %35 = vector.extract_strided_slice %12 {offsets = [1, 0, 1, 1, 0], sizes = [8, 1, 8, 1, 8], strides = [1, 1, 1, 1, 1]} : vector<9x2x9x2x8xf32> to vector<8x1x8x1x8xf32>
    %36 = vector.shape_cast %35 : vector<8x1x8x1x8xf32> to vector<8x8x8xf32>
    %37 = vector.extract_strided_slice %12 {offsets = [1, 1, 0, 0, 0], sizes = [8, 1, 8, 1, 8], strides = [1, 1, 1, 1, 1]} : vector<9x2x9x2x8xf32> to vector<8x1x8x1x8xf32>
    %38 = vector.shape_cast %37 : vector<8x1x8x1x8xf32> to vector<8x8x8xf32>
    %39 = vector.extract_strided_slice %12 {offsets = [1, 1, 0, 1, 0], sizes = [8, 1, 8, 1, 8], strides = [1, 1, 1, 1, 1]} : vector<9x2x9x2x8xf32> to vector<8x1x8x1x8xf32>
    %40 = vector.shape_cast %39 : vector<8x1x8x1x8xf32> to vector<8x8x8xf32>
    %41 = vector.extract_strided_slice %12 {offsets = [1, 1, 1, 0, 0], sizes = [8, 1, 8, 1, 8], strides = [1, 1, 1, 1, 1]} : vector<9x2x9x2x8xf32> to vector<8x1x8x1x8xf32>
    %42 = vector.shape_cast %41 : vector<8x1x8x1x8xf32> to vector<8x8x8xf32>
    %43 = vector.extract_strided_slice %12 {offsets = [1, 1, 1, 1, 0], sizes = [8, 1, 8, 1, 8], strides = [1, 1, 1, 1, 1]} : vector<9x2x9x2x8xf32> to vector<8x1x8x1x8xf32>
    %44 = vector.shape_cast %43 : vector<8x1x8x1x8xf32> to vector<8x8x8xf32>
    %45 = tpu.concatenate %14, %16, %18, %20, %22, %24, %26, %28, %30, %32, %34, %36, %38, %40, %42, %44 in 2 : vector<8x8x8xf32>, vector<8x8x8xf32>, vector<8x8x8xf32>, vector<8x8x8xf32>, vector<8x8x8xf32>, vector<8x8x8xf32>, vector<8x8x8xf32>, vector<8x8x8xf32>, vector<8x8x8xf32>, vector<8x8x8xf32>, vector<8x8x8xf32>, vector<8x8x8xf32>, vector<8x8x8xf32>, vector<8x8x8xf32>, vector<8x8x8xf32>, vector<8x8x8xf32> -> vector<8x8x128xf32>
    %46 = vector.shape_cast %45 : vector<8x8x128xf32> to vector<64x128xf32>
    %c0_8 = arith.constant 0 : index
    %c0_9 = arith.constant 0 : index
    %47 = vector.load %arg4[%c0_8, %c0_9] : memref<128x16xf32, #tpu.memory_space<vmem>>, vector<128x16xf32>
    %cst_10 = arith.constant dense<0.000000e+00> : vector<64x16xf32>
    %48 = tpu.matmul %46, %47, %cst_10 {dimension_numbers = #tpu.dot_dimension_numbers<[1], [0], [0], [1], [0, 0, 1, 1], [], []>} : vector<64x128xf32>, vector<128x16xf32>, vector<64x16xf32> -> vector<64x16xf32>
    %c0_11 = arith.constant 0 : index
    %c0_12 = arith.constant 0 : index
    %49 = vector.load %arg5[%c0_11, %c0_12] : memref<1x16xf32, #tpu.memory_space<vmem>>, vector<1x16xf32>
    %50 = vector.broadcast %49 : vector<1x16xf32> to vector<64x16xf32>
    %51 = arith.addf %48, %50 : vector<64x16xf32>
    %cst_13 = arith.constant 0.000000e+00 : f32
    %52 = vector.broadcast %cst_13 : f32 to vector<64x16xf32>
    %53 = arith.cmpf ogt, %51, %52 : vector<64x16xf32>
    %cst_14 = arith.constant 2.000000e-01 : f32
    %54 = vector.broadcast %cst_14 : f32 to vector<64x16xf32>
    %55 = arith.mulf %54, %51 : vector<64x16xf32>
    %56 = arith.select %53, %51, %55 : vector<64x16xi1>, vector<64x16xf32>
    %57 = vector.shape_cast %56 : vector<64x16xf32> to vector<8x8x16xf32>
    %cst_15 = arith.constant 0.000000e+00 : f32
    %58 = vector.broadcast %cst_15 : f32 to vector<8x1x16xf32>
    %59 = tpu.concatenate %58, %57, %58 in 1 : vector<8x1x16xf32>, vector<8x8x16xf32>, vector<8x1x16xf32> -> vector<8x10x16xf32>
    %cst_16 = arith.constant 0.000000e+00 : f32
    %60 = vector.broadcast %cst_16 : f32 to vector<1x10x16xf32>
    %61 = tpu.concatenate %60, %59, %60 in 0 : vector<1x10x16xf32>, vector<8x10x16xf32>, vector<1x10x16xf32> -> vector<10x10x16xf32>
    %62 = vector.shape_cast %61 : vector<10x10x16xf32> to vector<5x2x5x2x16xf32>
    %63 = vector.extract_strided_slice %62 {offsets = [0, 0, 0, 0, 0], sizes = [4, 1, 4, 1, 16], strides = [1, 1, 1, 1, 1]} : vector<5x2x5x2x16xf32> to vector<4x1x4x1x16xf32>
    %64 = vector.shape_cast %63 : vector<4x1x4x1x16xf32> to vector<4x4x16xf32>
    %65 = vector.extract_strided_slice %62 {offsets = [0, 0, 0, 1, 0], sizes = [4, 1, 4, 1, 16], strides = [1, 1, 1, 1, 1]} : vector<5x2x5x2x16xf32> to vector<4x1x4x1x16xf32>
    %66 = vector.shape_cast %65 : vector<4x1x4x1x16xf32> to vector<4x4x16xf32>
    %67 = vector.extract_strided_slice %62 {offsets = [0, 0, 1, 0, 0], sizes = [4, 1, 4, 1, 16], strides = [1, 1, 1, 1, 1]} : vector<5x2x5x2x16xf32> to vector<4x1x4x1x16xf32>
    %68 = vector.shape_cast %67 : vector<4x1x4x1x16xf32> to vector<4x4x16xf32>
    %69 = vector.extract_strided_slice %62 {offsets = [0, 0, 1, 1, 0], sizes = [4, 1, 4, 1, 16], strides = [1, 1, 1, 1, 1]} : vector<5x2x5x2x16xf32> to vector<4x1x4x1x16xf32>
    %70 = vector.shape_cast %69 : vector<4x1x4x1x16xf32> to vector<4x4x16xf32>
    %71 = vector.extract_strided_slice %62 {offsets = [0, 1, 0, 0, 0], sizes = [4, 1, 4, 1, 16], strides = [1, 1, 1, 1, 1]} : vector<5x2x5x2x16xf32> to vector<4x1x4x1x16xf32>
    %72 = vector.shape_cast %71 : vector<4x1x4x1x16xf32> to vector<4x4x16xf32>
    %73 = vector.extract_strided_slice %62 {offsets = [0, 1, 0, 1, 0], sizes = [4, 1, 4, 1, 16], strides = [1, 1, 1, 1, 1]} : vector<5x2x5x2x16xf32> to vector<4x1x4x1x16xf32>
    %74 = vector.shape_cast %73 : vector<4x1x4x1x16xf32> to vector<4x4x16xf32>
    %75 = vector.extract_strided_slice %62 {offsets = [0, 1, 1, 0, 0], sizes = [4, 1, 4, 1, 16], strides = [1, 1, 1, 1, 1]} : vector<5x2x5x2x16xf32> to vector<4x1x4x1x16xf32>
    %76 = vector.shape_cast %75 : vector<4x1x4x1x16xf32> to vector<4x4x16xf32>
    %77 = vector.extract_strided_slice %62 {offsets = [0, 1, 1, 1, 0], sizes = [4, 1, 4, 1, 16], strides = [1, 1, 1, 1, 1]} : vector<5x2x5x2x16xf32> to vector<4x1x4x1x16xf32>
    %78 = vector.shape_cast %77 : vector<4x1x4x1x16xf32> to vector<4x4x16xf32>
    %79 = vector.extract_strided_slice %62 {offsets = [1, 0, 0, 0, 0], sizes = [4, 1, 4, 1, 16], strides = [1, 1, 1, 1, 1]} : vector<5x2x5x2x16xf32> to vector<4x1x4x1x16xf32>
    %80 = vector.shape_cast %79 : vector<4x1x4x1x16xf32> to vector<4x4x16xf32>
    %81 = vector.extract_strided_slice %62 {offsets = [1, 0, 0, 1, 0], sizes = [4, 1, 4, 1, 16], strides = [1, 1, 1, 1, 1]} : vector<5x2x5x2x16xf32> to vector<4x1x4x1x16xf32>
    %82 = vector.shape_cast %81 : vector<4x1x4x1x16xf32> to vector<4x4x16xf32>
    %83 = vector.extract_strided_slice %62 {offsets = [1, 0, 1, 0, 0], sizes = [4, 1, 4, 1, 16], strides = [1, 1, 1, 1, 1]} : vector<5x2x5x2x16xf32> to vector<4x1x4x1x16xf32>
    %84 = vector.shape_cast %83 : vector<4x1x4x1x16xf32> to vector<4x4x16xf32>
    %85 = vector.extract_strided_slice %62 {offsets = [1, 0, 1, 1, 0], sizes = [4, 1, 4, 1, 16], strides = [1, 1, 1, 1, 1]} : vector<5x2x5x2x16xf32> to vector<4x1x4x1x16xf32>
    %86 = vector.shape_cast %85 : vector<4x1x4x1x16xf32> to vector<4x4x16xf32>
    %87 = vector.extract_strided_slice %62 {offsets = [1, 1, 0, 0, 0], sizes = [4, 1, 4, 1, 16], strides = [1, 1, 1, 1, 1]} : vector<5x2x5x2x16xf32> to vector<4x1x4x1x16xf32>
    %88 = vector.shape_cast %87 : vector<4x1x4x1x16xf32> to vector<4x4x16xf32>
    %89 = vector.extract_strided_slice %62 {offsets = [1, 1, 0, 1, 0], sizes = [4, 1, 4, 1, 16], strides = [1, 1, 1, 1, 1]} : vector<5x2x5x2x16xf32> to vector<4x1x4x1x16xf32>
    %90 = vector.shape_cast %89 : vector<4x1x4x1x16xf32> to vector<4x4x16xf32>
    %91 = vector.extract_strided_slice %62 {offsets = [1, 1, 1, 0, 0], sizes = [4, 1, 4, 1, 16], strides = [1, 1, 1, 1, 1]} : vector<5x2x5x2x16xf32> to vector<4x1x4x1x16xf32>
    %92 = vector.shape_cast %91 : vector<4x1x4x1x16xf32> to vector<4x4x16xf32>
    %93 = vector.extract_strided_slice %62 {offsets = [1, 1, 1, 1, 0], sizes = [4, 1, 4, 1, 16], strides = [1, 1, 1, 1, 1]} : vector<5x2x5x2x16xf32> to vector<4x1x4x1x16xf32>
    %94 = vector.shape_cast %93 : vector<4x1x4x1x16xf32> to vector<4x4x16xf32>
    %95 = tpu.concatenate %64, %66, %68, %70, %72, %74, %76, %78, %80, %82, %84, %86, %88, %90, %92, %94 in 2 : vector<4x4x16xf32>, vector<4x4x16xf32>, vector<4x4x16xf32>, vector<4x4x16xf32>, vector<4x4x16xf32>, vector<4x4x16xf32>, vector<4x4x16xf32>, vector<4x4x16xf32>, vector<4x4x16xf32>, vector<4x4x16xf32>, vector<4x4x16xf32>, vector<4x4x16xf32>, vector<4x4x16xf32>, vector<4x4x16xf32>, vector<4x4x16xf32>, vector<4x4x16xf32> -> vector<4x4x256xf32>
    %96 = vector.shape_cast %95 : vector<4x4x256xf32> to vector<16x256xf32>
    %c0_17 = arith.constant 0 : index
    %c0_18 = arith.constant 0 : index
    %97 = vector.load %arg6[%c0_17, %c0_18] : memref<256x32xf32, #tpu.memory_space<vmem>>, vector<256x32xf32>
    %cst_19 = arith.constant dense<0.000000e+00> : vector<16x32xf32>
    %98 = tpu.matmul %96, %97, %cst_19 {dimension_numbers = #tpu.dot_dimension_numbers<[1], [0], [0], [1], [0, 0, 1, 1], [], []>} : vector<16x256xf32>, vector<256x32xf32>, vector<16x32xf32> -> vector<16x32xf32>
    %c0_20 = arith.constant 0 : index
    %c0_21 = arith.constant 0 : index
    %99 = vector.load %arg7[%c0_20, %c0_21] : memref<1x32xf32, #tpu.memory_space<vmem>>, vector<1x32xf32>
    %100 = vector.broadcast %99 : vector<1x32xf32> to vector<16x32xf32>
    %101 = arith.addf %98, %100 : vector<16x32xf32>
    %cst_22 = arith.constant 0.000000e+00 : f32
    %102 = vector.broadcast %cst_22 : f32 to vector<16x32xf32>
    %103 = arith.cmpf ogt, %101, %102 : vector<16x32xf32>
    %cst_23 = arith.constant 2.000000e-01 : f32
    %104 = vector.broadcast %cst_23 : f32 to vector<16x32xf32>
    %105 = arith.mulf %104, %101 : vector<16x32xf32>
    %106 = arith.select %103, %101, %105 : vector<16x32xi1>, vector<16x32xf32>
    %107 = vector.shape_cast %106 : vector<16x32xf32> to vector<4x4x32xf32>
    %cst_24 = arith.constant 0.000000e+00 : f32
    %108 = vector.broadcast %cst_24 : f32 to vector<4x1x32xf32>
    %109 = tpu.concatenate %108, %107, %108 in 1 : vector<4x1x32xf32>, vector<4x4x32xf32>, vector<4x1x32xf32> -> vector<4x6x32xf32>
    %cst_25 = arith.constant 0.000000e+00 : f32
    %110 = vector.broadcast %cst_25 : f32 to vector<1x6x32xf32>
    %111 = tpu.concatenate %110, %109, %110 in 0 : vector<1x6x32xf32>, vector<4x6x32xf32>, vector<1x6x32xf32> -> vector<6x6x32xf32>
    %112 = vector.shape_cast %111 : vector<6x6x32xf32> to vector<3x2x3x2x32xf32>
    %113 = vector.extract_strided_slice %112 {offsets = [0, 0, 0, 0, 0], sizes = [2, 1, 2, 1, 32], strides = [1, 1, 1, 1, 1]} : vector<3x2x3x2x32xf32> to vector<2x1x2x1x32xf32>
    %114 = vector.shape_cast %113 : vector<2x1x2x1x32xf32> to vector<2x2x32xf32>
    %115 = vector.extract_strided_slice %112 {offsets = [0, 0, 0, 1, 0], sizes = [2, 1, 2, 1, 32], strides = [1, 1, 1, 1, 1]} : vector<3x2x3x2x32xf32> to vector<2x1x2x1x32xf32>
    %116 = vector.shape_cast %115 : vector<2x1x2x1x32xf32> to vector<2x2x32xf32>
    %117 = vector.extract_strided_slice %112 {offsets = [0, 0, 1, 0, 0], sizes = [2, 1, 2, 1, 32], strides = [1, 1, 1, 1, 1]} : vector<3x2x3x2x32xf32> to vector<2x1x2x1x32xf32>
    %118 = vector.shape_cast %117 : vector<2x1x2x1x32xf32> to vector<2x2x32xf32>
    %119 = vector.extract_strided_slice %112 {offsets = [0, 0, 1, 1, 0], sizes = [2, 1, 2, 1, 32], strides = [1, 1, 1, 1, 1]} : vector<3x2x3x2x32xf32> to vector<2x1x2x1x32xf32>
    %120 = vector.shape_cast %119 : vector<2x1x2x1x32xf32> to vector<2x2x32xf32>
    %121 = vector.extract_strided_slice %112 {offsets = [0, 1, 0, 0, 0], sizes = [2, 1, 2, 1, 32], strides = [1, 1, 1, 1, 1]} : vector<3x2x3x2x32xf32> to vector<2x1x2x1x32xf32>
    %122 = vector.shape_cast %121 : vector<2x1x2x1x32xf32> to vector<2x2x32xf32>
    %123 = vector.extract_strided_slice %112 {offsets = [0, 1, 0, 1, 0], sizes = [2, 1, 2, 1, 32], strides = [1, 1, 1, 1, 1]} : vector<3x2x3x2x32xf32> to vector<2x1x2x1x32xf32>
    %124 = vector.shape_cast %123 : vector<2x1x2x1x32xf32> to vector<2x2x32xf32>
    %125 = vector.extract_strided_slice %112 {offsets = [0, 1, 1, 0, 0], sizes = [2, 1, 2, 1, 32], strides = [1, 1, 1, 1, 1]} : vector<3x2x3x2x32xf32> to vector<2x1x2x1x32xf32>
    %126 = vector.shape_cast %125 : vector<2x1x2x1x32xf32> to vector<2x2x32xf32>
    %127 = vector.extract_strided_slice %112 {offsets = [0, 1, 1, 1, 0], sizes = [2, 1, 2, 1, 32], strides = [1, 1, 1, 1, 1]} : vector<3x2x3x2x32xf32> to vector<2x1x2x1x32xf32>
    %128 = vector.shape_cast %127 : vector<2x1x2x1x32xf32> to vector<2x2x32xf32>
    %129 = vector.extract_strided_slice %112 {offsets = [1, 0, 0, 0, 0], sizes = [2, 1, 2, 1, 32], strides = [1, 1, 1, 1, 1]} : vector<3x2x3x2x32xf32> to vector<2x1x2x1x32xf32>
    %130 = vector.shape_cast %129 : vector<2x1x2x1x32xf32> to vector<2x2x32xf32>
    %131 = vector.extract_strided_slice %112 {offsets = [1, 0, 0, 1, 0], sizes = [2, 1, 2, 1, 32], strides = [1, 1, 1, 1, 1]} : vector<3x2x3x2x32xf32> to vector<2x1x2x1x32xf32>
    %132 = vector.shape_cast %131 : vector<2x1x2x1x32xf32> to vector<2x2x32xf32>
    %133 = vector.extract_strided_slice %112 {offsets = [1, 0, 1, 0, 0], sizes = [2, 1, 2, 1, 32], strides = [1, 1, 1, 1, 1]} : vector<3x2x3x2x32xf32> to vector<2x1x2x1x32xf32>
    %134 = vector.shape_cast %133 : vector<2x1x2x1x32xf32> to vector<2x2x32xf32>
    %135 = vector.extract_strided_slice %112 {offsets = [1, 0, 1, 1, 0], sizes = [2, 1, 2, 1, 32], strides = [1, 1, 1, 1, 1]} : vector<3x2x3x2x32xf32> to vector<2x1x2x1x32xf32>
    %136 = vector.shape_cast %135 : vector<2x1x2x1x32xf32> to vector<2x2x32xf32>
    %137 = vector.extract_strided_slice %112 {offsets = [1, 1, 0, 0, 0], sizes = [2, 1, 2, 1, 32], strides = [1, 1, 1, 1, 1]} : vector<3x2x3x2x32xf32> to vector<2x1x2x1x32xf32>
    %138 = vector.shape_cast %137 : vector<2x1x2x1x32xf32> to vector<2x2x32xf32>
    %139 = vector.extract_strided_slice %112 {offsets = [1, 1, 0, 1, 0], sizes = [2, 1, 2, 1, 32], strides = [1, 1, 1, 1, 1]} : vector<3x2x3x2x32xf32> to vector<2x1x2x1x32xf32>
    %140 = vector.shape_cast %139 : vector<2x1x2x1x32xf32> to vector<2x2x32xf32>
    %141 = vector.extract_strided_slice %112 {offsets = [1, 1, 1, 0, 0], sizes = [2, 1, 2, 1, 32], strides = [1, 1, 1, 1, 1]} : vector<3x2x3x2x32xf32> to vector<2x1x2x1x32xf32>
    %142 = vector.shape_cast %141 : vector<2x1x2x1x32xf32> to vector<2x2x32xf32>
    %143 = vector.extract_strided_slice %112 {offsets = [1, 1, 1, 1, 0], sizes = [2, 1, 2, 1, 32], strides = [1, 1, 1, 1, 1]} : vector<3x2x3x2x32xf32> to vector<2x1x2x1x32xf32>
    %144 = vector.shape_cast %143 : vector<2x1x2x1x32xf32> to vector<2x2x32xf32>
    %145 = tpu.concatenate %114, %116, %118, %120, %122, %124, %126, %128, %130, %132, %134, %136, %138, %140, %142, %144 in 2 : vector<2x2x32xf32>, vector<2x2x32xf32>, vector<2x2x32xf32>, vector<2x2x32xf32>, vector<2x2x32xf32>, vector<2x2x32xf32>, vector<2x2x32xf32>, vector<2x2x32xf32>, vector<2x2x32xf32>, vector<2x2x32xf32>, vector<2x2x32xf32>, vector<2x2x32xf32>, vector<2x2x32xf32>, vector<2x2x32xf32>, vector<2x2x32xf32>, vector<2x2x32xf32> -> vector<2x2x512xf32>
    %146 = vector.shape_cast %145 : vector<2x2x512xf32> to vector<4x512xf32>
    %c0_26 = arith.constant 0 : index
    %c0_27 = arith.constant 0 : index
    %147 = vector.load %arg8[%c0_26, %c0_27] : memref<512x64xf32, #tpu.memory_space<vmem>>, vector<512x64xf32>
    %cst_28 = arith.constant dense<0.000000e+00> : vector<4x64xf32>
    %148 = tpu.matmul %146, %147, %cst_28 {dimension_numbers = #tpu.dot_dimension_numbers<[1], [0], [0], [1], [0, 0, 1, 1], [], []>} : vector<4x512xf32>, vector<512x64xf32>, vector<4x64xf32> -> vector<4x64xf32>
    %c0_29 = arith.constant 0 : index
    %c0_30 = arith.constant 0 : index
    %149 = vector.load %arg9[%c0_29, %c0_30] : memref<1x64xf32, #tpu.memory_space<vmem>>, vector<1x64xf32>
    %150 = vector.broadcast %149 : vector<1x64xf32> to vector<4x64xf32>
    %151 = arith.addf %148, %150 : vector<4x64xf32>
    %cst_31 = arith.constant 0.000000e+00 : f32
    %152 = vector.broadcast %cst_31 : f32 to vector<4x64xf32>
    %153 = arith.cmpf ogt, %151, %152 : vector<4x64xf32>
    %cst_32 = arith.constant 2.000000e-01 : f32
    %154 = vector.broadcast %cst_32 : f32 to vector<4x64xf32>
    %155 = arith.mulf %154, %151 : vector<4x64xf32>
    %156 = arith.select %153, %151, %155 : vector<4x64xi1>, vector<4x64xf32>
    %157 = vector.shape_cast %156 : vector<4x64xf32> to vector<2x2x64xf32>
    %c0_33 = arith.constant 0 : index
    %c0_34 = arith.constant 0 : index
    %158 = vector.load %arg10[%c0_33, %c0_34] : memref<1x64xf32, #tpu.memory_space<vmem>>, vector<1x64xf32>
    %159 = vector.shape_cast %158 : vector<1x64xf32> to vector<1x1x64xf32>
    %160 = vector.broadcast %159 : vector<1x1x64xf32> to vector<2x2x64xf32>
    %161 = arith.mulf %157, %160 : vector<2x2x64xf32>
    %cst_35 = arith.constant dense<0.000000e+00> : vector<2x2xf32>
    %162 = vector.multi_reduction <add>, %161, %cst_35 [2] : vector<2x2x64xf32> to vector<2x2xf32>
    %163 = vector.shape_cast %162 : vector<2x2xf32> to vector<2x2x1xf32>
    %c0_36 = arith.constant 0 : index
    %c0_37 = arith.constant 0 : index
    %164 = vector.load %arg11[%c0_36, %c0_37] : memref<1x1xf32, #tpu.memory_space<vmem>>, vector<1x1xf32>
    %165 = vector.shape_cast %164 : vector<1x1xf32> to vector<1x1x1xf32>
    %166 = vector.broadcast %165 : vector<1x1x1xf32> to vector<2x2x1xf32>
    %167 = arith.addf %163, %166 : vector<2x2x1xf32>
    %c0_38 = arith.constant 0 : index
    %c0_39 = arith.constant 0 : index
    %c0_40 = arith.constant 0 : index
    %c0_41 = arith.constant 0 : index
    %168 = vector.load %arg12[%c0_38, %c0_39, %c0_40, %c0_41] : memref<1x2x2x1xf32, #tpu.memory_space<vmem>>, vector<1x2x2x1xf32>
    %169 = vector.shape_cast %168 : vector<1x2x2x1xf32> to vector<2x2x1xf32>
    %170 = vector.shape_cast %167 : vector<2x2x1xf32> to vector<1x2x2x1xf32>
    tpu.vector_store %arg12[%c0_38, %c0_39, %c0_40, %c0_41], %170 {strides = array<i32>} : memref<1x2x2x1xf32, #tpu.memory_space<vmem>>, vector<1x2x2x1xf32>,
    return
  }
  func.func @transform_0(%arg0: i32) -> (i32, i32, i32) {
    %c0_i32 = arith.constant 0 : i32
    %c0_i32_0 = arith.constant 0 : i32
    %c0_i32_1 = arith.constant 0 : i32
    return %arg0, %c0_i32, %c0_i32_0 : i32, i32, i32
  }
  func.func @transform_1(%arg0: i32) -> (i32, i32) {
    %c0_i32 = arith.constant 0 : i32
    %c0_i32_0 = arith.constant 0 : i32
    %c0_i32_1 = arith.constant 0 : i32
    return %c0_i32, %c0_i32_0 : i32, i32
  }
  func.func @transform_2(%arg0: i32) -> (i32, i32) {
    %c0_i32 = arith.constant 0 : i32
    %c0_i32_0 = arith.constant 0 : i32
    %c0_i32_1 = arith.constant 0 : i32
    return %c0_i32, %c0_i32_0 : i32, i32
  }
  func.func @transform_3(%arg0: i32) -> (i32, i32) {
    %c0_i32 = arith.constant 0 : i32
    %c0_i32_0 = arith.constant 0 : i32
    %c0_i32_1 = arith.constant 0 : i32
    return %c0_i32, %c0_i32_0 : i32, i32
  }
  func.func @transform_4(%arg0: i32) -> (i32, i32) {
    %c0_i32 = arith.constant 0 : i32
    %c0_i32_0 = arith.constant 0 : i32
    %c0_i32_1 = arith.constant 0 : i32
    return %c0_i32, %c0_i32_0 : i32, i32
  }
  func.func @transform_5(%arg0: i32) -> (i32, i32) {
    %c0_i32 = arith.constant 0 : i32
    %c0_i32_0 = arith.constant 0 : i32
    %c0_i32_1 = arith.constant 0 : i32
    return %c0_i32, %c0_i32_0 : i32, i32
  }
  func.func @transform_6(%arg0: i32) -> (i32, i32) {
    %c0_i32 = arith.constant 0 : i32
    %c0_i32_0 = arith.constant 0 : i32
    %c0_i32_1 = arith.constant 0 : i32
    return %c0_i32, %c0_i32_0 : i32, i32
  }
  func.func @transform_7(%arg0: i32) -> (i32, i32) {
    %c0_i32 = arith.constant 0 : i32
    %c0_i32_0 = arith.constant 0 : i32
    %c0_i32_1 = arith.constant 0 : i32
    return %c0_i32, %c0_i32_0 : i32, i32
  }
  func.func @transform_8(%arg0: i32) -> (i32, i32) {
    %c0_i32 = arith.constant 0 : i32
    %c0_i32_0 = arith.constant 0 : i32
    %c0_i32_1 = arith.constant 0 : i32
    return %c0_i32, %c0_i32_0 : i32, i32
  }
  func.func @transform_9(%arg0: i32) -> (i32, i32) {
    %c0_i32 = arith.constant 0 : i32
    %c0_i32_0 = arith.constant 0 : i32
    %c0_i32_1 = arith.constant 0 : i32
    return %c0_i32, %c0_i32_0 : i32, i32
  }
  func.func @transform_10(%arg0: i32) -> (i32, i32) {
    %c0_i32 = arith.constant 0 : i32
    %c0_i32_0 = arith.constant 0 : i32
    %c0_i32_1 = arith.constant 0 : i32
    return %c0_i32, %c0_i32_0 : i32, i32
  }
  func.func @transform_11(%arg0: i32) -> (i32, i32, i32, i32) {
    %c0_i32 = arith.constant 0 : i32
    %c0_i32_0 = arith.constant 0 : i32
    %c0_i32_1 = arith.constant 0 : i32
    %c0_i32_2 = arith.constant 0 : i32
    return %arg0, %c0_i32, %c0_i32_0, %c0_i32_1 : i32, i32, i32, i32
  }
}

</mosaic_0001>

<bundles_post_ra>
// kernel: discriminator_forward.1
= control target key start
LH: loop header
LB: loop body
LE: loop exit
PB: predicated region body
PF: predicated region fallthrough
CT: control target
= control target key end

     0   :  { %s6360_s19 = smov 0   ;;  %s9837_s0 = inlined_call_operand.vmem [shape: f32[2,256,3], index: 0, kind: input, shape index: {}]   ;;  %s9838_s1 = inlined_call_operand.vmem [shape: f32[3,8], index: 1, kind: input, shape index: {}]   ;;  %s9839_s2 = inlined_call_operand.vmem [shape: f32[1,8], index: 2, kind: input, shape index: {}]   ;;  %s9840_s3 = inlined_call_operand.vmem [shape: f32[128,16], index: 3, kind: input, shape index: {}]   ;;  %s9841_s4 = inlined_call_operand.vmem [shape: f32[1,16], index: 4, kind: input, shape index: {}]   ;;  %s9842_s5 = inlined_call_operand.vmem [shape: f32[256,32], index: 5, kind: input, shape index: {}]   ;;  %s9843_s6 = inlined_call_operand.vmem [shape: f32[1,32], index: 6, kind: input, shape index: {}]   ;;  %s9844_s7 = inlined_call_operand.vmem [shape: f32[512,64], index: 7, kind: input, shape index: {}]   ;;  %s9845_s8 = inlined_call_operand.vmem [shape: f32[1,64], index: 8, kind: input, shape index: {}]   ;;  %s9846_s9 = inlined_call_operand.vmem [shape: f32[1,64], index: 9, kind: input, shape index: {}]   ;;  %s9847_s10 = inlined_call_operand.<no memory space> [shape: f32[1,1], index: 10, kind: input, shape index: {}]   ;;  %s9848_s11 = inlined_call_operand.vmem [shape: f32[2,2,2,1], index: 11, kind: output, shape index: {}]  }
   0x1   :  { %v16_v0 = vstv %s9847_s10 }
   0x2   :  { %17 = vst [vmem:[#allocation2] sm:$0x1] %v16_v0 }
   0x3 LB: > { %s5501_s20 = sadd.s32 4294967295, %s6278_s19   ;;  %p5505_p0 = scmp.ge.s32.totalorder %s6278_s19, 1  ;;  %s6278_s19 = sphi %s6360_s19, %s23_s19  }
   0x4   : > { %p339_p1 = scmp.lt.s32.totalorder %s6278_s19, 3 }
   0x6   : > { %p340_p2 = pnand %p5505_p0, %p339_p1 }
   0x8   : > { %343 = sbr.rel (%p340_p2) target bundleno = 1768 (0x6e8), region = 64 }
   0xf   : > { %v421_v1 = vld [vmem:[%s9838_s1] sm:$0x7]  ;;  %vm526_vm0 = vcmask 1042432   ;;  %p379_p3 = scmp.lt.s32.totalorder %s5501_s20, 1  ;;  %vm429_vm1 = vcmask 23552   ;;  %v937_v36 = vlaneseq  ;;  %v6281_v40 = vmov 0.0  }
  0x10   : > { %5724 = vmatprep.subr.msk.mxu0 %vm526_vm0, %v421_v1  ;;  %v6280_v34 = vmov 1983009808   ;;  %v933_v41 = vcombine.high %v6281_v40, %v6281_v40  ;;  %vm9975_vm2 = vcmask 1041409   ;;  %vm9974_vm3 = vcmask 1042434   ;;  %s6282_s28 = smov 8   ;;  %s6283_s29 = smov 24  }
  0x11   : > { %5725 = vmatpush3.msk.msra.mxu0 %vm526_vm0, %v421_v1  ;;  %s10425_s20 = smov (!%p379_p3, %s5501_s20), 1  ;;  %v935_v35 = vunpack.c.l.s4 %v6280_v34  ;;  %v938_v38 = vshrl.u32 %v937_v36, 7  ;;  %vm9973_vm4 = vcmask 1043459   ;;  %vm1852_vm5 = vcmask 1044484   ;;  %s6284_s30 = smov 16  }
  0x12   : > { %s5557_s10 = sshll.u32 %s10425_s20, 8  ;;  %vm1854_vm6 = vcmask 1045509   ;;  %vm1856_vm7 = vcmask 1046534   ;;  %vm787_vm8 = vcmask 1040384   ;;  %vm1858_vm9 = vcmask 1047559   ;;  %s6285_s12 = smov 32  }
  0x13   : > { %s6377_s25 = scalar_lea.vmem %s9837_s0, %s5557_s10  ;;  %v936_v37 = vunpack.c.0.s8 %v935_v35  ;;  %v6447_v45 = vsub.s32 1, %v938_v38  ;;  %v6449_v46 = vsub.s32 0, %v938_v38  ;;  %s6286_s13 = smov 72   ;;  %vm3641_vm10 = vcmask 64512  }
  0x14   : > { %v389_v2 = vld [vmem:[%s6377_s25] sm:$0xff]  ;;  %v390_v3 = vld [vmem:[%s6377_s25 + $0x8] sm:$0xff]  ;;  %v391_v4 = vld [vmem:[%s6377_s25 + $0x10] sm:$0xff]  ;;  %s6287_s14 = smov 88   ;;  %s6288_s15 = smov 40   ;;  %vm3650_vm11 = vcmask 130048  }
  0x15   : > { %5726 = vmatprep.mubr.msk.f32.mxu0 %vm429_vm1, %v389_v2  ;;  %v392_v5 = vld [vmem:[%s6377_s25 + $0x18] sm:$0xff]  ;;  %v393_v6 = vld [vmem:[%s6377_s25 + $0x20] sm:$0xff]  ;;  %v394_v7 = vld [vmem:[%s6377_s25 + $0x28] sm:$0xff]  ;;  %v6443_v39 = vsub.s32 %v936_v37, %v938_v38  ;;  %s6289_s18 = smov 48   ;;  %s6290_s21 = smov 56   ;;  %vm3659_vm12 = vcmask 195584  }
  0x16   : > { %5727 = vmatmul.mubr.msk.f32.vlgmr.msra.gmra.mrb[0].mxu0 %vm429_vm1, %v390_v3  ;;  %v395_v8 = vld [vmem:[%s6377_s25 + $0x30] sm:$0xff]  ;;  %v396_v9 = vld [vmem:[%s6377_s25 + $0x38] sm:$0xff]  ;;  %v397_v10 = vld [vmem:[%s6377_s25 + $0x40] sm:$0xff]  ;;  %s6291_s22 = smov 64   ;;  %s6292_s10 = smov 80   ;;  %vm3668_vm13 = vcmask 261120  }
  0x17   : > { %5729 = vmatprep.mubr.msk.f32.mxu0 %vm429_vm1, %v391_v4  ;;  %v398_v11 = vld [vmem:[%s6377_s25 + $0x48] sm:$0xff]  ;;  %v399_v12 = vld [vmem:[%s6377_s25 + $0x50] sm:$0xff]  ;;  %v400_v13 = vld [vmem:[%s6377_s25 + $0x58] sm:$0xff]  ;;  %9976 = vst [vmem:[#allocation3_spill] sm:$0xff] %v6443_v39  ;;  %v940_v42 = vrot.slane %v6281_v40, %v6443_v39  ;;  %v947_v43 = vrot.slane %v933_v41, %v6443_v39  ;;  %s6293_s23 = smov 96   ;;  %s6294_s24 = smov 104  }
  0x18   : > { %v401_v14 = vld [vmem:[%s6377_s25 + $0x60] sm:$0xff]  ;;  %v402_v15 = vld [vmem:[%s6377_s25 + $0x68] sm:$0xff]  ;;  %v403_v16 = vld [vmem:[%s6377_s25 + $0x70] sm:$0xff]  ;;  %s6296_s26 = smov 120   ;;  %vm3677_vm14 = vcmask 326656   ;;  %vm3686_vm15 = vcmask 392192  }
  0x19   : > { %v404_v17 = vld [vmem:[%s6377_s25 + $0x78] sm:$0xff]  ;;  %v405_v18 = vld [vmem:[%s6377_s25 + $0x80] sm:$0xff]  ;;  %v406_v19 = vld [vmem:[%s6377_s25 + $0x88] sm:$0xff]  ;;  %v948_v44 = vcombine.high %v940_v42, %v940_v42  ;;  %v949_v47 = vcombine.high %v947_v43, %v947_v43  ;;  %v1920_v48 = vrot.slane %v940_v42, %v6447_v45  ;;  %v1928_v51 = vrot.slane %v947_v43, %v6447_v45 }
  0x1a   : > { %5730 = vmatmul.mubr.msk.f32.gmra.mrb[2].mxu0 %vm429_vm1, %v392_v5  ;;  %v407_v20 = vld [vmem:[%s6377_s25 + $0x90] sm:$0xff]  ;;  %v408_v21 = vld [vmem:[%s6377_s25 + $0x98] sm:$0xff]  ;;  %v409_v22 = vld [vmem:[%s6377_s25 + $0xa0] sm:$0xff]  ;;  %v6458_v52 = vrot.slane %v947_v43, %v6449_v46  ;;  %v6478_v59 = vrot.slane %v940_v42, %v6449_v46  ;;  %vm3695_vm0 = vcmask 457728  }
  0x1b   : > { %5732 = vmatprep.mubr.msk.f32.mxu0 %vm429_vm1, %v393_v6  ;;  %v410_v23 = vld [vmem:[%s6377_s25 + $0xa8] sm:$0xff]  ;;  %v411_v24 = vld [vmem:[%s6377_s25 + $0xb0] sm:$0xff]  ;;  %v412_v25 = vld [vmem:[%s6377_s25 + $0xb8] sm:$0xff]  ;;  %v1924_v49 = vrot.slane %v948_v44, %v6447_v45  ;;  %v6454_v50 = vrot.slane %v948_v44, %v6449_v46  ;;  %v6461_v53 = vrot.slane %v949_v47, %v6449_v46  ;;  %v1932_v54 = vrot.slane %v949_v47, %v6447_v45 }
  0x1c   : > { %v413_v26 = vld [vmem:[%s6377_s25 + $0xc0] sm:$0xff]  ;;  %v414_v27 = vld [vmem:[%s6377_s25 + $0xc8] sm:$0xff]  ;;  %v415_v28 = vld [vmem:[%s6377_s25 + $0xd0] sm:$0xff]  ;;  %9978 = vst [vmem:[#allocation5_spill] sm:$0xff] %v6458_v52 }
  0x1d   : > { %v416_v29 = vld [vmem:[%s6377_s25 + $0xd8] sm:$0xff]  ;;  %v417_v30 = vld [vmem:[%s6377_s25 + $0xe0] sm:$0xff]  ;;  %v418_v31 = vld [vmem:[%s6377_s25 + $0xe8] sm:$0xff]  ;;  %9977 = vst [vmem:[#allocation4_spill] sm:$0xff] %v6454_v50  ;;  %v6465_v55 = vsel %vm9975_vm2, %v1924_v49, %v1920_v48  ;;  %v6468_v56 = vsel %vm9975_vm2, %v1928_v51, %v1924_v49  ;;  %v6473_v57 = vsel %vm9975_vm2, %v6458_v52, %v6454_v50 }
  0x1e   : > { %5733 = vmatmul.mubr.msk.f32.gmra.mrb[4].mxu0 %vm429_vm1, %v394_v7  ;;  %v419_v32 = vld [vmem:[%s6377_s25 + $0xf0] sm:$0xff]  ;;  %v420_v33 = vld [vmem:[%s6377_s25 + $0xf8] sm:$0xff]  ;;  %9979 = vst [vmem:[#allocation6_spill] sm:$0xff] %v6461_v53  ;;  %9980 = vst [vmem:[#allocation7_spill] sm:$0xff] %v6465_v55  ;;  %v2158_v58 = vsel %vm9974_vm3, %v1928_v51, %v6465_v55  ;;  %v2374_v60 = vsel %vm9974_vm3, %v1932_v54, %v6468_v56  ;;  %v2266_v61 = vsel %vm9974_vm3, %v6461_v53, %v6473_v57  ;;  %s6295_s25 = smov 112  }
  0x1f   : > { %5735 = vmatprep.mubr.msk.f32.mxu0 %vm429_vm1, %v395_v8  ;;  %9981 = vst [vmem:[#allocation8_spill] sm:$0xff] %v6468_v56  ;;  %9982 = vst [vmem:[#allocation9_spill] sm:$0xff] %v6473_v57  ;;  %v6486_v62 = vsel %vm9973_vm4, %v1932_v54, %v2158_v58  ;;  %v6489_v63 = vsel %vm9973_vm4, %v1920_v48, %v2374_v60  ;;  %v6493_v0 = vsel %vm9973_vm4, %v6478_v59, %v2266_v61  ;;  %v6505_v4 = vld [vmem:[%s9839_s2] ss:$0 sm:$0xff] }
  0x20   : > { %9983 = vst [vmem:[#allocation10_spill] sm:$0xff] %v6478_v59  ;;  %9984 = vst [vmem:[#allocation11_spill] sm:$0xff] %v6486_v62  ;;  %v2160_v1 = vsel %vm1852_vm5, %v1920_v48, %v6486_v62  ;;  %v2376_v2 = vsel %vm1852_vm5, %v1924_v49, %v6489_v63  ;;  %v2268_v3 = vsel %vm1852_vm5, %v6454_v50, %v6493_v0 }
  0x21   : > { %9985 = vst [vmem:[#allocation12_spill] sm:$0xff] %v6489_v63  ;;  %9986 = vst [vmem:[#allocation13_spill] sm:$0xff] %v6493_v0  ;;  %v2161_v5 = vsel %vm1854_vm6, %v1924_v49, %v2160_v1  ;;  %v2377_v6 = vsel %vm1854_vm6, %v1928_v51, %v2376_v2  ;;  %v2269_v7 = vsel %vm1854_vm6, %v6458_v52, %v2268_v3 }
  0x22   : > { %5736 = vmatmul.mubr.msk.f32.gmra.mrb[6].mxu0 %vm429_vm1, %v396_v9 }
  0x23   : > { %5738 = vmatprep.mubr.msk.f32.mxu0 %vm429_vm1, %v397_v10 }
  0x26   : > { %5739 = vmatmul.mubr.msk.f32.gmra.mrb[8].mxu0 %vm429_vm1, %v398_v11  ;;  %v2162_v11 = vsel %vm1856_vm7, %v1928_v51, %v2161_v5 }
  0x27   : > { %5741 = vmatprep.mubr.msk.f32.mxu0 %vm429_vm1, %v399_v12 }
  0x2a   : > { %5742 = vmatmul.mubr.msk.f32.gmra.mrb[10].mxu0 %vm429_vm1, %v400_v13  ;;  %v2378_v13 = vsel %vm1856_vm7, %v1932_v54, %v2377_v6 }
  0x2b   : > { %5744 = vmatprep.mubr.msk.f32.mxu0 %vm429_vm1, %v401_v14  ;;  %v2270_v14 = vsel %vm1856_vm7, %v6461_v53, %v2269_v7 }
  0x2e   : > { %5745 = vmatmul.mubr.msk.f32.gmra.mrb[12].mxu0 %vm429_vm1, %v402_v15 }
  0x2f   : > { %5747 = vmatprep.mubr.msk.f32.mxu0 %vm429_vm1, %v403_v16 }
  0x32   : > { %5748 = vmatmul.mubr.msk.f32.gmra.mrb[14].mxu0 %vm429_vm1, %v404_v17 }
  0x33   : > { %5750 = vmatprep.mubr.msk.f32.mxu0 %vm429_vm1, %v405_v18  ;;  %v6518_v18 = vsel %vm1858_vm9, %v1932_v54, %v2162_v11 }
  0x34   : > { %9987 = vst [vmem:[#allocation14_spill] sm:$0xff] %v6518_v18 }
  0x36   : > { %5751 = vmatmul.mubr.msk.f32.gmra.mrb[16].mxu0 %vm429_vm1, %v406_v19 }
  0x37   : > { %5753 = vmatprep.mubr.msk.f32.mxu0 %vm429_vm1, %v407_v20 }
  0x3a   : > { %5754 = vmatmul.mubr.msk.f32.gmra.mrb[18].mxu0 %vm429_vm1, %v408_v21 }
  0x3b   : > { %5756 = vmatprep.mubr.msk.f32.mxu0 %vm429_vm1, %v409_v22  ;;  %v6523_v22 = vsel %vm1858_vm9, %v1920_v48, %v2378_v13 }
  0x3c   : > { %9988 = vst [vmem:[#allocation15_spill] sm:$0xff] %v6523_v22 }
  0x3e   : > { %5757 = vmatmul.mubr.msk.f32.gmra.mrb[20].mxu0 %vm429_vm1, %v410_v23  ;;  %v6527_v23 = vsel %vm1858_vm9, %v6478_v59, %v2270_v14 }
  0x3f   : > { %5759 = vmatprep.mubr.msk.f32.mxu0 %vm429_vm1, %v411_v24  ;;  %9989 = vst [vmem:[#allocation16_spill] sm:$0xff] %v6527_v23 }
  0x42   : > { %5760 = vmatmul.mubr.msk.f32.gmra.mrb[22].mxu0 %vm429_vm1, %v412_v25 }
  0x43   : > { %5762 = vmatprep.mubr.msk.f32.mxu0 %vm429_vm1, %v413_v26 }
  0x46   : > { %5763 = vmatmul.mubr.msk.f32.gmra.mrb[24].mxu0 %vm429_vm1, %v414_v27 }
  0x47   : > { %5765 = vmatprep.mubr.msk.f32.mxu0 %vm429_vm1, %v415_v28 }
  0x4a   : > { %5766 = vmatmul.mubr.msk.f32.gmra.mrb[26].mxu0 %vm429_vm1, %v416_v29 }
  0x4b   : > { %5768 = vmatprep.mubr.msk.f32.mxu0 %vm429_vm1, %v417_v30 }
  0x4e   : > { %5769 = vmatmul.mubr.msk.f32.gmra.mrb[28].mxu0 %vm429_vm1, %v418_v31 }
  0x4f   : > { %5771 = vmatprep.mubr.msk.f32.mxu0 %vm429_vm1, %v419_v32 }
  0x52   : > { %5772 = vmatmul.mubr.msk.f32.gmra.mrb[30].mxu0 %vm429_vm1, %v420_v33  ;;  %vm3704_vm1 = vcmask 523264  }
  0xe9   : > { %v5728_v8 = vpop.f32.mrb[0].mxu0 }
  0xea   : > { %v602_v9 = vadd.f32 %v5728_v8, %v6505_v4  ;;  %v596_v10 = vpop.f32.mrb[1].mxu0 }
  0xeb   : > { %v597_v12 = vadd.f32 %v6505_v4, %v596_v10 }
  0xec   : > { %v789_v15 = vrot.slane %v602_v9, 7 }
  0xed   : > { %v788_v16 = vrot.slane %v597_v12, 7  ;;  %v5731_v17 = vpop.f32.mrb[2].mxu0 }
  0xee   : > { %v884_v19 = vsel %vm787_vm8, %v789_v15, 0.0  ;;  %v612_v20 = vadd.f32 %v5731_v17, %v6505_v4  ;;  %v606_v21 = vpop.f32.mrb[3].mxu0 }
  0xef   : > { %v6530_v24 = vrot.slane %v884_v19, %v6443_v39  ;;  %v790_v25 = vsel %vm787_vm8, %v788_v16, %v789_v15  ;;  %v868_v26 = vsel %vm787_vm8, 0.0, %v788_v16  ;;  %v607_v27 = vadd.f32 %v6505_v4, %v606_v21 }
  0xf0   : > { %v950_v28 = vcombine.high %v868_v26, %v868_v26  ;;  %v957_v29 = vrot.slane %v868_v26, %v6443_v39  ;;  %v967_v30 = vcombine.high %v790_v25, %v790_v25  ;;  %v974_v31 = vrot.slane %v790_v25, %v6443_v39 }
  0xf1   : > { %9990 = vst [vmem:[#allocation17_spill] sm:$0xff] %v6530_v24  ;;  %v792_v34 = vrot.slane %v612_v20, 7  ;;  %v791_v35 = vrot.slane %v607_v27, 7  ;;  %v5734_v36 = vpop.f32.mrb[4].mxu0 }
  0xf2   : > { %v964_v37 = vrot.slane %v950_v28, %v6443_v39  ;;  %v965_v38 = vcombine.high %v957_v29, %v957_v29  ;;  %v6543_v40 = vrot.slane %v967_v30, %v6443_v39  ;;  %v982_v41 = vcombine.high %v974_v31, %v974_v31  ;;  %v616_v42 = vpop.f32.mrb[5].mxu0 }
  0xf3   : > { %v2456_v43 = vrot.slane %v957_v29, %v6449_v46  ;;  %v6547_v44 = vrot.slane %v974_v31, %v6449_v46  ;;  %v2792_v47 = vrot.slane %v957_v29, %v6447_v45  ;;  %v6551_v48 = vrot.slane %v974_v31, %v6447_v45 }
  0xf4   : > { %v966_v49 = vcombine.high %v964_v37, %v964_v37  ;;  %v2460_v51 = vrot.slane %v965_v38, %v6449_v46  ;;  %v2464_v54 = vrot.slane %v964_v37, %v6449_v46  ;;  %v6556_v58 = vrot.slane %v982_v41, %v6449_v46 }
  0xf5   : > { %9991 = vst [vmem:[#allocation18_spill] sm:$0xff] %v6551_v48  ;;  %v2796_v60 = vrot.slane %v965_v38, %v6447_v45  ;;  %v2800_v61 = vrot.slane %v964_v37, %v6447_v45  ;;  %v6561_v1 = vrot.slane %v982_v41, %v6447_v45  ;;  %v885_v2 = vsel %vm787_vm8, %v792_v34, 0.0  ;;  %v5737_v3 = vpop.f32.mrb[6].mxu0 }
  0xf6   : > { %v6565_v5 = vrot.slane %v966_v49, %v6449_v46  ;;  %v2709_v6 = vsel %vm9975_vm2, %v2460_v51, %v2456_v43  ;;  %v6569_v7 = vrot.slane %v966_v49, %v6447_v45  ;;  %v6572_v8 = vsel %vm9975_vm2, %v2464_v54, %v2460_v51  ;;  %v626_v9 = vpop.f32.mrb[7].mxu0 }
  0xf7   : > { %9992 = vst [vmem:[#allocation19_spill] sm:$0xff] %v6561_v1  ;;  %9994 = vst [vmem:[#allocation21_spill] sm:$0xff] %v6572_v8  ;;  %v6575_v10 = vsel %vm9974_vm3, %v2464_v54, %v2709_v6  ;;  %v3045_v11 = vsel %vm9975_vm2, %v2796_v60, %v2792_v47  ;;  %v6579_v12 = vsel %vm9975_vm2, %v2800_v61, %v2796_v60  ;;  %v869_v16 = vsel %vm787_vm8, 0.0, %v791_v35 }
  0xf8   : > { %9993 = vst [vmem:[#allocation20_spill] sm:$0xff] %v6569_v7  ;;  %9995 = vst [vmem:[#allocation22_spill] sm:$0xff] %v6579_v12  ;;  %v6582_v13 = vrot.slane %v885_v2, %v6443_v39  ;;  %v6585_v14 = vsel %vm9974_vm3, %v2800_v61, %v3045_v11  ;;  %v793_v15 = vsel %vm787_vm8, %v791_v35, %v792_v34 }
  0xf9   : > { %9996 = vst [vmem:[#allocation23_spill] sm:$0xff] %v6585_v14  ;;  %v622_v17 = vadd.f32 %v5734_v36, %v6505_v4  ;;  %v991_v21 = vcombine.high %v869_v16, %v869_v16  ;;  %v998_v25 = vrot.slane %v869_v16, %v6443_v39  ;;  %v5740_v26 = vpop.f32.mrb[8].mxu0  ;;  %v1008_v27 = vcombine.high %v793_v15, %v793_v15 }
  0xfa   : > { %v1015_v28 = vrot.slane %v793_v15, %v6443_v39  ;;  %v617_v30 = vadd.f32 %v6505_v4, %v616_v42  ;;  %v636_v31 = vpop.f32.mrb[9].mxu0  ;;  %v627_v33 = vadd.f32 %v6505_v4, %v626_v9 }
  0xfb   : > { %v795_v29 = vrot.slane %v622_v17, 7  ;;  %v1005_v34 = vrot.slane %v991_v21, %v6443_v39  ;;  %v1006_v35 = vcombine.high %v998_v25, %v998_v25  ;;  %v1625_v36 = vrot.slane %v998_v25, %v6449_v46 }
  0xfc   : > { %v1936_v37 = vrot.slane %v998_v25, %v6447_v45  ;;  %v6601_v38 = vrot.slane %v1008_v27, %v6443_v39  ;;  %v6603_v41 = vcombine.high %v1015_v28, %v1015_v28  ;;  %v6606_v43 = vrot.slane %v1015_v28, %v6449_v46 }
  0xfd   : > { %v6609_v47 = vrot.slane %v1015_v28, %v6447_v45  ;;  %v1007_v42 = vcombine.high %v1005_v34, %v1005_v34  ;;  %v1629_v49 = vrot.slane %v1006_v35, %v6449_v46  ;;  %v1633_v51 = vrot.slane %v1005_v34, %v6449_v46  ;;  %v5743_v60 = vpop.f32.mrb[10].mxu0 }
  0xfe   : > { %v1940_v54 = vrot.slane %v1006_v35, %v6447_v45  ;;  %v6616_v61 = vrot.slane %v6603_v41, %v6449_v46  ;;  %v6620_v2 = vrot.slane %v6601_v38, %v6449_v46  ;;  %v6623_v6 = vrot.slane %v1005_v34, %v6447_v45  ;;  %v6626_v15 = vpop.f32.mrb[11].mxu0 }
  0xff   : > { %v886_v11 = vsel %vm787_vm8, %v795_v29, 0.0  ;;  %v6629_v16 = vrot.slane %v1007_v42, %v6449_v46  ;;  %v1860_v17 = vsel %vm9975_vm2, %v1629_v49, %v1625_v36  ;;  %v6633_v21 = vrot.slane %v1007_v42, %v6447_v45 }
 0x100   : > { %v6636_v25 = vsel %vm9975_vm2, %v1940_v54, %v1936_v37  ;;  %v6639_v27 = vsel %vm9974_vm3, %v1633_v51, %v1860_v17  ;;  %v6642_v28 = vsel %vm9975_vm2, %v1633_v51, %v1629_v49  ;;  %v6646_v34 = vsel %vm9975_vm2, %v6623_v6, %v1940_v54 }
 0x101   : > { %9997 = vst [vmem:[#allocation24_spill] sm:$0xff] %v6639_v27  ;;  %v6649_v35 = vrot.slane %v886_v11, %v6443_v39  ;;  %v794_v36 = vrot.slane %v617_v30, 7  ;;  %v632_v42 = vadd.f32 %v5737_v3, %v6505_v4  ;;  %v6654_v37 = vadd.f32 %v5740_v26, %v6505_v4  ;;  %v6656_v17 = vpop.f32.mrb[12].mxu0 }
 0x102   : > { %v6663_v54 = vadd.f32 %v6505_v4, %v636_v31  ;;  %v6666_v30 = vadd.f32 %v5743_v60, %v6505_v4  ;;  %v6668_v3 = vpop.f32.mrb[13].mxu0  ;;  %v797_v32 = vrot.slane %v627_v33, 7 }
 0x103   : > { %9998 = vst [vmem:[#allocation25_spill] sm:$0xff] %v6649_v35  ;;  %v796_v9 = vsel %vm787_vm8, %v794_v36, %v795_v29  ;;  %v870_v26 = vsel %vm787_vm8, 0.0, %v794_v36  ;;  %v798_v11 = vrot.slane %v632_v42, 7 }
 0x104   : > { %v1032_v19 = vcombine.high %v870_v26, %v870_v26  ;;  %v1039_v49 = vrot.slane %v870_v26, %v6443_v39  ;;  %v1049_v20 = vcombine.high %v796_v9, %v796_v9  ;;  %v1056_v51 = vrot.slane %v796_v9, %v6443_v39 }
 0x105   : > { %v887_v31 = vsel %vm787_vm8, %v798_v11, 0.0  ;;  %v799_v56 = vsel %vm787_vm8, %v797_v32, %v798_v11  ;;  %v871_v60 = vsel %vm787_vm8, 0.0, %v797_v32  ;;  %v6678_v55 = vpop.f32.mrb[14].mxu0 }
 0x106   : > { %v1046_v29 = vrot.slane %v1032_v19, %v6443_v39  ;;  %v1047_v36 = vcombine.high %v1039_v49, %v1039_v49  ;;  %v6682_v33 = vrot.slane %v1049_v20, %v6443_v39  ;;  %v1064_v42 = vcombine.high %v1056_v51, %v1056_v51  ;;  %v6684_v26 = vpop.f32.mrb[15].mxu0 }
 0x107   : > { %v2488_v9 = vrot.slane %v1039_v49, %v6449_v46  ;;  %v6688_v63 = vrot.slane %v1056_v51, %v6449_v46  ;;  %v2824_v32 = vrot.slane %v1039_v49, %v6447_v45  ;;  %v6692_v11 = vrot.slane %v1056_v51, %v6447_v45 }
 0x108   : > { %v1048_v57 = vcombine.high %v1046_v29, %v1046_v29  ;;  %v2492_v19 = vrot.slane %v1047_v36, %v6449_v46  ;;  %v2496_v0 = vrot.slane %v1046_v29, %v6449_v46  ;;  %v6697_v20 = vrot.slane %v1064_v42, %v6449_v46 }
 0x109   : > { %9999 = vst [vmem:[#allocation26_spill] sm:$0xff] %v6692_v11  ;;  %v2828_v62 = vrot.slane %v1047_v36, %v6447_v45  ;;  %v2832_v53 = vrot.slane %v1046_v29, %v6447_v45  ;;  %v6702_v52 = vrot.slane %v1064_v42, %v6447_v45  ;;  %v6705_v49 = vrot.slane %v887_v31, %v6443_v39  ;;  %v6707_v51 = vpop.f32.mrb[16].mxu0 }
 0x10a   : > { %v6710_v50 = vrot.slane %v1048_v57, %v6449_v46  ;;  %v2716_v59 = vsel %vm9975_vm2, %v2492_v19, %v2488_v9  ;;  %v6714_v27 = vrot.slane %v1048_v57, %v6447_v45  ;;  %v6717_v36 = vsel %vm9975_vm2, %v2496_v0, %v2492_v19  ;;  %v6719_v29 = vpop.f32.mrb[17].mxu0 }
 0x10b   : > { %10000 = vst [vmem:[#allocation27_spill] sm:$0xff] %v6702_v52  ;;  %10002 = vst [vmem:[#allocation29_spill] sm:$0xff] %v6717_v36  ;;  %v6722_v42 = vsel %vm9974_vm3, %v2496_v0, %v2716_v59  ;;  %v3052_v31 = vsel %vm9975_vm2, %v2828_v62, %v2824_v32  ;;  %v6726_v35 = vsel %vm9975_vm2, %v2832_v53, %v2828_v62  ;;  %v10005_v0 = vrot.slane %v6654_v37, 7 }
 0x10c   : > { %10001 = vst [vmem:[#allocation28_spill] sm:$0xff] %v6714_v27  ;;  %10003 = vst [vmem:[#allocation30_spill] sm:$0xff] %v6726_v35  ;;  %v6731_v9 = vsel %vm9974_vm3, %v2832_v53, %v3052_v31  ;;  %v1073_v19 = vcombine.high %v871_v60, %v871_v60  ;;  %v1080_v24 = vrot.slane %v871_v60, %v6443_v39  ;;  %v800_v32 = vrot.slane %v6663_v54, 7 }
 0x10d   : > { %10004 = vst [vmem:[#allocation31_spill] sm:$0xff] %v6731_v9  ;;  %v1090_v36 = vcombine.high %v799_v56, %v799_v56  ;;  %v1097_v59 = vrot.slane %v799_v56, %v6443_v39  ;;  %v888_v62 = vsel %vm787_vm8, %v10005_v0, 0.0  ;;  %v6741_v35 = vpop.f32.mrb[18].mxu0 }
 0x10e   : > { %10006 = vst [vmem:[#allocation32_spill] sm:$0xff] %v6741_v35  ;;  %v1087_v53 = vrot.slane %v1073_v19, %v6443_v39  ;;  %v1088_v31 = vcombine.high %v1080_v24, %v1080_v24  ;;  %v1657_v12 = vrot.slane %v1080_v24, %v6449_v46  ;;  %v1968_v57 = vrot.slane %v1080_v24, %v6447_v45  ;;  %v6746_v8 = vpop.f32.mrb[19].mxu0 }
 0x10f   : > { %10007 = vst [vmem:[#allocation33_spill] sm:$0xff] %v6746_v8  ;;  %v6749_v60 = vrot.slane %v1090_v36, %v6443_v39  ;;  %v1105_v56 = vcombine.high %v1097_v59, %v1097_v59  ;;  %v6752_v52 = vrot.slane %v1097_v59, %v6449_v46  ;;  %v6755_v54 = vrot.slane %v1097_v59, %v6447_v45 }
 0x110   : > { %v1089_v0 = vcombine.high %v1087_v53, %v1087_v53  ;;  %v1661_v19 = vrot.slane %v1088_v31, %v6449_v46  ;;  %v1665_v35 = vrot.slane %v1087_v53, %v6449_v46  ;;  %v1972_v11 = vrot.slane %v1088_v31, %v6447_v45 }
 0x111   : > { %10008 = vst [vmem:[#allocation34_spill] sm:$0xff] %v6752_v52  ;;  %v6761_v24 = vrot.slane %v1105_v56, %v6449_v46  ;;  %v6765_v36 = vrot.slane %v6749_v60, %v6449_v46  ;;  %v1976_v8 = vrot.slane %v1087_v53, %v6447_v45  ;;  %v6769_v52 = vrot.slane %v1105_v56, %v6447_v45  ;;  %v6771_v59 = vpop.f32.mrb[20].mxu0 }
 0x112   : > { %10011 = vst [vmem:[#allocation37_spill] sm:$0xff] %v6771_v59  ;;  %v6774_v27 = vrot.slane %v1089_v0, %v6449_v46  ;;  %v1867_v9 = vsel %vm9975_vm2, %v1661_v19, %v1657_v12  ;;  %v6778_v31 = vrot.slane %v1089_v0, %v6447_v45  ;;  %v6781_v1 = vpop.f32.mrb[21].mxu0  ;;  %v6790_v56 = vsel %vm9975_vm2, %v1665_v35, %v1661_v19 }
 0x113   : > { %10009 = vst [vmem:[#allocation35_spill] sm:$0xff] %v6761_v24  ;;  %10010 = vst [vmem:[#allocation36_spill] sm:$0xff] %v6765_v36  ;;  %v2171_v24 = vsel %vm9975_vm2, %v1972_v11, %v1968_v57  ;;  %v6784_v36 = vsel %vm9974_vm3, %v1665_v35, %v1867_v9  ;;  %v6796_v12 = vrot.slane %v888_v62, %v6443_v39  ;;  %v10017_v0 = vrot.slane %v6654_v37, 7 }
 0x114   : > { %10012 = vst [vmem:[#allocation38_spill] sm:$0xff] %v6774_v27  ;;  %10013 = vst [vmem:[#allocation39_spill] sm:$0xff] %v6781_v1  ;;  %v6787_v53 = vsel %vm9974_vm3, %v1976_v8, %v2171_v24  ;;  %v6793_v27 = vsel %vm9975_vm2, %v1976_v8, %v1972_v11  ;;  %v872_v1 = vsel %vm787_vm8, 0.0, %v800_v32  ;;  %v804_v9 = vrot.slane %v6666_v30, 7 }
 0x115   : > { %10014 = vst [vmem:[#allocation40_spill] sm:$0xff] %v6784_v36  ;;  %10015 = vst [vmem:[#allocation41_spill] sm:$0xff] %v6790_v56  ;;  %v802_v57 = vsel %vm787_vm8, %v800_v32, %v10017_v0  ;;  %v1114_v36 = vcombine.high %v872_v1, %v872_v1  ;;  %v1121_v24 = vrot.slane %v872_v1, %v6443_v39  ;;  %v6805_v19 = vpop.f32.mrb[22].mxu0 }
 0x116   : > { %10016 = vst [vmem:[#allocation42_spill] sm:$0xff] %v6796_v12  ;;  %v1131_v59 = vcombine.high %v802_v57, %v802_v57  ;;  %v1138_v35 = vrot.slane %v802_v57, %v6443_v39  ;;  %10018 = vst [vmem:[#allocation43_spill] sm:$0xff] %v6805_v19  ;;  %v889_v11 = vsel %vm787_vm8, %v804_v9, 0.0  ;;  %v647_v62 = vadd.f32 %v6505_v4, %v6626_v15  ;;  %v6814_v30 = vpop.f32.mrb[23].mxu0 }
 0x117   : > { %10019 = vst [vmem:[#allocation44_spill] sm:$0xff] %v6814_v30  ;;  %v1128_v1 = vrot.slane %v1114_v36, %v6443_v39  ;;  %v1129_v32 = vcombine.high %v1121_v24, %v1121_v24  ;;  %v2520_v19 = vrot.slane %v1121_v24, %v6449_v46  ;;  %v2856_v37 = vrot.slane %v1121_v24, %v6447_v45 }
 0x118   : > { %v6818_v0 = vrot.slane %v1131_v59, %v6443_v39  ;;  %v1146_v57 = vcombine.high %v1138_v35, %v1138_v35  ;;  %v6822_v8 = vrot.slane %v1138_v35, %v6449_v46  ;;  %v6826_v12 = vrot.slane %v1138_v35, %v6447_v45 }
 0x119   : > { %v1130_v15 = vcombine.high %v1128_v1, %v1128_v1  ;;  %v2524_v30 = vrot.slane %v1129_v32, %v6449_v46  ;;  %v2528_v36 = vrot.slane %v1128_v1, %v6449_v46  ;;  %v6833_v59 = vpop.f32.mrb[24].mxu0  ;;  %v2864_v48 = vrot.slane %v1128_v1, %v6447_v45 }
 0x11a   : > { %10020 = vst [vmem:[#allocation45_spill] sm:$0xff] %v6818_v0  ;;  %10021 = vst [vmem:[#allocation46_spill] sm:$0xff] %v6822_v8  ;;  %v6831_v56 = vrot.slane %v1146_v57, %v6449_v46  ;;  %v2860_v0 = vrot.slane %v1129_v32, %v6447_v45  ;;  %v6838_v8 = vrot.slane %v1146_v57, %v6447_v45  ;;  %v6843_v35 = vpop.f32.mrb[25].mxu0 }
 0x11b   : > { %10022 = vst [vmem:[#allocation47_spill] sm:$0xff] %v6826_v12  ;;  %10024 = vst [vmem:[#allocation49_spill] sm:$0xff] %v6833_v59  ;;  %v6841_v24 = vrot.slane %v889_v11, %v6443_v39  ;;  %v6846_v12 = vrot.slane %v1130_v15, %v6449_v46  ;;  %v2723_v7 = vsel %vm9975_vm2, %v2524_v30, %v2520_v19 }
 0x11c   : > { %10023 = vst [vmem:[#allocation48_spill] sm:$0xff] %v6831_v56  ;;  %10025 = vst [vmem:[#allocation50_spill] sm:$0xff] %v6838_v8  ;;  %v6850_v56 = vrot.slane %v1130_v15, %v6447_v45  ;;  %v6853_v32 = vsel %vm9975_vm2, %v2528_v36, %v2524_v30  ;;  %v6856_v1 = vsel %vm9974_vm3, %v2528_v36, %v2723_v7  ;;  %v803_v15 = vrot.slane %v647_v62, 7 }
 0x11d   : > { %10026 = vst [vmem:[#allocation51_spill] sm:$0xff] %v6841_v24  ;;  %10027 = vst [vmem:[#allocation52_spill] sm:$0xff] %v6843_v35  ;;  %v3059_v57 = vsel %vm9975_vm2, %v2860_v0, %v2856_v37  ;;  %v6860_v11 = vsel %vm9975_vm2, %v2864_v48, %v2860_v0  ;;  %v662_v30 = vadd.f32 %v6656_v17, %v6505_v4  ;;  %v6871_v7 = vpop.f32.mrb[26].mxu0 }
 0x11e   : > { %10028 = vst [vmem:[#allocation53_spill] sm:$0xff] %v6846_v12  ;;  %10029 = vst [vmem:[#allocation54_spill] sm:$0xff] %v6850_v56  ;;  %v6865_v35 = vsel %vm9974_vm3, %v2864_v48, %v3059_v57  ;;  %v657_v37 = vadd.f32 %v6505_v4, %v6668_v3  ;;  %v6877_v0 = vcombine.high %v6601_v38, %v6601_v38  ;;  %v6887_v62 = vpop.f32.mrb[27].mxu0  ;;  %v873_v57 = vsel %vm787_vm8, 0.0, %v803_v15 }
 0x11f   : > { %10030 = vst [vmem:[#allocation55_spill] sm:$0xff] %v6853_v32  ;;  %10031 = vst [vmem:[#allocation56_spill] sm:$0xff] %v6856_v1  ;;  %v6881_v48 = vcombine.high %v6749_v60, %v6749_v60  ;;  %v6885_v36 = vrot.slane %v6603_v41, %v6447_v45  ;;  %v805_v17 = vsel %vm787_vm8, %v803_v15, %v804_v9  ;;  %v807_v19 = vrot.slane %v662_v30, 7 }
 0x120   : > { %10032 = vst [vmem:[#allocation57_spill] sm:$0xff] %v6860_v11  ;;  %10033 = vst [vmem:[#allocation58_spill] sm:$0xff] %v6865_v35  ;;  %v6893_v3 = vrot.slane %v6601_v38, %v6447_v45  ;;  %v1155_v8 = vcombine.high %v873_v57, %v873_v57  ;;  %v1162_v11 = vrot.slane %v873_v57, %v6443_v39  ;;  %v806_v35 = vrot.slane %v657_v37, 7 }
 0x121   : > { %10034 = vst [vmem:[#allocation59_spill] sm:$0xff] %v6871_v7  ;;  %10035 = vst [vmem:[#allocation60_spill] sm:$0xff] %v6887_v62  ;;  %v1172_v7 = vcombine.high %v805_v17, %v805_v17  ;;  %v1179_v56 = vrot.slane %v805_v17, %v6443_v39  ;;  %v890_v41 = vsel %vm787_vm8, %v807_v19, 0.0  ;;  %v6900_v62 = vrot.slane %v6877_v0, %v6447_v45  ;;  %v6910_v32 = vpop.f32.mrb[28].mxu0 }
 0x122   : > { %v6904_v9 = vrot.slane %v6749_v60, %v6447_v45  ;;  %v1169_v38 = vrot.slane %v1155_v8, %v6443_v39  ;;  %v1170_v15 = vcombine.high %v1162_v11, %v1162_v11  ;;  %10036 = vst [vmem:[#allocation61_spill] sm:$0xff] %v6910_v32  ;;  %v1689_v17 = vrot.slane %v1162_v11, %v6449_v46 }
 0x123   : > { %v6908_v30 = vrot.slane %v1172_v7, %v6443_v39  ;;  %v1187_v57 = vcombine.high %v1179_v56, %v1179_v56  ;;  %v6914_v37 = vrot.slane %v1179_v56, %v6449_v46  ;;  %v2000_v59 = vrot.slane %v1162_v11, %v6447_v45 }
 0x124   : > { %v6918_v12 = vrot.slane %v1179_v56, %v6447_v45  ;;  %v1171_v60 = vcombine.high %v1169_v38, %v1169_v38  ;;  %v1693_v8 = vrot.slane %v1170_v15, %v6449_v46  ;;  %v1697_v1 = vrot.slane %v1169_v38, %v6449_v46 }
 0x125   : > { %10037 = vst [vmem:[#allocation62_spill] sm:$0xff] %v6914_v37  ;;  %v6923_v7 = vrot.slane %v1187_v57, %v6449_v46  ;;  %v6927_v32 = vrot.slane %v6908_v30, %v6449_v46  ;;  %v2004_v24 = vrot.slane %v1170_v15, %v6447_v45  ;;  %v2008_v37 = vrot.slane %v1169_v38, %v6447_v45 }
 0x126   : > { %10038 = vst [vmem:[#allocation63_spill] sm:$0xff] %v6918_v12  ;;  %v6932_v11 = vrot.slane %v1187_v57, %v6447_v45  ;;  %v6935_v56 = vrot.slane %v1171_v60, %v6449_v46  ;;  %v1874_v12 = vsel %vm9975_vm2, %v1693_v8, %v1689_v17  ;;  %v6939_v14 = vrot.slane %v1171_v60, %v6447_v45 }
 0x127   : > { %10039 = vst [vmem:[#allocation64_spill] sm:$0xff] %v6923_v7  ;;  %10040 = vst [vmem:[#allocation65_spill] sm:$0xff] %v6927_v32  ;;  %v6942_v7 = vsel %vm9975_vm2, %v1697_v1, %v1693_v8  ;;  %v6945_v32 = vsel %vm9974_vm3, %v1697_v1, %v1874_v12  ;;  %v2178_v15 = vsel %vm9975_vm2, %v2004_v24, %v2000_v59  ;;  %v874_v60 = vsel %vm787_vm8, 0.0, %v806_v35 }
 0x128   : > { %10041 = vst [vmem:[#allocation66_spill] sm:$0xff] %v6935_v56  ;;  %10042 = vst [vmem:[#allocation67_spill] sm:$0xff] %v6942_v7  ;;  %v6949_v38 = vsel %vm9975_vm2, %v2008_v37, %v2004_v24  ;;  %v6952_v57 = vrot.slane %v890_v41, %v6443_v39  ;;  %v6955_v56 = vsel %vm9974_vm3, %v2008_v37, %v2178_v15  ;;  %v6966_v41 = vpop.f32.mrb[29].mxu0 }
 0x129   : > { %10043 = vst [vmem:[#allocation68_spill] sm:$0xff] %v6945_v32  ;;  %10044 = vst [vmem:[#allocation69_spill] sm:$0xff] %v6949_v38  ;;  %v808_v17 = vsel %vm787_vm8, %v806_v35, %v807_v19  ;;  %v1996_v8 = vrot.slane %v6881_v48, %v6447_v45  ;;  %v1196_v24 = vcombine.high %v874_v60, %v874_v60 }
 0x12a   : > { %10045 = vst [vmem:[#allocation70_spill] sm:$0xff] %v6952_v57  ;;  %v1203_v1 = vrot.slane %v874_v60, %v6443_v39  ;;  %10046 = vst [vmem:[#allocation71_spill] sm:$0xff] %v6966_v41  ;;  %v1213_v37 = vcombine.high %v808_v17, %v808_v17  ;;  %v1220_v15 = vrot.slane %v808_v17, %v6443_v39 }
 0x12b   : > { %v2165_v35 = vsel %vm9974_vm3, %v6623_v6, %v6636_v25  ;;  %v2173_v19 = vsel %vm9973_vm4, %v6778_v31, %v6787_v53  ;;  %v1210_v12 = vrot.slane %v1196_v24, %v6443_v39 }
 0x12c   : > { %v1211_v32 = vcombine.high %v1203_v1, %v1203_v1  ;;  %v2552_v59 = vrot.slane %v1203_v1, %v6449_v46  ;;  %v2888_v60 = vrot.slane %v1203_v1, %v6447_v45  ;;  %v6979_v41 = vrot.slane %v1213_v37, %v6443_v39 }
 0x12d   : > { %v1228_v57 = vcombine.high %v1220_v15, %v1220_v15  ;;  %v6982_v17 = vrot.slane %v1220_v15, %v6449_v46  ;;  %v6985_v6 = vrot.slane %v1220_v15, %v6447_v45  ;;  %v1212_v25 = vcombine.high %v1210_v12, %v1210_v12 }
 0x12e   : > { %10047 = vst [vmem:[#allocation72_spill] sm:$0xff] %v6979_v41  ;;  %v2556_v53 = vrot.slane %v1211_v32, %v6449_v46  ;;  %v2560_v24 = vrot.slane %v1210_v12, %v6449_v46  ;;  %v2892_v38 = vrot.slane %v1211_v32, %v6447_v45  ;;  %v2896_v1 = vrot.slane %v1210_v12, %v6447_v45 }
 0x12f   : > { %10048 = vst [vmem:[#allocation73_spill] sm:$0xff] %v6982_v17  ;;  %10049 = vst [vmem:[#allocation74_spill] sm:$0xff] %v6985_v6  ;;  %v6991_v7 = vrot.slane %v1228_v57, %v6449_v46  ;;  %v6995_v37 = vrot.slane %v1228_v57, %v6447_v45  ;;  %v2166_v17 = vsel %vm9973_vm4, %v6633_v21, %v2165_v35 }
 0x130   : > { %v7000_v15 = vrot.slane %v1212_v25, %v6449_v46  ;;  %v2730_v6 = vsel %vm9975_vm2, %v2556_v53, %v2552_v59  ;;  %v7004_v41 = vrot.slane %v1212_v25, %v6447_v45  ;;  %v3066_v32 = vsel %vm9975_vm2, %v2892_v38, %v2888_v60 }
 0x131   : > { %10050 = vst [vmem:[#allocation75_spill] sm:$0xff] %v6991_v7  ;;  %10051 = vst [vmem:[#allocation76_spill] sm:$0xff] %v6995_v37  ;;  %v7008_v7 = vsel %vm9974_vm3, %v2560_v24, %v2730_v6  ;;  %v7011_v12 = vsel %vm9974_vm3, %v2896_v1, %v3066_v32  ;;  %v7014_v57 = vsel %vm9975_vm2, %v2560_v24, %v2556_v53  ;;  %v7030_v32 = vpop.f32.mrb[30].mxu0 }
 0x132   : > { %10052 = vst [vmem:[#allocation77_spill] sm:$0xff] %v7004_v41  ;;  %10053 = vst [vmem:[#allocation78_spill] sm:$0xff] %v7011_v12  ;;  %v7017_v35 = vsel %vm9975_vm2, %v2896_v1, %v2892_v38  ;;  %v2167_v59 = vsel %vm1852_vm5, %v6609_v47, %v2166_v17  ;;  %v2174_v25 = vsel %vm1852_vm5, %v6755_v54, %v2173_v19 }
 0x133   : > { %10054 = vst [vmem:[#allocation79_spill] sm:$0xff] %v7017_v35  ;;  %v7025_v60 = vrot.slane %v6877_v0, %v6449_v46  ;;  %v2381_v6 = vsel %vm9974_vm3, %v6633_v21, %v6646_v34  ;;  %10055 = vst [vmem:[#allocation80_spill] sm:$0xff] %v7030_v32  ;;  %v2168_v38 = vsel %vm1854_vm6, %v6885_v36, %v2167_v59 }
 0x134   : > { %v2175_v53 = vsel %vm1854_vm6, %v6769_v52, %v2174_v25  ;;  %v2382_v17 = vsel %vm9973_vm4, %v6609_v47, %v2381_v6  ;;  %v2388_v0 = vsel %vm9974_vm3, %v6778_v31, %v6793_v27  ;;  %v2169_v19 = vsel %vm1856_vm7, %v6893_v3, %v2168_v38  ;;  %v7068_v6 = vpop.f32.mrb[31].mxu0 }
 0x135   : > { %v2176_v21 = vsel %vm1856_vm7, %v6904_v9, %v2175_v53  ;;  %v2383_v34 = vsel %vm1852_vm5, %v6885_v36, %v2382_v17  ;;  %v2389_v24 = vsel %vm9973_vm4, %v6755_v54, %v2388_v0  ;;  %v7051_v1 = vsel %vm1858_vm9, %v6900_v62, %v2169_v19  ;;  %10056 = vst [vmem:[#allocation81_spill] sm:$0xff] %v7068_v6 }
 0x136   : > { %v7054_v47 = vsel %vm1858_vm9, %v1996_v8, %v2176_v21  ;;  %v2384_v27 = vsel %vm1854_vm6, %v6893_v3, %v2383_v34  ;;  %v2390_v31 = vsel %vm1852_vm5, %v6769_v52, %v2389_v24  ;;  %v5971_v36 = vpack.i.bf16 %v7051_v1, %v6518_v18 }
 0x137   : > { %v2385_v54 = vsel %vm1856_vm7, %v6900_v62, %v2384_v27  ;;  %v2391_v25 = vsel %vm1854_vm6, %v6904_v9, %v2390_v31  ;;  %v10057_v3 = vrot.slane %v6582_v13, %v6447_v45  ;;  %v672_v53 = vadd.f32 %v6678_v55, %v6505_v4 }
 0x138   : > { %v2392_v52 = vsel %vm1856_vm7, %v1996_v8, %v2391_v25  ;;  %v667_v17 = vadd.f32 %v6505_v4, %v6684_v26  ;;  %5972 = vrot.lane.b32.xlu0 %v5971_v36, %s6282_s28  ;;  %v10058_v62 = vrot.slane %v6705_v49, %v6447_v45  ;;  %v2273_v8 = vsel %vm9974_vm3, %v6629_v16, %v6642_v28 }
 0x139   : > { %v7074_v38 = vsel %vm1858_vm9, %v10057_v3, %v2385_v54  ;;  %v7095_v55 = vcombine.high %v6543_v40, %v6543_v40  ;;  %v810_v19 = vrot.slane %v672_v53, 7  ;;  %v2274_v34 = vsel %vm9973_vm4, %v6606_v43, %v2273_v8 }
 0x13a   : > { %v7086_v9 = vsel %vm1858_vm9, %v10058_v62, %v2392_v52  ;;  %v5981_v0 = vpack.i.bf16 %v7074_v38, %v6523_v22  ;;  %v809_v21 = vrot.slane %v667_v17, 7  ;;  %v2275_v24 = vsel %vm1852_vm5, %v6616_v61, %v2274_v34 }
 0x13b   : > { %v7106_v28 = vcombine.high %v6682_v33, %v6682_v33  ;;  %v7110_v27 = vrot.slane %v6543_v40, %v6449_v46  ;;  %v7114_v31 = vrot.slane %v7095_v55, %v6449_v46  ;;  %v891_v36 = vsel %vm787_vm8, %v810_v19, 0.0 }
 0x13c   : > { %5982 = vrot.lane.b32.xlu1 %v5981_v0, %s6283_s29  ;;  %v811_v54 = vsel %vm787_vm8, %v809_v21, %v810_v19  ;;  %v875_v25 = vsel %vm787_vm8, 0.0, %v809_v21  ;;  %v2276_v3 = vsel %vm1854_vm6, %v6620_v2, %v2275_v24  ;;  %v7122_v52 = vrot.slane %v891_v36, %v6443_v39 }
 0x13d   : > { %v1237_v53 = vcombine.high %v875_v25, %v875_v25  ;;  %v1244_v17 = vrot.slane %v875_v25, %v6443_v39  ;;  %v1254_v62 = vcombine.high %v811_v54, %v811_v54  ;;  %v1261_v0 = vrot.slane %v811_v54, %v6443_v39 }
 0x13e   : > { %10059 = vst [vmem:[#allocation82_spill] sm:$0xff] %v7122_v52  ;;  %v2277_v8 = vsel %vm1856_vm7, %v7025_v60, %v2276_v3  ;;  %v7130_v19 = vrot.slane %v6682_v33, %v6449_v46  ;;  %v7134_v21 = vrot.slane %v7106_v28, %v6449_v46 }
 0x13f   : > { %v1251_v36 = vrot.slane %v1237_v53, %v6443_v39  ;;  %v1252_v54 = vcombine.high %v1244_v17, %v1244_v17  ;;  %v7142_v25 = vrot.slane %v1254_v62, %v6443_v39  ;;  %v1269_v3 = vcombine.high %v1261_v0, %v1261_v0 }
 0x140   : > { %v1721_v26 = vrot.slane %v1244_v17, %v6449_v46  ;;  %v7146_v59 = vrot.slane %v1261_v0, %v6449_v46  ;;  %v2032_v35 = vrot.slane %v1244_v17, %v6447_v45  ;;  %v7157_v37 = vrot.slane %v1261_v0, %v6447_v45 }
 0x141   : > { %v1253_v22 = vcombine.high %v1251_v36, %v1251_v36  ;;  %v1725_v18 = vrot.slane %v1252_v54, %v6449_v46  ;;  %v1729_v34 = vrot.slane %v1251_v36, %v6449_v46  ;;  %v7152_v24 = vrot.slane %v1269_v3, %v6449_v46 }
 0x142   : > { %v2036_v53 = vrot.slane %v1252_v54, %v6447_v45  ;;  %v2040_v62 = vrot.slane %v1251_v36, %v6447_v45  ;;  %10060 = vst [vmem:[#allocation83_spill] sm:$0xff] %v7157_v37  ;;  %v7167_v17 = vrot.slane %v1269_v3, %v6447_v45 }
 0x143   : > { %v7160_v52 = vrot.slane %v1253_v22, %v6449_v46  ;;  %v1881_v41 = vsel %vm9975_vm2, %v1725_v18, %v1721_v26  ;;  %v7164_v12 = vrot.slane %v1253_v22, %v6447_v45  ;;  %v7174_v36 = vsel %vm9975_vm2, %v1729_v34, %v1725_v18 }
 0x144   : > { %10062 = vst [vmem:[#allocation85_spill] sm:$0xff] %v7167_v17  ;;  %v7170_v6 = vsel %vm9974_vm3, %v1729_v34, %v1881_v41  ;;  %v2185_v54 = vsel %vm9975_vm2, %v2036_v53, %v2032_v35  ;;  %10063 = vst [vmem:[#allocation86_spill] sm:$0xff] %v7174_v36  ;;  %v7177_v0 = vsel %vm9975_vm2, %v2040_v62, %v2036_v53 }
 0x145   : > { %10061 = vst [vmem:[#allocation84_spill] sm:$0xff] %v7164_v12  ;;  %10064 = vst [vmem:[#allocation87_spill] sm:$0xff] %v7177_v0  ;;  %v7180_v32 = vsel %vm9974_vm3, %v2040_v62, %v2185_v54  ;;  %v10066_v22 = vrot.slane %v6582_v13, %v6449_v46  ;;  %v2711_v41 = vsel %vm9973_vm4, %v6565_v5, %v6575_v10 }
 0x146   : > { %10065 = vst [vmem:[#allocation88_spill] sm:$0xff] %v7180_v32  ;;  %v2718_v18 = vsel %vm9973_vm4, %v6710_v50, %v6722_v42  ;;  %v2712_v34 = vsel %vm1852_vm5, %v6547_v44, %v2711_v41  ;;  %v677_v42 = vadd.f32 %v6505_v4, %v6719_v29  ;;  %v7210_v53 = vrot.slane %v6543_v40, %v6447_v45 }
 0x147   : > { %v7186_v26 = vsel %vm1858_vm9, %v10066_v22, %v2277_v8  ;;  %v2719_v13 = vsel %vm1852_vm5, %v6688_v63, %v2718_v18  ;;  %v682_v8 = vadd.f32 %v6707_v51, %v6505_v4  ;;  %v2713_v3 = vsel %vm1854_vm6, %v6556_v58, %v2712_v34 }
 0x148   : > { %v5976_v35 = vpack.i.bf16 %v7186_v26, %v6527_v23  ;;  %v2720_v10 = vsel %vm1854_vm6, %v6697_v20, %v2719_v13  ;;  %v2714_v62 = vsel %vm1856_vm7, %v7110_v27, %v2713_v3  ;;  %v7219_v22 = vrot.slane %v7095_v55, %v6447_v45  ;;  %v10067_v13 = vld [vmem:[#allocation23_spill] sm:$0xff] }
 0x149   : > { %v2721_v51 = vsel %vm1856_vm7, %v7130_v19, %v2720_v10  ;;  %v813_v54 = vrot.slane %v682_v8, 7  ;;  %v2715_v29 = vsel %vm1858_vm9, %v7114_v31, %v2714_v62  ;;  %v812_v41 = vrot.slane %v677_v42, 7  ;;  %v10068_v8 = vld [vmem:[#allocation20_spill] sm:$0xff]  ;;  %v10070_v62 = vld [vmem:[#allocation18_spill] sm:$0xff] }
 0x14a   : > { %5977 = vrot.lane.b32.xlu0 %v5976_v35, %s6284_s30  ;;  %v7225_v40 = vsel %vm1858_vm9, %v7134_v21, %v2721_v51  ;;  %v7229_v18 = vrot.slane %v6682_v33, %v6447_v45  ;;  %v7235_v55 = vrot.slane %v7106_v28, %v6447_v45  ;;  %v3047_v3 = vsel %vm9973_vm4, %v10068_v8, %v10067_v13  ;;  %v10072_v13 = vld [vmem:[#allocation19_spill] sm:$0xff] }
 0x14b   : > { %v5986_v35 = vpack.i.bf16 %v7225_v40, %v2715_v29  ;;  %v892_v34 = vsel %vm787_vm8, %v813_v54, 0.0  ;;  %v814_v42 = vsel %vm787_vm8, %v812_v41, %v813_v54  ;;  %v876_v33 = vsel %vm787_vm8, 0.0, %v812_v41 }
 0x14c   : > { %v7241_v10 = vrot.slane %v892_v34, %v6443_v39  ;;  %v3048_v51 = vsel %vm1852_vm5, %v10070_v62, %v3047_v3  ;;  %v1278_v29 = vcombine.high %v876_v33, %v876_v33  ;;  %v1285_v28 = vrot.slane %v876_v33, %v6443_v39  ;;  %v10073_v3 = vld [vmem:[#allocation31_spill] sm:$0xff]  ;;  %v10074_v33 = vld [vmem:[#allocation28_spill] sm:$0xff] }
 0x14d   : > { %5987 = vrot.lane.b32.xlu1 %v5986_v35, %s6285_s12  ;;  %v1295_v23 = vcombine.high %v814_v42, %v814_v42  ;;  %v1302_v0 = vrot.slane %v814_v42, %v6443_v39  ;;  %v10071_v41 = vpack.i.bf16 %v7054_v47, %v7051_v1  ;;  %v3049_v35 = vsel %vm1854_vm6, %v10072_v13, %v3048_v51 }
 0x14e   : > { %10069 = vst [vmem:[#allocation23_spill] sm:$0xff] %v7241_v10  ;;  %v3054_v36 = vsel %vm9973_vm4, %v10074_v33, %v10073_v3  ;;  %v1292_v42 = vrot.slane %v1278_v29, %v6443_v39  ;;  %v1293_v17 = vcombine.high %v1285_v28, %v1285_v28  ;;  %v2584_v10 = vrot.slane %v1285_v28, %v6449_v46 }
 0x14f   : > { %6012 = vrot.lane.b32.xlu0 %v10071_v41, %s6286_s13  ;;  %v7265_v34 = vrot.slane %v1295_v23, %v6443_v39  ;;  %v1310_v54 = vcombine.high %v1302_v0, %v1302_v0  ;;  %v7269_v37 = vrot.slane %v1302_v0, %v6449_v46  ;;  %v2920_v1 = vrot.slane %v1285_v28, %v6447_v45 }
 0x150   : > { %v7273_v51 = vrot.slane %v1302_v0, %v6447_v45  ;;  %v1294_v41 = vcombine.high %v1292_v42, %v1292_v42  ;;  %v2588_v3 = vrot.slane %v1293_v17, %v6449_v46  ;;  %v2592_v29 = vrot.slane %v1292_v42, %v6449_v46 }
 0x151   : > { %10075 = vst [vmem:[#allocation20_spill] sm:$0xff] %v7265_v34  ;;  %10076 = vst [vmem:[#allocation18_spill] sm:$0xff] %v7269_v37  ;;  %v7278_v12 = vrot.slane %v1310_v54, %v6449_v46  ;;  %v2924_v23 = vrot.slane %v1293_v17, %v6447_v45  ;;  %v2928_v34 = vrot.slane %v1292_v42, %v6447_v45 }
 0x152   : > { %10077 = vst [vmem:[#allocation19_spill] sm:$0xff] %v7273_v51  ;;  %v7283_v32 = vrot.slane %v1310_v54, %v6447_v45  ;;  %v3050_v28 = vsel %vm1856_vm7, %v7210_v53, %v3049_v35  ;;  %v10080_v0 = vpack.i.bf16 %v7086_v9, %v7074_v38  ;;  %v7292_v51 = vrot.slane %v1294_v41, %v6449_v46 }
 0x153   : > { %10078 = vst [vmem:[#allocation31_spill] sm:$0xff] %v7278_v12  ;;  %v2737_v12 = vsel %vm9975_vm2, %v2588_v3, %v2584_v10  ;;  %v7296_v17 = vrot.slane %v1294_v41, %v6447_v45  ;;  %v7299_v54 = vsel %vm9975_vm2, %v2592_v29, %v2588_v3  ;;  %v3073_v35 = vsel %vm9975_vm2, %v2924_v23, %v2920_v1  ;;  %v10085_v10 = vld [vmem:[#allocation26_spill] sm:$0xff]  ;;  %v10086_v3 = vld [vmem:[#allocation32_spill] sm:$0xff] }
 0x154   : > { %10079 = vst [vmem:[#allocation28_spill] sm:$0xff] %v7283_v32  ;;  %6022 = vrot.lane.b32.xlu0 %v10080_v0, %s6287_s14  ;;  %10082 = vst [vmem:[#allocation90_spill] sm:$0xff] %v7299_v54  ;;  %v7302_v42 = vsel %vm9974_vm3, %v2592_v29, %v2737_v12  ;;  %v7306_v32 = vsel %vm9975_vm2, %v2928_v34, %v2924_v23  ;;  %v3051_v38 = vsel %vm1858_vm9, %v7219_v22, %v3050_v28  ;;  %v10088_v29 = vld [vmem:[#allocation27_spill] sm:$0xff]  ;;  %v10089_v23 = vld [vmem:[#allocation21_spill] sm:$0xff] }
 0x155   : > { %10081 = vst [vmem:[#allocation89_spill] sm:$0xff] %v7296_v17  ;;  %10083 = vst [vmem:[#allocation91_spill] sm:$0xff] %v7306_v32  ;;  %v7311_v0 = vsel %vm9974_vm3, %v2928_v34, %v3073_v35  ;;  %v3055_v41 = vsel %vm1852_vm5, %v10085_v10, %v3054_v36  ;;  %v692_v54 = vadd.f32 %v10086_v3, %v6505_v4  ;;  %v10087_v17 = vld [vmem:[#allocation33_spill] sm:$0xff] }
 0x156   : > { %10084 = vst [vmem:[#allocation92_spill] sm:$0xff] %v7311_v0  ;;  %v687_v12 = vadd.f32 %v6505_v4, %v10087_v17  ;;  %v3056_v1 = vsel %vm1854_vm6, %v10088_v29, %v3055_v41  ;;  %v3158_v32 = vsel %vm9974_vm3, %v6565_v5, %v10089_v23  ;;  %v10090_v28 = vld [vmem:[#allocation29_spill] sm:$0xff]  ;;  %v7329_v36 = vcombine.high %v6908_v30, %v6908_v30 }
 0x157   : > { %v3165_v34 = vsel %vm9974_vm3, %v6710_v50, %v10090_v28  ;;  %v3057_v35 = vsel %vm1856_vm7, %v7229_v18, %v3056_v1  ;;  %v816_v3 = vrot.slane %v692_v54, 7  ;;  %v3159_v17 = vsel %vm9973_vm4, %v6547_v44, %v3158_v32 }
 0x158   : > { %v815_v4 = vrot.slane %v687_v12, 7  ;;  %v7337_v41 = vsel %vm1858_vm9, %v7235_v55, %v3057_v35  ;;  %v3160_v5 = vsel %vm1852_vm5, %v6556_v58, %v3159_v17  ;;  %v3166_v50 = vsel %vm9973_vm4, %v6688_v63, %v3165_v34 }
 0x159   : > { %v7345_v23 = vrot.slane %v6908_v30, %v6447_v45  ;;  %v5991_v54 = vpack.i.bf16 %v7337_v41, %v3051_v38  ;;  %v893_v12 = vsel %vm787_vm8, %v816_v3, 0.0  ;;  %v3161_v30 = vsel %vm1854_vm6, %v7110_v27, %v3160_v5 }
 0x15a   : > { %v817_v44 = vsel %vm787_vm8, %v815_v4, %v816_v3  ;;  %v877_v32 = vsel %vm787_vm8, 0.0, %v815_v4  ;;  %v7352_v1 = vrot.slane %v893_v12, %v6443_v39  ;;  %v3167_v38 = vsel %vm1852_vm5, %v6697_v20, %v3166_v50 }
 0x15b   : > { %v1319_v28 = vcombine.high %v877_v32, %v877_v32  ;;  %v1326_v58 = vrot.slane %v877_v32, %v6443_v39  ;;  %v1336_v35 = vcombine.high %v817_v44, %v817_v44  ;;  %5992 = vrot.lane.b32.xlu1 %v5991_v54, %s6288_s15  ;;  %v1343_v63 = vrot.slane %v817_v44, %v6443_v39 }
 0x15c   : > { %10091 = vst [vmem:[#allocation26_spill] sm:$0xff] %v7352_v1  ;;  %v7363_v34 = vrot.slane %v7329_v36, %v6447_v45 }
 0x15d   : > { %v1333_v17 = vrot.slane %v1319_v28, %v6443_v39  ;;  %v1334_v54 = vcombine.high %v1326_v58, %v1326_v58  ;;  %v7371_v12 = vrot.slane %v1336_v35, %v6443_v39  ;;  %v1351_v27 = vcombine.high %v1343_v63, %v1343_v63 }
 0x15e   : > { %v1753_v5 = vrot.slane %v1326_v58, %v6449_v46  ;;  %v7375_v20 = vrot.slane %v1343_v63, %v6449_v46  ;;  %v2064_v3 = vrot.slane %v1326_v58, %v6447_v45  ;;  %v7397_v58 = vrot.slane %v1343_v63, %v6447_v45 }
 0x15f   : > { %v1335_v50 = vcombine.high %v1333_v17, %v1333_v17  ;;  %v1757_v44 = vrot.slane %v1334_v54, %v6449_v46  ;;  %v1761_v32 = vrot.slane %v1333_v17, %v6449_v46  ;;  %v7381_v4 = vrot.slane %v1351_v27, %v6449_v46 }
 0x160   : > { %10092 = vst [vmem:[#allocation32_spill] sm:$0xff] %v7375_v20  ;;  %v7385_v28 = vrot.slane %v7371_v12, %v6449_v46  ;;  %v2068_v35 = vrot.slane %v1334_v54, %v6447_v45  ;;  %v2072_v1 = vrot.slane %v1333_v17, %v6447_v45  ;;  %v3162_v63 = vsel %vm1856_vm7, %v7114_v31, %v3161_v30  ;;  %v10100_v31 = vld [vmem:[#allocation25_spill] sm:$0xff] }
 0x161   : > { %10093 = vst [vmem:[#allocation33_spill] sm:$0xff] %v7381_v4  ;;  %v7390_v20 = vrot.slane %v1335_v50, %v6449_v46  ;;  %v1888_v0 = vsel %vm9975_vm2, %v1757_v44, %v1753_v5  ;;  %v7394_v37 = vrot.slane %v1335_v50, %v6447_v45  ;;  %v7407_v17 = vsel %vm9975_vm2, %v1761_v32, %v1757_v44  ;;  %v10097_v50 = vld [vmem:[#allocation17_spill] sm:$0xff] }
 0x162   : > { %10094 = vst [vmem:[#allocation27_spill] sm:$0xff] %v7385_v28  ;;  %v7400_v4 = vsel %vm9974_vm3, %v1761_v32, %v1888_v0  ;;  %v7403_v28 = vrot.slane %v1351_v27, %v6447_v45  ;;  %v2192_v54 = vsel %vm9975_vm2, %v2068_v35, %v2064_v3  ;;  %v7413_v5 = vsel %vm9975_vm2, %v2072_v1, %v2068_v35 }
 0x163   : > { %10095 = vst [vmem:[#allocation21_spill] sm:$0xff] %v7390_v20  ;;  %10096 = vst [vmem:[#allocation29_spill] sm:$0xff] %v7400_v4  ;;  %v7410_v20 = vsel %vm9974_vm3, %v2072_v1, %v2192_v54  ;;  %v3168_v0 = vsel %vm1854_vm6, %v7130_v19, %v3167_v38  ;;  %v10098_v27 = vrot.slane %v10097_v50, %v6449_v46  ;;  %v10099_v1 = vld [vmem:[#allocation22_spill] sm:$0xff]  ;;  %v10102_v38 = vld [vmem:[#allocation63_spill] sm:$0xff] }
 0x164   : > { %v3169_v44 = vsel %vm1856_vm7, %v7134_v21, %v3168_v0  ;;  %v2180_v32 = vsel %vm9973_vm4, %v6939_v14, %v6955_v56  ;;  %v3270_v35 = vsel %vm9974_vm3, %v10068_v8, %v10099_v1  ;;  %v10101_v30 = vrot.slane %v10100_v31, %v6449_v46  ;;  %v10104_v1 = vld [vmem:[#allocation37_spill] sm:$0xff] }
 0x165   : > { %v3163_v3 = vsel %vm1858_vm9, %v10098_v27, %v3162_v63  ;;  %v2181_v54 = vsel %vm1852_vm5, %v10102_v38, %v2180_v32  ;;  %v3271_v21 = vsel %vm9973_vm4, %v10070_v62, %v3270_v35  ;;  %v10103_v63 = vld [vmem:[#allocation30_spill] sm:$0xff]  ;;  %v7475_v35 = vrot.slane %v6881_v48, %v6449_v46  ;;  %v10136_v4 = vld [vmem:[#allocation45_spill] sm:$0xff] }
 0x166   : > { %v7435_v19 = vsel %vm1858_vm9, %v10101_v30, %v3169_v44  ;;  %v3277_v56 = vsel %vm9974_vm3, %v10074_v33, %v10103_v63  ;;  %v2182_v8 = vsel %vm1854_vm6, %v6932_v11, %v2181_v54  ;;  %v3272_v27 = vsel %vm1852_vm5, %v10072_v13, %v3271_v21 }
 0x167   : > { %v5996_v0 = vpack.i.bf16 %v7435_v19, %v3163_v3  ;;  %v3278_v44 = vsel %vm9973_vm4, %v10085_v10, %v3277_v56  ;;  %v2183_v32 = vsel %vm1856_vm7, %v7345_v23, %v2182_v8  ;;  %v3273_v62 = vsel %vm1854_vm6, %v7210_v53, %v3272_v27  ;;  %v7460_v3 = vld [vmem:[%s9839_s2] ss:$0 sm:$0xff]  ;;  %v10109_v8 = vld [vmem:[#allocation67_spill] sm:$0xff] }
 0x168   : > { %v3279_v33 = vsel %vm1852_vm5, %v10088_v29, %v3278_v44  ;;  %v702_v13 = vadd.f32 %v7460_v3, %v10104_v1  ;;  %v7467_v10 = vsel %vm1858_vm9, %v7363_v34, %v2183_v32  ;;  %v3274_v53 = vsel %vm1856_vm7, %v7219_v22, %v3273_v62  ;;  %v10110_v27 = vld [vmem:[#allocation66_spill] sm:$0xff] }
 0x169   : > { %5997 = vrot.lane.b32.xlu1 %v5996_v0, %s6289_s18  ;;  %v3280_v29 = vsel %vm1854_vm6, %v7229_v18, %v3279_v33  ;;  %v6046_v30 = vpack.i.bf16 %v7467_v10, %v7054_v47  ;;  %v10105_v54 = vrot.slane %v10097_v50, %v6447_v45  ;;  %v10106_v22 = vrot.slane %v10100_v31, %v6447_v45  ;;  %v10107_v47 = vld [vmem:[#allocation41_spill] sm:$0xff]  ;;  %v10108_v0 = vld [vmem:[#allocation38_spill] sm:$0xff] }
 0x16a   : > { %v3281_v63 = vsel %vm1856_vm7, %v7235_v55, %v3280_v29  ;;  %v819_v56 = vrot.slane %v702_v13, 7  ;;  %v7493_v48 = vrot.slane %v7329_v36, %v6449_v46  ;;  %v2280_v50 = vsel %vm9974_vm3, %v10108_v0, %v10107_v47  ;;  %v10111_v32 = vld [vmem:[#allocation34_spill] sm:$0xff]  ;;  %v10114_v13 = vld [vmem:[#allocation35_spill] sm:$0xff]  ;;  %v10115_v29 = vld [vmem:[#allocation64_spill] sm:$0xff] }
 0x16b   : > { %v3275_v21 = vsel %vm1858_vm9, %v10105_v54, %v3274_v53  ;;  %v7489_v18 = vsel %vm1858_vm9, %v10106_v22, %v3281_v63  ;;  %v2287_v44 = vsel %vm9974_vm3, %v10110_v27, %v10109_v8  ;;  %6047 = vrot.lane.b32.xlu0 %v6046_v30, %s6282_s28  ;;  %v2281_v62 = vsel %vm9973_vm4, %v10111_v32, %v2280_v50  ;;  %v10112_v33 = vld [vmem:[#allocation62_spill] sm:$0xff]  ;;  %v10116_v30 = vld [vmem:[#allocation39_spill] sm:$0xff]  ;;  %v10117_v63 = vld [vmem:[#allocation36_spill] sm:$0xff] }
 0x16c   : > { %v6001_v55 = vpack.i.bf16 %v7489_v18, %v3275_v21  ;;  %v894_v31 = vsel %vm787_vm8, %v819_v56, 0.0  ;;  %v2288_v36 = vsel %vm9973_vm4, %v10112_v33, %v2287_v44  ;;  %v2282_v53 = vsel %vm1852_vm5, %v10114_v13, %v2281_v62  ;;  %v10118_v47 = vld [vmem:[#allocation65_spill] sm:$0xff]  ;;  %v10119_v8 = vld [vmem:[#allocation24_spill] sm:$0xff] }
 0x16d   : > { %v7509_v1 = vrot.slane %v894_v31, %v6443_v39  ;;  %v2289_v54 = vsel %vm1852_vm5, %v10115_v29, %v2288_v36  ;;  %v697_v21 = vadd.f32 %v7460_v3, %v10116_v30  ;;  %v2283_v22 = vsel %vm1854_vm6, %v10117_v63, %v2282_v53  ;;  %v10120_v31 = vld [vmem:[#allocation40_spill] sm:$0xff] }
 0x16e   : > { %6002 = vrot.lane.b32.xlu1 %v6001_v55, %s6290_s21  ;;  %v2290_v50 = vsel %vm1854_vm6, %v10118_v47, %v2289_v54  ;;  %v1862_v44 = vsel %vm9973_vm4, %v6629_v16, %v10119_v8  ;;  %v1869_v62 = vsel %vm9973_vm4, %v10108_v0, %v10120_v31  ;;  %v2284_v53 = vsel %vm1856_vm7, %v7475_v35, %v2283_v22  ;;  %v10122_v8 = vld [vmem:[#allocation51_spill] sm:$0xff] }
 0x16f   : > { %10113 = vst [vmem:[#allocation17_spill] sm:$0xff] %v7509_v1  ;;  %v2291_v54 = vsel %vm1856_vm7, %v7493_v48, %v2290_v50  ;;  %v10121_v30 = vrot.slane %v6705_v49, %v6449_v46  ;;  %v10123_v0 = vrot.slane %v10122_v8, %v6449_v46  ;;  %v818_v36 = vrot.slane %v697_v21, 7 }
 0x170   : > { %v1863_v55 = vsel %vm1852_vm5, %v6606_v43, %v1862_v44  ;;  %v1870_v49 = vsel %vm1852_vm5, %v10111_v32, %v1869_v62 }
 0x171   : > { %v7540_v16 = vsel %vm1858_vm9, %v10121_v30, %v2284_v53  ;;  %v7546_v31 = vsel %vm1858_vm9, %v10123_v0, %v2291_v54  ;;  %v1864_v50 = vsel %vm1854_vm6, %v6616_v61, %v1863_v55  ;;  %v10124_v53 = vld [vmem:[#allocation69_spill] sm:$0xff]  ;;  %v820_v54 = vsel %vm787_vm8, %v818_v36, %v819_v56 }
 0x172   : > { %v6051_v22 = vpack.i.bf16 %v7546_v31, %v7540_v16  ;;  %v2395_v30 = vsel %vm9974_vm3, %v6939_v14, %v10124_v53  ;;  %v878_v21 = vsel %vm787_vm8, 0.0, %v818_v36  ;;  %v1865_v43 = vsel %vm1856_vm7, %v6620_v2, %v1864_v50 }
 0x173   : > { %v1871_v44 = vsel %vm1854_vm6, %v10114_v13, %v1870_v49  ;;  %v1360_v61 = vcombine.high %v878_v21, %v878_v21  ;;  %v1367_v55 = vrot.slane %v878_v21, %v6443_v39  ;;  %v1377_v32 = vcombine.high %v820_v54, %v820_v54 }
 0x174   : > { %6052 = vrot.lane.b32.xlu0 %v6051_v22, %s6284_s30  ;;  %v1384_v62 = vrot.slane %v820_v54, %v6443_v39  ;;  %v7570_v14 = vsel %vm1858_vm9, %v7025_v60, %v1865_v43  ;;  %v1872_v56 = vsel %vm1856_vm7, %v10117_v63, %v1871_v44  ;;  %v2396_v2 = vsel %vm9973_vm4, %v10102_v38, %v2395_v30 }
 0x175   : > { %10125 = vst [vmem:[#allocation22_spill] sm:$0xff] %v7570_v14  ;;  %v6016_v13 = vpack.i.bf16 %v7540_v16, %v7186_v26  ;;  %v1374_v36 = vrot.slane %v1360_v61, %v6443_v39  ;;  %v1375_v0 = vcombine.high %v1367_v55, %v1367_v55  ;;  %v7580_v22 = vrot.slane %v1377_v32, %v6443_v39 }
 0x176   : > { %v1392_v50 = vcombine.high %v1384_v62, %v1384_v62  ;;  %v2616_v49 = vrot.slane %v1367_v55, %v6449_v46  ;;  %v7584_v60 = vrot.slane %v1384_v62, %v6449_v46  ;;  %v2952_v63 = vrot.slane %v1367_v55, %v6447_v45 }
 0x177   : > { %v7588_v53 = vrot.slane %v1384_v62, %v6447_v45  ;;  %v1376_v38 = vcombine.high %v1374_v36, %v1374_v36  ;;  %v2620_v26 = vrot.slane %v1375_v0, %v6449_v46  ;;  %v2624_v16 = vrot.slane %v1374_v36, %v6449_v46 }
 0x178   : > { %10126 = vst [vmem:[#allocation25_spill] sm:$0xff] %v7584_v60  ;;  %v7593_v30 = vrot.slane %v1392_v50, %v6449_v46  ;;  %v2956_v54 = vrot.slane %v1375_v0, %v6447_v45  ;;  %v2960_v21 = vrot.slane %v1374_v36, %v6447_v45  ;;  %v7598_v43 = vrot.slane %v1392_v50, %v6447_v45 }
 0x179   : > { %10127 = vst [vmem:[#allocation63_spill] sm:$0xff] %v7588_v53  ;;  %v7602_v44 = vsel %vm1858_vm9, %v7475_v35, %v1872_v56  ;;  %v7605_v61 = vrot.slane %v1376_v38, %v6449_v46  ;;  %v2744_v55 = vsel %vm9975_vm2, %v2620_v26, %v2616_v49  ;;  %v7609_v32 = vrot.slane %v1376_v38, %v6447_v45  ;;  %v10135_v38 = vld [vmem:[#allocation43_spill] sm:$0xff] }
 0x17a   : > { %10128 = vst [vmem:[#allocation30_spill] sm:$0xff] %v7593_v30  ;;  %10129 = vst [vmem:[#allocation37_spill] sm:$0xff] %v7598_v43  ;;  %v7612_v62 = vsel %vm9975_vm2, %v2624_v16, %v2620_v26  ;;  %v7615_v36 = vsel %vm9974_vm3, %v2624_v16, %v2744_v55  ;;  %v3080_v0 = vsel %vm9975_vm2, %v2956_v54, %v2952_v63 }
 0x17b   : > { %10130 = vst [vmem:[#allocation41_spill] sm:$0xff] %v7602_v44  ;;  %10131 = vst [vmem:[#allocation38_spill] sm:$0xff] %v7609_v32  ;;  %v7619_v50 = vsel %vm9975_vm2, %v2960_v21, %v2956_v54  ;;  %v6006_v35 = vpack.i.bf16 %v7602_v44, %v7570_v14  ;;  %v7624_v56 = vsel %vm9974_vm3, %v2960_v21, %v3080_v0  ;;  %v10137_v54 = vld [vmem:[#allocation72_spill] sm:$0xff] }
 0x17c   : > { %10132 = vst [vmem:[#allocation67_spill] sm:$0xff] %v7612_v62  ;;  %10133 = vst [vmem:[#allocation66_spill] sm:$0xff] %v7619_v50  ;;  %v2397_v49 = vsel %vm1852_vm5, %v6932_v11, %v2396_v2  ;;  %v712_v26 = vadd.f32 %v7460_v3, %v10135_v38  ;;  %v7632_v16 = vcombine.high %v10136_v4, %v10136_v4 }
 0x17d   : > { %10134 = vst [vmem:[#allocation34_spill] sm:$0xff] %v7624_v56  ;;  %6007 = vrot.lane.b32.xlu1 %v6006_v35, %s6291_s22  ;;  %v2398_v63 = vsel %vm1854_vm6, %v7345_v23, %v2397_v49  ;;  %v7639_v21 = vcombine.high %v10137_v54, %v10137_v54  ;;  %v2544_v11 = vrot.slane %v10136_v4, %v6449_v46  ;;  %v10138_v23 = vld [vmem:[#allocation56_spill] sm:$0xff]  ;;  %v10139_v49 = vld [vmem:[#allocation53_spill] sm:$0xff]  ;;  %v10148_v56 = vld [vmem:[#allocation55_spill] sm:$0xff] }
 0x17e   : > { %v7645_v2 = vrot.slane %v10137_v54, %v6449_v46  ;;  %v2399_v55 = vsel %vm1856_vm7, %v7363_v34, %v2398_v63  ;;  %v822_v0 = vrot.slane %v712_v26, 7  ;;  %v7651_v35 = vrot.slane %v7632_v16, %v6449_v46  ;;  %v10141_v34 = vld [vmem:[#allocation46_spill] sm:$0xff] }
 0x17f   : > { %v2725_v38 = vsel %vm9973_vm4, %v10139_v49, %v10138_v23  ;;  %v10140_v44 = vrot.slane %v10122_v8, %v6447_v45  ;;  %v7664_v50 = vrot.slane %v7639_v21, %v6449_v46  ;;  %v2732_v63 = vsel %vm9973_vm4, %v7000_v15, %v7008_v7  ;;  %v10142_v8 = vld [vmem:[#allocation48_spill] sm:$0xff]  ;;  %v10145_v7 = vld [vmem:[#allocation75_spill] sm:$0xff] }
 0x180   : > { %v2726_v26 = vsel %vm1852_vm5, %v10141_v34, %v2725_v38  ;;  %v895_v1 = vsel %vm787_vm8, %v822_v0, 0.0 }
 0x181   : > { %v7660_v14 = vsel %vm1858_vm9, %v10140_v44, %v2399_v55  ;;  %v2727_v44 = vsel %vm1854_vm6, %v10142_v8, %v2726_v26  ;;  %v10143_v55 = vld [vmem:[#allocation73_spill] sm:$0xff]  ;;  %6017 = vrot.lane.b32.xlu1 %v6016_v13, %s6292_s10  ;;  %v7680_v38 = vrot.slane %v895_v1, %v6443_v39 }
 0x182   : > { %v6056_v23 = vpack.i.bf16 %v7660_v14, %v7086_v9  ;;  %v2733_v62 = vsel %vm1852_vm5, %v10143_v55, %v2732_v63  ;;  %v2728_v43 = vsel %vm1856_vm7, %v2544_v11, %v2727_v44  ;;  %v10146_v9 = vld [vmem:[#allocation44_spill] sm:$0xff]  ;;  %v10147_v13 = vld [vmem:[#allocation49_spill] sm:$0xff]  ;;  %v3172_v44 = vsel %vm9974_vm3, %v10139_v49, %v10148_v56 }
 0x183   : > { %10144 = vst [vmem:[#allocation62_spill] sm:$0xff] %v7680_v38  ;;  %v2734_v53 = vsel %vm1854_vm6, %v10145_v7, %v2733_v62  ;;  %v707_v32 = vadd.f32 %v7460_v3, %v10146_v9  ;;  %v2729_v26 = vsel %vm1858_vm9, %v7651_v35, %v2728_v43  ;;  %v722_v1 = vadd.f32 %v7460_v3, %v10147_v13 }
 0x184   : > { %6057 = vrot.lane.b32.xlu0 %v6056_v23, %s6283_s29  ;;  %v2735_v63 = vsel %vm1856_vm7, %v7645_v2, %v2734_v53  ;;  %v6026_v30 = vpack.i.bf16 %v2729_v26, %v7225_v40  ;;  %v3173_v60 = vsel %vm9973_vm4, %v10141_v34, %v3172_v44 }
 0x185   : > { %v7703_v23 = vsel %vm1858_vm9, %v7664_v50, %v2735_v63  ;;  %v821_v43 = vrot.slane %v707_v32, 7  ;;  %v825_v13 = vrot.slane %v722_v1, 7  ;;  %v3174_v62 = vsel %vm1852_vm5, %v10142_v8, %v3173_v60  ;;  %v10149_v8 = vld [vmem:[#allocation52_spill] sm:$0xff] }
 0x186   : > { %v6061_v53 = vpack.i.bf16 %v7703_v23, %v2729_v26  ;;  %v3179_v63 = vsel %vm9974_vm3, %v7000_v15, %v7014_v57  ;;  %6027 = vrot.lane.b32.xlu1 %v6026_v30, %s6293_s23  ;;  %v3175_v34 = vsel %vm1854_vm6, %v2544_v11, %v3174_v62  ;;  %v717_v15 = vadd.f32 %v7460_v3, %v10149_v8 }
 0x187   : > { %v823_v56 = vsel %vm787_vm8, %v821_v43, %v822_v0  ;;  %v879_v49 = vsel %vm787_vm8, 0.0, %v821_v43  ;;  %v896_v0 = vsel %vm787_vm8, %v825_v13, 0.0  ;;  %v3180_v60 = vsel %vm9973_vm4, %v10143_v55, %v3179_v63 }
 0x188   : > { %6062 = vrot.lane.b32.xlu0 %v6061_v53, %s6285_s12  ;;  %v1401_v32 = vcombine.high %v879_v49, %v879_v49  ;;  %v1408_v40 = vrot.slane %v879_v49, %v6443_v39  ;;  %v1418_v26 = vcombine.high %v823_v56, %v823_v56  ;;  %v1425_v1 = vrot.slane %v823_v56, %v6443_v39 }
 0x18a   : > { %v1415_v57 = vrot.slane %v1401_v32, %v6443_v39  ;;  %v1416_v44 = vcombine.high %v1408_v40, %v1408_v40  ;;  %v7728_v43 = vrot.slane %v1418_v26, %v6443_v39  ;;  %v1433_v53 = vcombine.high %v1425_v1, %v1425_v1 }
 0x18b   : > { %v1785_v56 = vrot.slane %v1408_v40, %v6449_v46  ;;  %v7732_v30 = vrot.slane %v1425_v1, %v6449_v46  ;;  %v2096_v11 = vrot.slane %v1408_v40, %v6447_v45  ;;  %v7736_v62 = vrot.slane %v1425_v1, %v6447_v45 }
 0x18c   : > { %v1417_v55 = vcombine.high %v1415_v57, %v1415_v57  ;;  %v1789_v49 = vrot.slane %v1416_v44, %v6449_v46  ;;  %v1793_v63 = vrot.slane %v1415_v57, %v6449_v46  ;;  %v7741_v32 = vrot.slane %v1433_v53, %v6449_v46 }
 0x18d   : > { %10150 = vst [vmem:[#allocation35_spill] sm:$0xff] %v7732_v30  ;;  %v7745_v26 = vrot.slane %v7728_v43, %v6449_v46  ;;  %v2100_v8 = vrot.slane %v1416_v44, %v6447_v45  ;;  %v2104_v9 = vrot.slane %v1415_v57, %v6447_v45  ;;  %v7750_v40 = vrot.slane %v1433_v53, %v6447_v45 }
 0x18e   : > { %10151 = vst [vmem:[#allocation64_spill] sm:$0xff] %v7741_v32  ;;  %v7753_v1 = vrot.slane %v1417_v55, %v6449_v46  ;;  %v1895_v30 = vsel %vm9975_vm2, %v1789_v49, %v1785_v56  ;;  %v7757_v38 = vrot.slane %v1417_v55, %v6447_v45  ;;  %v7760_v32 = vsel %vm9975_vm2, %v1793_v63, %v1789_v49 }
 0x18f   : > { %10152 = vst [vmem:[#allocation39_spill] sm:$0xff] %v7745_v26  ;;  %10153 = vst [vmem:[#allocation36_spill] sm:$0xff] %v7750_v40  ;;  %v7763_v26 = vsel %vm9974_vm3, %v1793_v63, %v1895_v30  ;;  %v2199_v44 = vsel %vm9975_vm2, %v2100_v8, %v2096_v11  ;;  %v7767_v57 = vsel %vm9975_vm2, %v2104_v9, %v2100_v8  ;;  %v824_v49 = vrot.slane %v717_v15, 7  ;;  %v10159_v63 = vld [vmem:[#allocation42_spill] sm:$0xff] }
 0x190   : > { %10154 = vst [vmem:[#allocation65_spill] sm:$0xff] %v7753_v1  ;;  %10155 = vst [vmem:[#allocation24_spill] sm:$0xff] %v7760_v32  ;;  %v7770_v53 = vrot.slane %v896_v0, %v6443_v39  ;;  %v7773_v1 = vsel %vm9974_vm3, %v2104_v9, %v2199_v44  ;;  %v3176_v56 = vsel %vm1856_vm7, %v7651_v35, %v3175_v34  ;;  %v10161_v15 = vld [vmem:[#allocation70_spill] sm:$0xff] }
 0x191   : > { %10156 = vst [vmem:[#allocation40_spill] sm:$0xff] %v7763_v26  ;;  %10157 = vst [vmem:[#allocation51_spill] sm:$0xff] %v7767_v57  ;;  %v3181_v55 = vsel %vm1852_vm5, %v10145_v7, %v3180_v60  ;;  %v10160_v0 = vrot.slane %v10159_v63, %v6449_v46  ;;  %v826_v7 = vsel %vm787_vm8, %v824_v49, %v825_v13  ;;  %v880_v34 = vsel %vm787_vm8, 0.0, %v824_v49 }
 0x192   : > { %10158 = vst [vmem:[#allocation69_spill] sm:$0xff] %v7770_v53  ;;  %v3182_v9 = vsel %vm1854_vm6, %v7645_v2, %v3181_v55  ;;  %v7797_v60 = vrot.slane %v10136_v4, %v6447_v45  ;;  %v10162_v44 = vrot.slane %v10161_v15, %v6449_v46  ;;  %v1449_v2 = vrot.slane %v880_v34, %v6443_v39  ;;  %v10163_v4 = vld [vmem:[#allocation58_spill] sm:$0xff] }
 0x193   : > { %v7787_v8 = vsel %vm1858_vm9, %v10160_v0, %v3176_v56  ;;  %v3183_v35 = vsel %vm1856_vm7, %v7664_v50, %v3182_v9  ;;  %v1442_v0 = vcombine.high %v880_v34, %v880_v34  ;;  %v1459_v55 = vcombine.high %v826_v7, %v826_v7  ;;  %v10164_v9 = vld [vmem:[#allocation54_spill] sm:$0xff] }
 0x194   : > { %v7803_v56 = vsel %vm1858_vm9, %v10162_v44, %v3183_v35  ;;  %v1466_v13 = vrot.slane %v826_v7, %v6443_v39  ;;  %v7811_v49 = vrot.slane %v7632_v16, %v6447_v45  ;;  %v3061_v11 = vsel %vm9973_vm4, %v10164_v9, %v10163_v4 }
 0x195   : > { %v6071_v50 = vpack.i.bf16 %v7803_v56, %v7787_v8  ;;  %v1456_v35 = vrot.slane %v1442_v0, %v6443_v39  ;;  %v1457_v44 = vcombine.high %v1449_v2, %v1449_v2  ;;  %v7818_v30 = vrot.slane %v1459_v55, %v6443_v39 }
 0x196   : > { %v2648_v34 = vrot.slane %v1449_v2, %v6449_v46  ;;  %v1474_v53 = vcombine.high %v1466_v13, %v1466_v13  ;;  %v7823_v7 = vrot.slane %v1466_v13, %v6449_v46  ;;  %v2984_v16 = vrot.slane %v1449_v2, %v6447_v45 }
 0x197   : > { %10165 = vst [vmem:[#allocation43_spill] sm:$0xff] %v7818_v30  ;;  %6072 = vrot.lane.b32.xlu0 %v6071_v50, %s6289_s18  ;;  %v7827_v26 = vrot.slane %v1466_v13, %v6447_v45  ;;  %v1458_v4 = vcombine.high %v1456_v35, %v1456_v35  ;;  %v2652_v0 = vrot.slane %v1457_v44, %v6449_v46 }
 0x198   : > { %10166 = vst [vmem:[#allocation45_spill] sm:$0xff] %v7823_v7  ;;  %v2656_v32 = vrot.slane %v1456_v35, %v6449_v46  ;;  %v2988_v55 = vrot.slane %v1457_v44, %v6447_v45  ;;  %v7833_v30 = vrot.slane %v1474_v53, %v6449_v46  ;;  %v2992_v50 = vrot.slane %v1456_v35, %v6447_v45  ;;  %v10170_v7 = vld [vmem:[#allocation47_spill] sm:$0xff] }
 0x199   : > { %10167 = vst [vmem:[#allocation72_spill] sm:$0xff] %v7827_v26  ;;  %v7837_v40 = vrot.slane %v1474_v53, %v6447_v45  ;;  %v3062_v2 = vsel %vm1852_vm5, %v10170_v7, %v3061_v11  ;;  %v7842_v13 = vrot.slane %v1458_v4, %v6449_v46  ;;  %v2751_v26 = vsel %vm9975_vm2, %v2652_v0, %v2648_v34 }
 0x19a   : > { %10168 = vst [vmem:[#allocation56_spill] sm:$0xff] %v7833_v30  ;;  %v7846_v57 = vrot.slane %v1458_v4, %v6447_v45  ;;  %v3087_v44 = vsel %vm9975_vm2, %v2988_v55, %v2984_v16  ;;  %v7850_v30 = vsel %vm9974_vm3, %v2656_v32, %v2751_v26  ;;  %v7856_v53 = vsel %vm9975_vm2, %v2656_v32, %v2652_v0  ;;  %v10179_v0 = vld [vmem:[#allocation68_spill] sm:$0xff] }
 0x19b   : > { %10169 = vst [vmem:[#allocation53_spill] sm:$0xff] %v7837_v40  ;;  %10171 = vst [vmem:[#allocation46_spill] sm:$0xff] %v7842_v13  ;;  %v7853_v35 = vsel %vm9974_vm3, %v2992_v50, %v3087_v44  ;;  %v7859_v11 = vsel %vm9975_vm2, %v2992_v50, %v2988_v55  ;;  %v10177_v40 = vld [vmem:[#allocation50_spill] sm:$0xff]  ;;  %v10178_v13 = vld [vmem:[#allocation59_spill] sm:$0xff]  ;;  %v1270_v16 = vcombine.high %v7142_v25, %v7142_v25 }
 0x19c   : > { %10172 = vst [vmem:[#allocation48_spill] sm:$0xff] %v7846_v57  ;;  %10173 = vst [vmem:[#allocation73_spill] sm:$0xff] %v7850_v30  ;;  %v3063_v34 = vsel %vm1854_vm6, %v10177_v40, %v3062_v2  ;;  %v732_v4 = vadd.f32 %v7460_v3, %v10178_v13  ;;  %v7869_v26 = vrot.slane %v7142_v25, %v6449_v46  ;;  %v10180_v2 = vld [vmem:[#allocation60_spill] sm:$0xff] }
 0x19d   : > { %10174 = vst [vmem:[#allocation75_spill] sm:$0xff] %v7853_v35  ;;  %10175 = vst [vmem:[#allocation44_spill] sm:$0xff] %v7856_v53  ;;  %v3064_v32 = vsel %vm1856_vm7, %v7797_v60, %v3063_v34  ;;  %v1876_v55 = vsel %vm9973_vm4, %v10110_v27, %v10179_v0  ;;  %v1883_v50 = vsel %vm9973_vm4, %v7160_v52, %v7170_v6 }
 0x19e   : > { %10176 = vst [vmem:[#allocation49_spill] sm:$0xff] %v7859_v11  ;;  %v727_v13 = vadd.f32 %v7460_v3, %v10180_v2  ;;  %v7883_v44 = vsel %vm1858_vm9, %v7811_v49, %v3064_v32  ;;  %v828_v11 = vrot.slane %v732_v4, 7  ;;  %v7886_v53 = vrot.slane %v1270_v16, %v6449_v46 }
 0x19f   : > { %v1877_v34 = vsel %vm1852_vm5, %v10112_v33, %v1876_v55  ;;  %v6031_v27 = vpack.i.bf16 %v7883_v44, %v7337_v41  ;;  %v1884_v0 = vsel %vm1852_vm5, %v7146_v59, %v1883_v50  ;;  %v6036_v33 = vpack.i.bf16 %v7787_v8, %v7435_v19 }
 0x1a0   : > { %v1878_v6 = vsel %vm1854_vm6, %v10115_v29, %v1877_v34  ;;  %v827_v2 = vrot.slane %v727_v13, 7  ;;  %v897_v32 = vsel %vm787_vm8, %v828_v11, 0.0  ;;  %v1885_v57 = vsel %vm1854_vm6, %v7152_v24, %v1884_v0 }
 0x1a1   : > { %v1879_v4 = vsel %vm1856_vm7, %v10118_v47, %v1878_v6  ;;  %6032 = vrot.lane.b32.xlu1 %v6031_v27, %s6294_s24  ;;  %v7905_v41 = vrot.slane %v897_v32, %v6443_v39  ;;  %v1886_v55 = vsel %vm1856_vm7, %v7869_v26, %v1885_v57 }
 0x1a2   : > { %v7909_v29 = vsel %vm1858_vm9, %v7493_v48, %v1879_v4  ;;  %v829_v47 = vsel %vm787_vm8, %v827_v2, %v828_v11  ;;  %v7916_v50 = vsel %vm1858_vm9, %v7886_v53, %v1886_v55  ;;  %v881_v19 = vsel %vm787_vm8, 0.0, %v827_v2  ;;  %v10185_v55 = vld [vmem:[#allocation61_spill] sm:$0xff] }
 0x1a3   : > { %10181 = vst [vmem:[#allocation55_spill] sm:$0xff] %v7905_v41  ;;  %10182 = vst [vmem:[#allocation52_spill] sm:$0xff] %v7909_v29  ;;  %v1500_v8 = vcombine.high %v829_v47, %v829_v47  ;;  %v1507_v13 = vrot.slane %v829_v47, %v6443_v39  ;;  %v6081_v57 = vpack.i.bf16 %v7916_v50, %v7909_v29 }
 0x1a4   : > { %10183 = vst [vmem:[#allocation42_spill] sm:$0xff] %v7916_v50  ;;  %v1483_v27 = vcombine.high %v881_v19, %v881_v19  ;;  %v1490_v11 = vrot.slane %v881_v19, %v6443_v39  ;;  %v742_v47 = vadd.f32 %v7460_v3, %v10185_v55 }
 0x1a5   : > { %v7928_v6 = vrot.slane %v1500_v8, %v6443_v39  ;;  %v1515_v0 = vcombine.high %v1507_v13, %v1507_v13  ;;  %v7931_v2 = vrot.slane %v1507_v13, %v6449_v46  ;;  %6082 = vrot.lane.b32.xlu0 %v6081_v57, %s6291_s22  ;;  %v7936_v4 = vrot.slane %v1507_v13, %v6447_v45 }
 0x1a6   : > { %v1497_v32 = vrot.slane %v1483_v27, %v6443_v39  ;;  %6037 = vrot.lane.b32.xlu1 %v6036_v33, %s6295_s25  ;;  %v1498_v19 = vcombine.high %v1490_v11, %v1490_v11  ;;  %v1817_v8 = vrot.slane %v1490_v11, %v6449_v46  ;;  %v2128_v34 = vrot.slane %v1490_v11, %v6447_v45 }
 0x1a7   : > { %10184 = vst [vmem:[#allocation70_spill] sm:$0xff] %v7931_v2  ;;  %v7943_v48 = vrot.slane %v1515_v0, %v6449_v46  ;;  %v7947_v57 = vrot.slane %v7928_v6, %v6449_v46  ;;  %v7955_v29 = vrot.slane %v1515_v0, %v6447_v45  ;;  %v831_v35 = vrot.slane %v742_v47, 7  ;;  %v10194_v2 = vld [vmem:[#allocation84_spill] sm:$0xff] }
 0x1a8   : > { %v1499_v27 = vcombine.high %v1497_v32, %v1497_v32  ;;  %v1825_v13 = vrot.slane %v1497_v32, %v6449_v46  ;;  %v2136_v33 = vrot.slane %v1497_v32, %v6447_v45  ;;  %v1821_v50 = vrot.slane %v1498_v19, %v6449_v46 }
 0x1a9   : > { %10186 = vst [vmem:[#allocation58_spill] sm:$0xff] %v7943_v48  ;;  %10187 = vst [vmem:[#allocation54_spill] sm:$0xff] %v7947_v57  ;;  %v2132_v55 = vrot.slane %v1498_v19, %v6447_v45  ;;  %v7965_v57 = vrot.slane %v7142_v25, %v6447_v45  ;;  %v7968_v11 = vrot.slane %v1270_v16, %v6447_v45  ;;  %v898_v25 = vsel %vm787_vm8, %v831_v35, 0.0  ;;  %v10193_v16 = vld [vmem:[#allocation88_spill] sm:$0xff] }
 0x1aa   : > { %10188 = vst [vmem:[#allocation47_spill] sm:$0xff] %v7955_v29  ;;  %v7958_v30 = vrot.slane %v1499_v27, %v6449_v46  ;;  %v7961_v41 = vrot.slane %v1499_v27, %v6447_v45  ;;  %v1902_v32 = vsel %vm9975_vm2, %v1821_v50, %v1817_v8  ;;  %v7973_v0 = vsel %vm9975_vm2, %v1825_v13, %v1821_v50  ;;  %v10196_v50 = vld [vmem:[#allocation83_spill] sm:$0xff] }
 0x1ab   : > { %v2206_v19 = vsel %vm9975_vm2, %v2132_v55, %v2128_v34  ;;  %10190 = vst [vmem:[#allocation59_spill] sm:$0xff] %v7973_v0  ;;  %v7976_v47 = vsel %vm9975_vm2, %v2136_v33, %v2132_v55  ;;  %v7979_v27 = vsel %vm9974_vm3, %v1825_v13, %v1902_v32  ;;  %v2187_v8 = vsel %vm9973_vm4, %v10194_v2, %v10193_v16  ;;  %v10197_v55 = vld [vmem:[#allocation71_spill] sm:$0xff]  ;;  %v10198_v13 = vld [vmem:[#allocation57_spill] sm:$0xff]  ;;  %v10200_v16 = vld [vmem:[#allocation80_spill] sm:$0xff] }
 0x1ac   : > { %10189 = vst [vmem:[#allocation50_spill] sm:$0xff] %v7958_v30  ;;  %10191 = vst [vmem:[#allocation68_spill] sm:$0xff] %v7976_v47  ;;  %v7982_v48 = vsel %vm9974_vm3, %v2136_v33, %v2206_v19  ;;  %v7989_v34 = vrot.slane %v898_v25, %v6443_v39  ;;  %v2188_v30 = vsel %vm1852_vm5, %v10196_v50, %v2187_v8  ;;  %v10199_v32 = vld [vmem:[#allocation85_spill] sm:$0xff]  ;;  %v10201_v0 = vld [vmem:[#allocation86_spill] sm:$0xff] }
 0x1ad   : > { %10192 = vst [vmem:[#allocation60_spill] sm:$0xff] %v7979_v27  ;;  %v737_v47 = vadd.f32 %v7460_v3, %v10197_v55  ;;  %v3284_v33 = vsel %vm9974_vm3, %v10164_v9, %v10198_v13  ;;  %v2189_v19 = vsel %vm1854_vm6, %v10199_v32, %v2188_v30  ;;  %v752_v25 = vadd.f32 %v7460_v3, %v10200_v16 }
 0x1ae   : > { %10195 = vst [vmem:[#allocation61_spill] sm:$0xff] %v7989_v34  ;;  %v3285_v27 = vsel %vm9973_vm4, %v10170_v7, %v3284_v33  ;;  %v2294_v8 = vsel %vm9974_vm3, %v7160_v52, %v10201_v0  ;;  %v2190_v9 = vsel %vm1856_vm7, %v7965_v57, %v2189_v19 }
 0x1af   : > { %v830_v30 = vrot.slane %v737_v47, 7  ;;  %v8015_v7 = vsel %vm1858_vm9, %v7968_v11, %v2190_v9  ;;  %v3286_v13 = vsel %vm1852_vm5, %v10177_v40, %v3285_v27  ;;  %v834_v33 = vrot.slane %v752_v25, 7  ;;  %v10202_v27 = vld [vmem:[#allocation81_spill] sm:$0xff] }
 0x1b0   : > { %v2295_v52 = vsel %vm9973_vm4, %v7146_v59, %v2294_v8  ;;  %v6086_v0 = vpack.i.bf16 %v8015_v7, %v7467_v10  ;;  %v3287_v47 = vsel %vm1854_vm6, %v7797_v60, %v3286_v13  ;;  %v747_v25 = vadd.f32 %v7460_v3, %v10202_v27 }
 0x1b1   : > { %v832_v16 = vsel %vm787_vm8, %v830_v30, %v831_v35  ;;  %v882_v29 = vsel %vm787_vm8, 0.0, %v830_v30  ;;  %v3288_v59 = vsel %vm1856_vm7, %v7811_v49, %v3287_v47  ;;  %v899_v10 = vsel %vm787_vm8, %v834_v33, 0.0 }
 0x1b2   : > { %v1524_v19 = vcombine.high %v882_v29, %v882_v29  ;;  %v1531_v9 = vrot.slane %v882_v29, %v6443_v39  ;;  %v1541_v55 = vcombine.high %v832_v16, %v832_v16  ;;  %v1548_v40 = vrot.slane %v832_v16, %v6443_v39  ;;  %6087 = vrot.lane.b32.xlu0 %v6086_v0, %s6286_s13 }
 0x1b3   : > { %v2296_v35 = vsel %vm1852_vm5, %v7152_v24, %v2295_v52 }
 0x1b4   : > { %v1538_v60 = vrot.slane %v1524_v19, %v6443_v39  ;;  %v1539_v8 = vcombine.high %v1531_v9, %v1531_v9  ;;  %v8039_v29 = vrot.slane %v1541_v55, %v6443_v39  ;;  %v1556_v30 = vcombine.high %v1548_v40, %v1548_v40 }
 0x1b5   : > { %v2680_v13 = vrot.slane %v1531_v9, %v6449_v46  ;;  %v8043_v0 = vrot.slane %v1548_v40, %v6449_v46  ;;  %v3016_v49 = vrot.slane %v1531_v9, %v6447_v45  ;;  %v8047_v16 = vrot.slane %v1548_v40, %v6447_v45 }
 0x1b6   : > { %v1540_v24 = vcombine.high %v1538_v60, %v1538_v60  ;;  %v2684_v3 = vrot.slane %v1539_v8, %v6449_v46  ;;  %v2688_v52 = vrot.slane %v1538_v60, %v6449_v46  ;;  %v8052_v47 = vrot.slane %v1556_v30, %v6449_v46 }
 0x1b7   : > { %10203 = vst [vmem:[#allocation88_spill] sm:$0xff] %v8047_v16  ;;  %v3020_v55 = vrot.slane %v1539_v8, %v6447_v45  ;;  %v3024_v19 = vrot.slane %v1538_v60, %v6447_v45  ;;  %v8057_v27 = vrot.slane %v1556_v30, %v6447_v45  ;;  %v10206_v9 = vrot.slane %v10159_v63, %v6447_v45 }
 0x1b8   : > { %10204 = vst [vmem:[#allocation84_spill] sm:$0xff] %v8052_v47  ;;  %v8066_v16 = vrot.slane %v1540_v24, %v6449_v46  ;;  %v2758_v34 = vsel %vm9975_vm2, %v2684_v3, %v2680_v13  ;;  %v8070_v47 = vrot.slane %v1540_v24, %v6447_v45  ;;  %v8073_v8 = vsel %vm9975_vm2, %v2688_v52, %v2684_v3 }
 0x1b9   : > { %10205 = vst [vmem:[#allocation83_spill] sm:$0xff] %v8057_v27  ;;  %v8063_v40 = vsel %vm1858_vm9, %v10206_v9, %v3288_v59  ;;  %v8076_v60 = vsel %vm9974_vm3, %v2688_v52, %v2758_v34  ;;  %v3094_v30 = vsel %vm9975_vm2, %v3020_v55, %v3016_v49  ;;  %v8080_v63 = vsel %vm9975_vm2, %v3024_v19, %v3020_v55  ;;  %v10211_v52 = vld [vmem:[#allocation78_spill] sm:$0xff]  ;;  %v10212_v55 = vld [vmem:[#allocation77_spill] sm:$0xff] }
 0x1ba   : > { %10207 = vst [vmem:[#allocation71_spill] sm:$0xff] %v8070_v47  ;;  %10208 = vst [vmem:[#allocation57_spill] sm:$0xff] %v8080_v63  ;;  %v6041_v59 = vpack.i.bf16 %v8063_v40, %v7489_v18  ;;  %v8085_v9 = vsel %vm9974_vm3, %v3024_v19, %v3094_v30  ;;  %v8088_v13 = vrot.slane %v899_v10, %v6443_v39  ;;  %v833_v3 = vrot.slane %v747_v25, 7  ;;  %v10213_v25 = vld [vmem:[#allocation82_spill] sm:$0xff]  ;;  %v10216_v63 = vld [vmem:[#allocation87_spill] sm:$0xff] }
 0x1bb   : > { %10209 = vst [vmem:[#allocation85_spill] sm:$0xff] %v8085_v9  ;;  %v2297_v24 = vsel %vm1854_vm6, %v7869_v26, %v2296_v35  ;;  %v2912_v49 = vrot.slane %v10137_v54, %v6447_v45  ;;  %v2916_v18 = vrot.slane %v7639_v21, %v6447_v45  ;;  %v3068_v10 = vsel %vm9973_vm4, %v10212_v55, %v10211_v52  ;;  %v10215_v35 = vld [vmem:[#allocation74_spill] sm:$0xff] }
 0x1bc   : > { %10210 = vst [vmem:[#allocation80_spill] sm:$0xff] %v8088_v13  ;;  %6042 = vrot.lane.b32.xlu1 %v6041_v59, %s6296_s26  ;;  %v2298_v34 = vsel %vm1856_vm7, %v7886_v53, %v2297_v24  ;;  %v10214_v19 = vrot.slane %v10213_v25, %v6449_v46  ;;  %v835_v54 = vsel %vm787_vm8, %v833_v3, %v834_v33  ;;  %v883_v30 = vsel %vm787_vm8, 0.0, %v833_v3 }
 0x1bd   : > { %v1582_v59 = vcombine.high %v835_v54, %v835_v54  ;;  %v1589_v24 = vrot.slane %v835_v54, %v6443_v39  ;;  %v1565_v52 = vcombine.high %v883_v30, %v883_v30  ;;  %v1572_v26 = vrot.slane %v883_v30, %v6443_v39 }
 0x1be   : > { %v8110_v53 = vsel %vm1858_vm9, %v10214_v19, %v2298_v34  ;;  %v3069_v13 = vsel %vm1852_vm5, %v10215_v35, %v3068_v10  ;;  %v2402_v34 = vsel %vm9974_vm3, %v10194_v2, %v10216_v63 }
 0x1bf   : > { %v6091_v21 = vpack.i.bf16 %v8110_v53, %v7546_v31  ;;  %v8125_v33 = vrot.slane %v1582_v59, %v6443_v39  ;;  %v1597_v31 = vcombine.high %v1589_v24, %v1589_v24  ;;  %v8128_v3 = vrot.slane %v1589_v24, %v6449_v46 }
 0x1c0   : > { %v8131_v19 = vrot.slane %v1589_v24, %v6447_v45  ;;  %v1579_v54 = vrot.slane %v1565_v52, %v6443_v39  ;;  %v1580_v30 = vcombine.high %v1572_v26, %v1572_v26  ;;  %v3352_v10 = vrot.slane %v1572_v26, %v6449_v46 }
 0x1c1   : > { %6092 = vrot.lane.b32.xlu0 %v6091_v21, %s6292_s10  ;;  %v3415_v27 = vrot.slane %v1572_v26, %v6447_v45  ;;  %v8137_v2 = vrot.slane %v1597_v31, %v6449_v46  ;;  %v8140_v63 = vrot.slane %v1597_v31, %v6447_v45  ;;  %v10220_v21 = vld [vmem:[#allocation76_spill] sm:$0xff]  ;;  %v2403_v24 = vsel %vm9973_vm4, %v10196_v50, %v2402_v34 }
 0x1c2   : > { %10217 = vst [vmem:[#allocation86_spill] sm:$0xff] %v8131_v19  ;;  %v3070_v59 = vsel %vm1854_vm6, %v10220_v21, %v3069_v13  ;;  %v1581_v47 = vcombine.high %v1579_v54, %v1579_v54  ;;  %v3356_v52 = vrot.slane %v1580_v30, %v6449_v46  ;;  %v3360_v39 = vrot.slane %v1579_v54, %v6449_v46 }
 0x1c3   : > { %10218 = vst [vmem:[#allocation81_spill] sm:$0xff] %v8137_v2  ;;  %10219 = vst [vmem:[#allocation78_spill] sm:$0xff] %v8140_v63  ;;  %v3419_v9 = vrot.slane %v1580_v30, %v6447_v45  ;;  %v3423_v26 = vrot.slane %v1579_v54, %v6447_v45  ;;  %v3071_v19 = vsel %vm1856_vm7, %v2912_v49, %v3070_v59  ;;  %v10221_v63 = vld [vmem:[#allocation79_spill] sm:$0xff] }
 0x1c4   : > { %v2404_v31 = vsel %vm1852_vm5, %v10199_v32, %v2403_v24  ;;  %v3291_v13 = vsel %vm9974_vm3, %v10212_v55, %v10221_v63  ;;  %v8157_v50 = vrot.slane %v1581_v47, %v6449_v46  ;;  %v3381_v34 = vsel %vm9975_vm2, %v3356_v52, %v3352_v10  ;;  %v10222_v10 = vld [vmem:[#allocation20_spill] sm:$0xff] }
 0x1c5   : > { %v8161_v2 = vrot.slane %v1581_v47, %v6447_v45  ;;  %v3444_v30 = vsel %vm9975_vm2, %v3419_v9, %v3415_v27  ;;  %v8165_v54 = vsel %vm9974_vm3, %v3360_v39, %v3381_v34  ;;  %v8171_v32 = vsel %vm9975_vm2, %v3360_v39, %v3356_v52 }
 0x1c6   : > { %v8168_v59 = vsel %vm9974_vm3, %v3423_v26, %v3444_v30  ;;  %v8174_v55 = vsel %vm9975_vm2, %v3423_v26, %v3419_v9  ;;  %v3072_v63 = vsel %vm1858_vm9, %v2916_v18, %v3071_v19  ;;  %v2405_v47 = vsel %vm1854_vm6, %v7965_v57, %v2404_v31  ;;  %v10224_v31 = vld [vmem:[#allocation18_spill] sm:$0xff] }
 0x1c7   : > { %v3292_v27 = vsel %vm9973_vm4, %v10215_v35, %v3291_v13  ;;  %v1311_v24 = vcombine.high %v10222_v10, %v10222_v10  ;;  %v6066_v34 = vpack.i.bf16 %v3072_v63, %v7883_v44  ;;  %v2406_v39 = vsel %vm1856_vm7, %v7968_v11, %v2405_v47  ;;  %v10226_v47 = vld [vmem:[#allocation31_spill] sm:$0xff] }
 0x1c8   : > { %v3293_v9 = vsel %vm1852_vm5, %v10220_v21, %v3292_v27  ;;  %v2608_v19 = vrot.slane %v10222_v10, %v6449_v46  ;;  %v10223_v57 = vrot.slane %v10213_v25, %v6447_v45  ;;  %v2739_v44 = vsel %vm9973_vm4, %v7292_v51, %v7302_v42 }
 0x1c9   : > { %v3294_v35 = vsel %vm1854_vm6, %v2912_v49, %v3293_v9  ;;  %v2612_v26 = vrot.slane %v1311_v24, %v6449_v46  ;;  %6067 = vrot.lane.b32.xlu1 %v6066_v34, %s6288_s15  ;;  %v2740_v25 = vsel %vm1852_vm5, %v10224_v31, %v2739_v44  ;;  %v2944_v13 = vrot.slane %v10222_v10, %v6447_v45  ;;  %v10227_v34 = vld [vmem:[#allocation92_spill] sm:$0xff]  ;;  %v10229_v9 = vld [vmem:[#allocation19_spill] sm:$0xff] }
 0x1ca   : > { %v8194_v52 = vsel %vm1858_vm9, %v10223_v57, %v2406_v39  ;;  %v3295_v21 = vsel %vm1856_vm7, %v2916_v18, %v3294_v35  ;;  %v10225_v49 = vrot.slane %v10161_v15, %v6447_v45  ;;  %v2741_v42 = vsel %vm1854_vm6, %v10226_v47, %v2740_v25  ;;  %v10230_v57 = vld [vmem:[#allocation90_spill] sm:$0xff]  ;;  %v10232_v25 = vld [vmem:[#allocation91_spill] sm:$0xff] }
 0x1cb   : > { %v6096_v11 = vpack.i.bf16 %v8194_v52, %v7660_v14  ;;  %v2948_v27 = vrot.slane %v1311_v24, %v6447_v45  ;;  %v10228_v14 = vld [vmem:[#allocation89_spill] sm:$0xff]  ;;  %v2742_v10 = vsel %vm1856_vm7, %v2608_v19, %v2741_v42  ;;  %v3186_v35 = vsel %vm9974_vm3, %v7292_v51, %v10230_v57  ;;  %v10231_v24 = vld [vmem:[#allocation28_spill] sm:$0xff] }
 0x1cc   : > { %v3296_v30 = vsel %vm1858_vm9, %v10225_v49, %v3295_v21  ;;  %v3075_v18 = vsel %vm9973_vm4, %v10228_v14, %v10227_v34  ;;  %v8228_v44 = vsel %vm1858_vm9, %v2612_v26, %v2742_v10 }
 0x1cd   : > { %6097 = vrot.lane.b32.xlu0 %v6096_v11, %s6287_s14  ;;  %v6076_v39 = vpack.i.bf16 %v3296_v30, %v8063_v40  ;;  %v3076_v15 = vsel %vm1852_vm5, %v10229_v9, %v3075_v18  ;;  %v3187_v11 = vsel %vm9973_vm4, %v10224_v31, %v3186_v35  ;;  %v3298_v40 = vsel %vm9974_vm3, %v10228_v14, %v10232_v25  ;;  %v10236_v25 = vld [vmem:[#allocation21_spill] sm:$0xff] }
 0x1ce   : > { %v3077_v21 = vsel %vm1854_vm6, %v10231_v24, %v3076_v15  ;;  %v6101_v49 = vpack.i.bf16 %v8228_v44, %v7703_v23  ;;  %v3188_v42 = vsel %vm1852_vm5, %v10226_v47, %v3187_v11  ;;  %v3299_v34 = vsel %vm9973_vm4, %v10229_v9, %v3298_v40  ;;  %v10233_v15 = vld [vmem:[#allocation23_spill] sm:$0xff] }
 0x1cf   : > { %6077 = vrot.lane.b32.xlu1 %v6076_v39, %s6290_s21  ;;  %v3078_v51 = vsel %vm1856_vm7, %v2944_v13, %v3077_v21  ;;  %v3189_v31 = vsel %vm1854_vm6, %v2608_v19, %v3188_v42  ;;  %v3300_v14 = vsel %vm1852_vm5, %v10231_v24, %v3299_v34  ;;  %v1352_v39 = vcombine.high %v7371_v12, %v7371_v12 }
 0x1d0   : > { %v8246_v18 = vsel %vm1858_vm9, %v2948_v27, %v3078_v51  ;;  %v3190_v47 = vsel %vm1856_vm7, %v2612_v26, %v3189_v31  ;;  %v3301_v10 = vsel %vm1854_vm6, %v2944_v13, %v3300_v14  ;;  %v2088_v9 = vrot.slane %v7371_v12, %v6447_v45  ;;  %v10237_v51 = vld [vmem:[#allocation32_spill] sm:$0xff] }
 0x1d1   : > { %6102 = vrot.lane.b32.xlu0 %v6101_v49, %s6293_s23  ;;  %v6106_v23 = vpack.i.bf16 %v8246_v18, %v3072_v63  ;;  %v10234_v19 = vrot.slane %v10233_v15, %v6449_v46  ;;  %v3302_v35 = vsel %vm1856_vm7, %v2948_v27, %v3301_v10  ;;  %v2092_v24 = vrot.slane %v1352_v39, %v6447_v45 }
 0x1d2   : > { %v2194_v63 = vsel %vm9973_vm4, %v7394_v37, %v7410_v20  ;;  %v10235_v12 = vrot.slane %v10233_v15, %v6447_v45  ;;  %v8282_v21 = vrot.slane %v1352_v39, %v6449_v46  ;;  %v2409_v40 = vsel %vm9974_vm3, %v7394_v37, %v7413_v5 }
 0x1d3   : > { %v8263_v57 = vsel %vm1858_vm9, %v10234_v19, %v3190_v47  ;;  %6107 = vrot.lane.b32.xlu1 %v6106_v23, %s6294_s24  ;;  %v2195_v27 = vsel %vm1852_vm5, %v7397_v58, %v2194_v63  ;;  %v1393_v34 = vcombine.high %v7580_v22, %v7580_v22  ;;  %v2640_v5 = vrot.slane %v7580_v22, %v6449_v46  ;;  %v10239_v23 = vld [vmem:[#allocation27_spill] sm:$0xff] }
 0x1d4   : > { %v6111_v26 = vpack.i.bf16 %v8263_v57, %v7803_v56  ;;  %v8277_v13 = vsel %vm1858_vm9, %v10235_v12, %v3302_v35  ;;  %v2196_v20 = vsel %vm1854_vm6, %v7403_v28, %v2195_v27  ;;  %v2301_v56 = vsel %vm9974_vm3, %v10236_v25, %v7407_v17  ;;  %v10238_v17 = vld [vmem:[#allocation33_spill] sm:$0xff] }
 0x1d5   : > { %v6116_v11 = vpack.i.bf16 %v8277_v13, %v3296_v30  ;;  %v2197_v49 = vsel %vm1856_vm7, %v2088_v9, %v2196_v20  ;;  %v2302_v42 = vsel %vm9973_vm4, %v10237_v51, %v2301_v56  ;;  %v2410_v30 = vsel %vm9973_vm4, %v7397_v58, %v2409_v40  ;;  %v10243_v12 = vld [vmem:[#allocation25_spill] sm:$0xff]  ;;  %v10244_v56 = vld [vmem:[#allocation30_spill] sm:$0xff] }
 0x1d6   : > { %6112 = vrot.lane.b32.xlu0 %v6111_v26, %s6295_s25  ;;  %v2198_v31 = vsel %vm1858_vm9, %v2092_v24, %v2197_v49  ;;  %v2303_v14 = vsel %vm1852_vm5, %v10238_v17, %v2302_v42  ;;  %v2411_v37 = vsel %vm1852_vm5, %v7403_v28, %v2410_v30  ;;  %v2644_v10 = vrot.slane %v1393_v34, %v6449_v46 }
 0x1d7   : > { %6117 = vrot.lane.b32.xlu1 %v6116_v11, %s6296_s26  ;;  %v6121_v39 = vpack.i.bf16 %v2198_v31, %v8015_v7  ;;  %v2304_v58 = vsel %vm1854_vm6, %v10239_v23, %v2303_v14  ;;  %v2412_v47 = vsel %vm1854_vm6, %v2088_v9, %v2411_v37  ;;  %v2746_v28 = vsel %vm9973_vm4, %v7605_v61, %v7615_v36  ;;  %v10240_v7 = vld [vmem:[#allocation26_spill] sm:$0xff] }
 0x1d8   : > { %v2305_v15 = vsel %vm1856_vm7, %v8282_v21, %v2304_v58  ;;  %v2413_v19 = vsel %vm1856_vm7, %v2092_v24, %v2412_v47  ;;  %v1434_v35 = vcombine.high %v7728_v43, %v7728_v43  ;;  %v10241_v63 = vrot.slane %v10240_v7, %v6449_v46  ;;  %v10245_v37 = vld [vmem:[#allocation34_spill] sm:$0xff]  ;;  %v10247_v47 = vld [vmem:[#allocation51_spill] sm:$0xff] }
 0x1d9   : > { %v10242_v26 = vrot.slane %v10240_v7, %v6447_v45  ;;  %v2747_v27 = vsel %vm1852_vm5, %v10243_v12, %v2746_v28  ;;  %v2120_v36 = vrot.slane %v7728_v43, %v6447_v45  ;;  %v2201_v30 = vsel %vm9973_vm4, %v7757_v38, %v7773_v1 }
 0x1da   : > { %6122 = vrot.lane.b32.xlu0 %v6121_v39, %s6282_s28  ;;  %v8327_v9 = vsel %vm1858_vm9, %v10241_v63, %v2305_v15  ;;  %v2748_v40 = vsel %vm1854_vm6, %v10244_v56, %v2747_v27  ;;  %v2124_v49 = vrot.slane %v1434_v35, %v6447_v45  ;;  %v2976_v14 = vrot.slane %v7580_v22, %v6447_v45  ;;  %v10246_v39 = vld [vmem:[#allocation38_spill] sm:$0xff] }
 0x1db   : > { %v2414_v24 = vsel %vm1858_vm9, %v10242_v26, %v2413_v19  ;;  %v6126_v11 = vpack.i.bf16 %v8327_v9, %v8110_v53  ;;  %v2749_v42 = vsel %vm1856_vm7, %v2640_v5, %v2748_v40  ;;  %v2980_v43 = vrot.slane %v1393_v34, %v6447_v45  ;;  %v10248_v34 = vld [vmem:[#allocation36_spill] sm:$0xff]  ;;  %v10249_v19 = vld [vmem:[#allocation63_spill] sm:$0xff]  ;;  %v10250_v26 = vld [vmem:[#allocation37_spill] sm:$0xff] }
 0x1dc   : > { %v6131_v20 = vpack.i.bf16 %v2414_v24, %v8194_v52  ;;  %v8352_v53 = vsel %vm1858_vm9, %v2644_v10, %v2749_v42  ;;  %v2202_v52 = vsel %vm1852_vm5, %v7736_v62, %v2201_v30  ;;  %v3082_v58 = vsel %vm9973_vm4, %v10246_v39, %v10245_v37 }
 0x1dd   : > { %6127 = vrot.lane.b32.xlu1 %v6126_v11, %s6284_s30  ;;  %v2416_v1 = vsel %vm9974_vm3, %v7757_v38, %v10247_v47  ;;  %v6136_v22 = vpack.i.bf16 %v8352_v53, %v8228_v44  ;;  %v2203_v15 = vsel %vm1854_vm6, %v10248_v34, %v2202_v52  ;;  %v3083_v28 = vsel %vm1852_vm5, %v10249_v19, %v3082_v58  ;;  %v10251_v11 = vld [vmem:[#allocation67_spill] sm:$0xff]  ;;  %v10252_v47 = vld [vmem:[#allocation62_spill] sm:$0xff] }
 0x1de   : > { %6132 = vrot.lane.b32.xlu0 %v6131_v20, %s6283_s29  ;;  %v2417_v7 = vsel %vm9973_vm4, %v7736_v62, %v2416_v1  ;;  %v2204_v63 = vsel %vm1856_vm7, %v2120_v36, %v2203_v15  ;;  %v3084_v27 = vsel %vm1854_vm6, %v10250_v26, %v3083_v28  ;;  %v3193_v44 = vsel %vm9974_vm3, %v7605_v61, %v10251_v11 }
 0x1df   : > { %v2418_v38 = vsel %vm1852_vm5, %v10248_v34, %v2417_v7  ;;  %v2205_v20 = vsel %vm1858_vm9, %v2124_v49, %v2204_v63  ;;  %v3085_v40 = vsel %vm1856_vm7, %v2976_v14, %v3084_v27  ;;  %v3194_v62 = vsel %vm9973_vm4, %v10243_v12, %v3193_v44  ;;  %v10254_v34 = vld [vmem:[#allocation17_spill] sm:$0xff]  ;;  %v10256_v7 = vld [vmem:[#allocation66_spill] sm:$0xff] }
 0x1e0   : > { %v2419_v42 = vsel %vm1854_vm6, %v2120_v36, %v2418_v38  ;;  %v6161_v30 = vpack.i.bf16 %v2205_v20, %v2198_v31  ;;  %v8386_v52 = vsel %vm1858_vm9, %v2980_v43, %v3085_v40  ;;  %v3195_v61 = vsel %vm1852_vm5, %v10244_v56, %v3194_v62  ;;  %v10258_v40 = vld [vmem:[#allocation24_spill] sm:$0xff] }
 0x1e1   : > { %6137 = vrot.lane.b32.xlu1 %v6136_v22, %s6285_s12  ;;  %v2420_v37 = vsel %vm1856_vm7, %v2124_v49, %v2419_v42  ;;  %v6141_v58 = vpack.i.bf16 %v8386_v52, %v8246_v18  ;;  %v10253_v36 = vrot.slane %v10252_v47, %v6447_v45  ;;  %v3196_v12 = vsel %vm1854_vm6, %v2640_v5, %v3195_v61  ;;  %v10259_v42 = vld [vmem:[#allocation65_spill] sm:$0xff]  ;;  %v10262_v61 = vld [vmem:[#allocation50_spill] sm:$0xff] }
 0x1e2   : > { %v1516_v31 = vcombine.high %v7928_v6, %v7928_v6  ;;  %6162 = vrot.lane.b32.xlu0 %v6161_v30, %s6286_s13  ;;  %v3197_v56 = vsel %vm1856_vm7, %v2644_v10, %v3196_v12  ;;  %v2152_v18 = vrot.slane %v7928_v6, %v6447_v45  ;;  %v2208_v22 = vsel %vm9973_vm4, %v7961_v41, %v7982_v48  ;;  %v10257_v6 = vld [vmem:[#allocation47_spill] sm:$0xff]  ;;  %v10263_v12 = vld [vmem:[#allocation64_spill] sm:$0xff] }
 0x1e3   : > { %v8397_v1 = vsel %vm1858_vm9, %v10253_v36, %v2420_v37  ;;  %v10255_v15 = vrot.slane %v10254_v34, %v6449_v46  ;;  %v3305_v10 = vsel %vm9974_vm3, %v10246_v39, %v10256_v7  ;;  %v1813_v38 = vrot.slane %v1434_v35, %v6449_v46  ;;  %v10260_v35 = vld [vmem:[#allocation35_spill] sm:$0xff]  ;;  %v10268_v7 = vld [vmem:[#allocation29_spill] sm:$0xff] }
 0x1e4   : > { %v6171_v49 = vpack.i.bf16 %v8397_v1, %v2414_v24  ;;  %v2156_v28 = vrot.slane %v1516_v31, %v6447_v45  ;;  %v2209_v24 = vsel %vm1852_vm5, %v7936_v4, %v2208_v22  ;;  %v3306_v27 = vsel %vm9973_vm4, %v10249_v19, %v3305_v10  ;;  %v10261_v37 = vld [vmem:[#allocation59_spill] sm:$0xff] }
 0x1e5   : > { %v8414_v5 = vsel %vm1858_vm9, %v10255_v15, %v3197_v56  ;;  %6142 = vrot.lane.b32.xlu1 %v6141_v58, %s6288_s15  ;;  %v2210_v63 = vsel %vm1854_vm6, %v10257_v6, %v2209_v24  ;;  %v3307_v44 = vsel %vm1852_vm5, %v10250_v26, %v3306_v27  ;;  %v8434_v39 = vrot.slane %v1516_v31, %v6449_v46  ;;  %v10266_v15 = vld [vmem:[#allocation39_spill] sm:$0xff]  ;;  %v10269_v27 = vld [vmem:[#allocation54_spill] sm:$0xff] }
 0x1e6   : > { %v6146_v48 = vpack.i.bf16 %v8414_v5, %v8263_v57  ;;  %v2211_v11 = vsel %vm1856_vm7, %v2152_v18, %v2210_v63  ;;  %v2308_v57 = vsel %vm9974_vm3, %v10259_v42, %v10258_v40  ;;  %6172 = vrot.lane.b32.xlu0 %v6171_v49, %s6287_s14  ;;  %v3308_v19 = vsel %vm1854_vm6, %v2976_v14, %v3307_v44  ;;  %v10264_v49 = vld [vmem:[#allocation70_spill] sm:$0xff] }
 0x1e7   : > { %v8441_v62 = vsel %vm1858_vm9, %v2156_v28, %v2211_v11  ;;  %v2309_v30 = vsel %vm9973_vm4, %v10260_v35, %v2308_v57  ;;  %v2315_v26 = vsel %vm9974_vm3, %v10262_v61, %v10261_v37  ;;  %v3309_v36 = vsel %vm1856_vm7, %v2980_v43, %v3308_v19  ;;  %v10271_v57 = vld [vmem:[#allocation40_spill] sm:$0xff] }
 0x1e8   : > { %v6196_v58 = vpack.i.bf16 %v8441_v62, %v2205_v20  ;;  %v2310_v31 = vsel %vm1852_vm5, %v10263_v12, %v2309_v30  ;;  %v2316_v56 = vsel %vm9973_vm4, %v10264_v49, %v2315_v26  ;;  %v10265_v14 = vrot.slane %v10254_v34, %v6447_v45  ;;  %v10267_v20 = vld [vmem:[#allocation58_spill] sm:$0xff]  ;;  %v10272_v30 = vld [vmem:[#allocation55_spill] sm:$0xff] }
 0x1e9   : > { %6147 = vrot.lane.b32.xlu1 %v6146_v48, %s6289_s18  ;;  %v2311_v24 = vsel %vm1854_vm6, %v10266_v15, %v2310_v31  ;;  %v2317_v43 = vsel %vm1852_vm5, %v10267_v20, %v2316_v56  ;;  %v1890_v10 = vsel %vm9973_vm4, %v10236_v25, %v10268_v7  ;;  %v10270_v44 = vrot.slane %v10252_v47, %v6449_v46 }
 0x1ea   : > { %v8460_v22 = vsel %vm1858_vm9, %v10265_v14, %v3309_v36  ;;  %v2312_v48 = vsel %vm1856_vm7, %v1813_v38, %v2311_v24  ;;  %v2318_v34 = vsel %vm1854_vm6, %v10269_v27, %v2317_v43  ;;  %v1891_v11 = vsel %vm1852_vm5, %v10237_v51, %v1890_v10  ;;  %6197 = vrot.lane.b32.xlu0 %v6196_v58, %s6282_s28  ;;  %v10274_v58 = vld [vmem:[#allocation68_spill] sm:$0xff]  ;;  %v10275_v14 = vld [vmem:[#allocation43_spill] sm:$0xff] }
 0x1eb   : > { %v6151_v63 = vpack.i.bf16 %v8460_v22, %v8277_v13  ;;  %v2313_v40 = vsel %vm1858_vm9, %v10270_v44, %v2312_v48  ;;  %v2319_v25 = vsel %vm1856_vm7, %v8434_v39, %v2318_v34  ;;  %v1892_v13 = vsel %vm1854_vm6, %v10238_v17, %v1891_v11  ;;  %v10278_v48 = vld [vmem:[#allocation46_spill] sm:$0xff]  ;;  %v10279_v44 = vld [vmem:[#allocation45_spill] sm:$0xff] }
 0x1ec   : > { %v1897_v19 = vsel %vm9973_vm4, %v10259_v42, %v10271_v57  ;;  %v10273_v51 = vrot.slane %v10272_v30, %v6449_v46  ;;  %v1893_v47 = vsel %vm1856_vm7, %v10239_v23, %v1892_v13  ;;  %v2423_v17 = vsel %vm9974_vm3, %v7961_v41, %v10274_v58  ;;  %v10280_v13 = vld [vmem:[#allocation10_spill] sm:$0xff]  ;;  %v10281_v57 = vld [vmem:[#allocation4_spill] sm:$0xff] }
 0x1ed   : > { %v1898_v26 = vsel %vm1852_vm5, %v10260_v35, %v1897_v19  ;;  %6152 = vrot.lane.b32.xlu1 %v6151_v63, %s6290_s21  ;;  %v8505_v36 = vsel %vm1858_vm9, %v8282_v21, %v1893_v47  ;;  %v2424_v23 = vsel %vm9973_vm4, %v7936_v4, %v2423_v17  ;;  %v6166_v56 = vpack.i.bf16 %v2313_v40, %v8327_v9  ;;  %v10277_v63 = vld [vmem:[#allocation73_spill] sm:$0xff] }
 0x1ee   : > { %v8492_v37 = vsel %vm1858_vm9, %v10273_v51, %v2319_v25  ;;  %v1899_v31 = vsel %vm1854_vm6, %v10263_v12, %v1898_v26  ;;  %v2425_v41 = vsel %vm1852_vm5, %v10257_v6, %v2424_v23  ;;  %v1475_v24 = vcombine.high %v10275_v14, %v10275_v14  ;;  %v10284_v26 = vld [vmem:[#allocation5_spill] sm:$0xff] }
 0x1ef   : > { %v6201_v42 = vpack.i.bf16 %v8492_v37, %v2313_v40  ;;  %v1900_v35 = vsel %vm1856_vm7, %v10266_v15, %v1899_v31  ;;  %v2426_v12 = vsel %vm1854_vm6, %v2152_v18, %v2425_v41  ;;  %v8525_v4 = vcombine.high %v8039_v29, %v8039_v29  ;;  %v10285_v31 = vld [vmem:[#allocation6_spill] sm:$0xff]  ;;  %v8582_v41 = vpop.permute.xlu1 %5982 }
 0x1f0   : > { %v8520_v21 = vsel %vm1858_vm9, %v1813_v38, %v1900_v35  ;;  %v2672_v15 = vrot.slane %v10275_v14, %v6449_v46  ;;  %v2427_v6 = vsel %vm1856_vm7, %v2156_v28, %v2426_v12  ;;  %v2676_v43 = vrot.slane %v1475_v24, %v6449_v46 }
 0x1f1   : > { %6202 = vrot.lane.b32.xlu0 %v6201_v42, %s6284_s30  ;;  %v6156_v9 = vpack.i.bf16 %v8520_v21, %v8505_v36  ;;  %v2704_v38 = vrot.slane %v8039_v29, %v6449_v46  ;;  %v10276_v18 = vrot.slane %v10272_v30, %v6447_v45  ;;  %v2708_v10 = vrot.slane %v8525_v4, %v6449_v46  ;;  %v10282_v30 = vld [vmem:[#allocation56_spill] sm:$0xff] }
 0x1f2   : > { %v2753_v34 = vsel %vm9973_vm4, %v10278_v48, %v10277_v63  ;;  %v2760_v28 = vsel %vm9973_vm4, %v8066_v16, %v8076_v60  ;;  %v8559_v19 = vsel %vm9975_vm2, %v10281_v57, %v10280_v13  ;;  %v10283_v60 = vld [vmem:[#allocation84_spill] sm:$0xff]  ;;  %v8570_v58 = vrot.slane %v10275_v14, %v6447_v45 }
 0x1f3   : > { %v8539_v7 = vsel %vm1858_vm9, %v10276_v18, %v2427_v6  ;;  %6157 = vrot.lane.b32.xlu1 %v6156_v9, %s6291_s22  ;;  %v2754_v40 = vsel %vm1852_vm5, %v10279_v44, %v2753_v34  ;;  %v2761_v25 = vsel %vm1852_vm5, %v8043_v0, %v2760_v28  ;;  %v8580_v35 = vrot.slane %v1475_v24, %v6447_v45  ;;  %v10286_v6 = vld [vmem:[#allocation75_spill] sm:$0xff]  ;;  %v10287_v18 = vld [vmem:[#allocation48_spill] sm:$0xff] }
 0x1f4   : > { %v6206_v11 = vpack.i.bf16 %v8539_v7, %v8397_v1  ;;  %v2755_v51 = vsel %vm1854_vm6, %v10282_v30, %v2754_v40  ;;  %v2762_v47 = vsel %vm1854_vm6, %v10283_v60, %v2761_v25  ;;  %v1849_v1 = vsel %vm9974_vm3, %v10284_v26, %v8559_v19 }
 0x1f5   : > { %v2756_v17 = vsel %vm1856_vm7, %v2672_v15, %v2755_v51  ;;  %v2763_v42 = vsel %vm1856_vm7, %v2704_v38, %v2762_v47  ;;  %v8577_v23 = vsel %vm9973_vm4, %v10285_v31, %v1849_v1  ;;  %v3089_v63 = vsel %vm9973_vm4, %v10287_v18, %v10286_v6  ;;  %v10289_v51 = vld [vmem:[#allocation53_spill] sm:$0xff]  ;;  %v10290_v47 = vld [vmem:[#allocation44_spill] sm:$0xff] }
 0x1f6   : > { %6207 = vrot.lane.b32.xlu0 %v6206_v11, %s6283_s29  ;;  %v2757_v12 = vsel %vm1858_vm9, %v2676_v43, %v2756_v17  ;;  %v2764_v14 = vsel %vm1858_vm9, %v2708_v10, %v2763_v42  ;;  %v1853_v9 = vsel %vm1852_vm5, %v10280_v13, %v8577_v23  ;;  %v10288_v11 = vld [vmem:[#allocation72_spill] sm:$0xff]  ;;  %v3200_v1 = vsel %vm9974_vm3, %v10278_v48, %v10290_v47  ;;  %v8619_v48 = vpop.permute.xlu0 %5972 }
 0x1f7   : > { %6167 = vrot.lane.b32.xlu1 %v6166_v56, %s6292_s10  ;;  %v6211_v34 = vpack.i.bf16 %v2764_v14, %v2757_v12  ;;  %v6176_v24 = vpack.i.bf16 %v2757_v12, %v8352_v53  ;;  %v1855_v28 = vsel %vm1854_vm6, %v10281_v57, %v1853_v9  ;;  %v3090_v40 = vsel %vm1852_vm5, %v10288_v11, %v3089_v63  ;;  %v8637_v9 = vpop.permute.xlu1 %5987  ;;  %v10291_v63 = vld [vmem:[#allocation60_spill] sm:$0xff] }
 0x1f8   : > { %v1857_v25 = vsel %vm1856_vm7, %v10284_v26, %v1855_v28  ;;  %v3091_v13 = vsel %vm1854_vm6, %v10289_v51, %v3090_v40  ;;  %v3207_v53 = vsel %vm9974_vm3, %v8066_v16, %v8073_v8  ;;  %v3201_v26 = vsel %vm9973_vm4, %v10279_v44, %v3200_v1 }
 0x1f9   : > { %v8611_v56 = vsel %vm1858_vm9, %v10285_v31, %v1857_v25  ;;  %v3092_v57 = vsel %vm1856_vm7, %v8570_v58, %v3091_v13  ;;  %v3208_v17 = vsel %vm9973_vm4, %v8043_v0, %v3207_v53  ;;  %v3202_v8 = vsel %vm1852_vm5, %v10282_v30, %v3201_v26  ;;  %v10296_v53 = vld [vmem:[#allocation49_spill] sm:$0xff] }
 0x1fa   : > { %6212 = vrot.lane.b32.xlu0 %v6211_v34, %s6285_s12  ;;  %v6221_v42 = vpack.i.bf16 %v8611_v56, %v2764_v14  ;;  %v8624_v16 = vsel %vm1858_vm9, %v8580_v35, %v3092_v57  ;;  %v3209_v31 = vsel %vm1852_vm5, %v10283_v60, %v3208_v17  ;;  %v3203_v0 = vsel %vm1854_vm6, %v2672_v15, %v3202_v8  ;;  %v10292_v15 = vld [vmem:[#allocation69_spill] sm:$0xff] }
 0x1fb   : > { %6177 = vrot.lane.b32.xlu1 %v6176_v24, %s6293_s23  ;;  %v6181_v44 = vpack.i.bf16 %v8624_v16, %v8386_v52  ;;  %v3210_v12 = vsel %vm1854_vm6, %v2704_v38, %v3209_v31  ;;  %v1598_v14 = vcombine.high %v8125_v33, %v8125_v33  ;;  %v3204_v6 = vsel %vm1856_vm7, %v2676_v43, %v3203_v0  ;;  %v10294_v24 = vld [vmem:[#allocation61_spill] sm:$0xff]  ;;  %v8697_v31 = vpop.permute.xlu1 %5992  ;;  %v10298_v0 = vld [vmem:[#allocation86_spill] sm:$0xff] }
 0x1fc   : > { %v3211_v30 = vsel %vm1856_vm7, %v2708_v10, %v3210_v12  ;;  %v1904_v60 = vsel %vm9973_vm4, %v10262_v61, %v10291_v63  ;;  %v3376_v52 = vrot.slane %v8125_v33, %v6449_v46  ;;  %v10293_v38 = vrot.slane %v10292_v15, %v6449_v46  ;;  %v10297_v26 = vld [vmem:[#allocation81_spill] sm:$0xff]  ;;  %v10301_v63 = vld [vmem:[#allocation71_spill] sm:$0xff] }
 0x1fd   : > { %v10295_v28 = vrot.slane %v10294_v24, %v6449_v46  ;;  %v1905_v10 = vsel %vm1852_vm5, %v10264_v49, %v1904_v60  ;;  %v3380_v61 = vrot.slane %v1598_v14, %v6449_v46  ;;  %v3383_v47 = vsel %vm9973_vm4, %v8157_v50, %v8165_v54 }
 0x1fe   : > { %6222 = vrot.lane.b32.xlu0 %v6221_v42, %s6293_s23  ;;  %v3205_v34 = vsel %vm1858_vm9, %v10293_v38, %v3204_v6  ;;  %v1906_v13 = vsel %vm1854_vm6, %v10267_v20, %v1905_v10  ;;  %v3384_v49 = vsel %vm1852_vm5, %v8128_v3, %v3383_v47  ;;  %v3312_v57 = vsel %vm9974_vm3, %v10287_v18, %v10296_v53  ;;  %v8677_v20 = vpop.permute.xlu0 %5977 }
 0x1ff   : > { %v8655_v43 = vsel %vm1858_vm9, %v10295_v28, %v3211_v30  ;;  %v6186_v25 = vpack.i.bf16 %v3205_v34, %v8414_v5  ;;  %6182 = vrot.lane.b32.xlu1 %v6181_v44, %s6294_s24  ;;  %v1907_v1 = vsel %vm1856_vm7, %v10269_v27, %v1906_v13  ;;  %v3439_v5 = vrot.slane %v8125_v33, %v6447_v45  ;;  %v10300_v30 = vld [vmem:[#allocation85_spill] sm:$0xff] }
 0x200   : > { %v6226_v40 = vpack.i.bf16 %v8655_v43, %v3205_v34  ;;  %v8681_v54 = vsel %vm1858_vm9, %v8434_v39, %v1907_v1  ;;  %v3385_v17 = vsel %vm1854_vm6, %v10297_v26, %v3384_v49  ;;  %v3313_v27 = vsel %vm9973_vm4, %v10288_v11, %v3312_v57  ;;  %v10303_v34 = vld [vmem:[#allocation88_spill] sm:$0xff] }
 0x201   : > { %v3443_v42 = vrot.slane %v1598_v14, %v6447_v45  ;;  %v3386_v18 = vsel %vm1856_vm7, %v3376_v52, %v3385_v17  ;;  %v3314_v33 = vsel %vm1852_vm5, %v10289_v51, %v3313_v27  ;;  %v3446_v39 = vsel %vm9973_vm4, %v8161_v2, %v8168_v59  ;;  %v10299_v14 = vld [vmem:[#allocation78_spill] sm:$0xff]  ;;  %v8749_v17 = vpop.permute.xlu1 %5997 }
 0x202   : > { %6227 = vrot.lane.b32.xlu0 %v6226_v40, %s6289_s18  ;;  %v3040_v8 = vrot.slane %v8039_v29, %v6447_v45  ;;  %v3387_v11 = vsel %vm1858_vm9, %v3380_v61, %v3386_v18  ;;  %v3315_v44 = vsel %vm1854_vm6, %v8570_v58, %v3314_v33  ;;  %v3447_v12 = vsel %vm1852_vm5, %v10298_v0, %v3446_v39  ;;  %v8732_v47 = vpop.permute.xlu0 %6012 }
 0x203   : > { %v3044_v51 = vrot.slane %v8525_v4, %v6447_v45  ;;  %6187 = vrot.lane.b32.xlu1 %v6186_v25, %s6295_s25  ;;  %v6241_v59 = vpack.i.bf16 %v3387_v11, %v8681_v54  ;;  %v3316_v29 = vsel %vm1856_vm7, %v8580_v35, %v3315_v44  ;;  %v3448_v6 = vsel %vm1854_vm6, %v10299_v14, %v3447_v12  ;;  %v10304_v25 = vld [vmem:[#allocation83_spill] sm:$0xff] }
 0x204   : > { %v3096_v58 = vsel %vm9973_vm4, %v10301_v63, %v10300_v30  ;;  %v10302_v60 = vrot.slane %v10292_v15, %v6447_v45  ;;  %v3449_v4 = vsel %vm1856_vm7, %v3439_v5, %v3448_v6  ;;  %v3480_v35 = vsel %vm9974_vm3, %v8157_v50, %v8171_v32  ;;  %v10305_v32 = vld [vmem:[#allocation57_spill] sm:$0xff]  ;;  %v3776_v6 = vld [vmem:[%s9840_s3] sm:$0xff]  ;;  %v3777_v30 = vld [vmem:[%s9840_s3 + $0x8] sm:$0xff] }
 0x205   : > { %v3097_v28 = vsel %vm1852_vm5, %v10303_v34, %v3096_v58  ;;  %v3450_v40 = vsel %vm1858_vm9, %v3443_v42, %v3449_v4  ;;  %v3481_v13 = vsel %vm9973_vm4, %v8128_v3, %v3480_v35  ;;  %vm3767_vm2 = vcmask 982016  }
 0x206   : > { %v3317_v38 = vsel %vm1858_vm9, %v10302_v60, %v3316_v29  ;;  %6242 = vrot.lane.b32.xlu0 %v6241_v59, %s6291_s22  ;;  %v3098_v15 = vsel %vm1854_vm6, %v10304_v25, %v3097_v28  ;;  %v6246_v1 = vpack.i.bf16 %v3450_v40, %v8441_v62  ;;  %v3482_v50 = vsel %vm1852_vm5, %v10297_v26, %v3481_v13  ;;  %v8774_v29 = vpop.permute.xlu0 %6022  ;;  %v3778_v60 = vld [vmem:[%s9840_s3 + $0x10] sm:$0xff]  ;;  %v10312_v28 = vld [vmem:[#allocation15_spill] sm:$0xff] }
 0x207   : > { %v6191_v10 = vpack.i.bf16 %v3317_v38, %v8460_v22  ;;  %v3099_v49 = vsel %vm1856_vm7, %v3040_v8, %v3098_v15  ;;  %v3319_v22 = vsel %vm9974_vm3, %v10301_v63, %v10305_v32  ;;  %v3483_v57 = vsel %vm1854_vm6, %v3376_v52, %v3482_v50  ;;  %v10306_v52 = vld [vmem:[#allocation80_spill] sm:$0xff] }
 0x208   : > { %v3100_v53 = vsel %vm1858_vm9, %v3044_v51, %v3099_v49  ;;  %v3320_v3 = vsel %vm9973_vm4, %v10303_v34, %v3319_v22  ;;  %v3515_v62 = vsel %vm9974_vm3, %v8161_v2, %v8174_v55  ;;  %v3484_v27 = vsel %vm1856_vm7, %v3380_v61, %v3483_v57  ;;  %v3782_v32 = vld [vmem:[%s9840_s3 + $0x30] sm:$0xff]  ;;  %v3783_v22 = vld [vmem:[%s9840_s3 + $0x38] sm:$0xff] }
 0x209   : > { %6192 = vrot.lane.b32.xlu1 %v6191_v10, %s6296_s26  ;;  %v6216_v26 = vpack.i.bf16 %v3100_v53, %v8624_v16  ;;  %v3321_v18 = vsel %vm1852_vm5, %v10304_v25, %v3320_v3  ;;  %v3516_v33 = vsel %vm9973_vm4, %v10298_v0, %v3515_v62  ;;  %v10307_v39 = vrot.slane %v10306_v52, %v6449_v46  ;;  %v3780_v10 = vld [vmem:[%s9840_s3 + $0x20] sm:$0xff] }
 0x20a   : > { %6247 = vrot.lane.b32.xlu0 %v6246_v1, %s6286_s13  ;;  %v3322_v2 = vsel %vm1854_vm6, %v3040_v8, %v3321_v18  ;;  %v3517_v55 = vsel %vm1852_vm5, %v10299_v14, %v3516_v33  ;;  %v10308_v0 = vrot.slane %v10294_v24, %v6447_v45  ;;  %v10309_v14 = vrot.slane %v10306_v52, %v6447_v45  ;;  %v10310_v24 = vld [vmem:[#allocation14_spill] sm:$0xff]  ;;  %v8793_v63 = vpop.permute.xlu0 %6047  ;;  %v3785_v52 = vld [vmem:[%s9840_s3 + $0x48] sm:$0xff]  ;;  %s5558_s13 = sshll.u32 %s10425_s20, 2 }
 0x20b   : > { %v3485_v11 = vsel %vm1858_vm9, %v10307_v39, %v3484_v27  ;;  %v3323_v61 = vsel %vm1856_vm7, %v3044_v51, %v3322_v2  ;;  %v3518_v44 = vsel %vm1854_vm6, %v3439_v5, %v3517_v55  ;;  %v8782_v51 = vpop.permute.xlu1 %6002  ;;  %v5818_v34 = vpack.c.bf16 %v3777_v30, %v3776_v6  ;;  %v10315_v3 = vld [vmem:[#allocation22_spill] sm:$0xff]  ;;  %v10316_v39 = vld [vmem:[#allocation12_spill] sm:$0xff]  ;;  %s388_s16 = scalar_lea.vmem %s9848_s11, %s5558_s13 }
 0x20c   : > { %v6251_v16 = vpack.i.bf16 %v3485_v11, %v8492_v37  ;;  %v3324_v12 = vsel %vm1858_vm9, %v10308_v0, %v3323_v61  ;;  %v3519_v59 = vsel %vm1856_vm7, %v3443_v42, %v3518_v44  ;;  %v6236_v42 = vpack.i.bf16 %v10310_v24, %v3100_v53  ;;  %v10313_v53 = vld [vmem:[#allocation11_spill] sm:$0xff] }
 0x20d   : > { %6217 = vrot.lane.b32.xlu1 %v6216_v26, %s6288_s15  ;;  %v6231_v8 = vpack.i.bf16 %v3324_v12, %v3317_v38  ;;  %v3520_v37 = vsel %vm1858_vm9, %v10309_v14, %v3519_v59  ;;  %v3779_v38 = vld [vmem:[%s9840_s3 + $0x18] sm:$0xff]  ;;  %v6266_v35 = vpack.i.bf16 %v10312_v28, %v3324_v12  ;;  %5819 = vmatprep.subr.bf16.mxu1 %v5818_v34  ;;  %v5975_v15 = vunpack.i.h.bf16 %v8619_v48 }
 0x20e   : > { %6252 = vrot.lane.b32.xlu0 %v6251_v16, %s6292_s10  ;;  %v6256_v5 = vpack.i.bf16 %v3520_v37, %v8539_v7  ;;  %v10311_v7 = vld [vmem:[#allocation16_spill] sm:$0xff]  ;;  %v5822_v40 = vpack.c.bf16 %v3779_v38, %v3778_v60  ;;  %5821 = vmatpush3.bf16.msra.mxu1 %v5818_v34  ;;  %v8815_v25 = vpop.permute.xlu0 %6052  ;;  %v5974_v1 = vunpack.i.l.bf16 %v8619_v48  ;;  %v5980_v49 = vunpack.i.h.bf16 %v8677_v20  ;;  %v10314_v48 = vld [vmem:[#allocation13_spill] sm:$0xff] }
 0x20f   : > { %v6261_v58 = vpack.i.bf16 %v10311_v7, %v8655_v43  ;;  %v8804_v4 = vpop.permute.xlu1 %6007  ;;  %v3781_v43 = vld [vmem:[%s9840_s3 + $0x28] sm:$0xff]  ;;  %v5979_v57 = vunpack.i.l.bf16 %v8677_v20  ;;  %v3643_v62 = vsel %vm3641_vm10, %v10315_v3, %v5975_v15  ;;  %v5830_v26 = vpack.c.bf16 %v3783_v22, %v3782_v32  ;;  %v3784_v20 = vld [vmem:[%s9840_s3 + $0x40] sm:$0xff]  ;;  %v3787_v14 = vld [vmem:[%s9840_s3 + $0x58] sm:$0xff] }
 0x210   : > { %5823 = vmatprep.subr.bf16.mxu1 %v5822_v40  ;;  %v5826_v13 = vpack.c.bf16 %v3781_v43, %v3780_v10  ;;  %v3642_v27 = vsel %vm3641_vm10, %v8611_v56, %v5974_v1  ;;  %v3652_v18 = vsel %vm3650_vm11, %v3643_v62, %v5980_v49  ;;  %v5985_v11 = vunpack.i.h.bf16 %v8582_v41  ;;  %v3789_v34 = vld [vmem:[%s9840_s3 + $0x68] sm:$0xff]  ;;  %v3790_v22 = vld [vmem:[%s9840_s3 + $0x70] sm:$0xff] }
 0x211   : > { %6232 = vrot.lane.b32.xlu1 %v6231_v8, %s6290_s21  ;;  %v3651_v56 = vsel %vm3650_vm11, %v3642_v27, %v5979_v57  ;;  %v5984_v2 = vunpack.i.l.bf16 %v8582_v41  ;;  %v5990_v55 = vunpack.i.h.bf16 %v8637_v9  ;;  %v5989_v44 = vunpack.i.l.bf16 %v8637_v9  ;;  %v3786_v41 = vld [vmem:[%s9840_s3 + $0x50] sm:$0xff] }
 0x212   : > { %6257 = vrot.lane.b32.xlu0 %v6256_v5, %s6287_s14  ;;  %5825 = vmatpush3.bf16.msra.mxu1 %v5822_v40  ;;  %v8838_v33 = vpop.permute.xlu0 %6057  ;;  %v3661_v61 = vsel %vm3659_vm12, %v3652_v18, %v5985_v11  ;;  %v5834_v0 = vpack.c.bf16 %v3785_v52, %v3784_v20  ;;  %v5995_v59 = vunpack.i.h.bf16 %v8697_v31  ;;  %v5994_v8 = vunpack.i.l.bf16 %v8697_v31 }
 0x213   : > { %v8820_v50 = vpop.permute.xlu1 %6017  ;;  %5827 = vmatprep.subr.bf16.mxu1 %v5826_v13  ;;  %v3660_v12 = vsel %vm3659_vm12, %v3651_v56, %v5984_v2  ;;  %v6000_v9 = vunpack.i.h.bf16 %v8749_v17  ;;  %v5999_v37 = vunpack.i.l.bf16 %v8749_v17  ;;  %v3670_v5 = vsel %vm3668_vm13, %v3661_v61, %v5990_v55 }
 0x214   : > { %v6005_v31 = vunpack.i.h.bf16 %v8782_v51  ;;  %v6004_v24 = vunpack.i.l.bf16 %v8782_v51  ;;  %v3669_v6 = vsel %vm3668_vm13, %v3660_v12, %v5989_v44  ;;  %v6009_v30 = vunpack.i.l.bf16 %v8804_v4  ;;  %v3788_v51 = vld [vmem:[%s9840_s3 + $0x60] sm:$0xff] }
 0x215   : > { %6237 = vrot.lane.b32.xlu1 %v6236_v42, %s6294_s24  ;;  %v5838_v7 = vpack.c.bf16 %v3787_v14, %v3786_v41  ;;  %v3679_v17 = vsel %vm3677_vm14, %v3670_v5, %v5995_v59  ;;  %v6010_v60 = vunpack.i.h.bf16 %v8804_v4  ;;  %vm3713_vm5 = vcmask 588800  }
 0x216   : > { %6262 = vrot.lane.b32.xlu0 %v6261_v58, %s6295_s25  ;;  %5829 = vmatpush3.bf16.msra.mxu1 %v5826_v13  ;;  %v8872_v42 = vpop.permute.xlu0 %6062  ;;  %v3678_v58 = vsel %vm3677_vm14, %v3669_v6, %v5994_v8  ;;  %v6019_v40 = vunpack.i.l.bf16 %v8820_v50  ;;  %v5842_v15 = vpack.c.bf16 %v3789_v34, %v3788_v51  ;;  %v6014_v13 = vunpack.i.l.bf16 %v8732_v47 }
 0x217   : > { %v8852_v16 = vpop.permute.xlu1 %6027  ;;  %5831 = vmatprep.subr.bf16.mxu1 %v5830_v26  ;;  %v3687_v28 = vsel %vm3686_vm15, %v3678_v58, %v5999_v37  ;;  %vm3722_vm6 = vcmask 654336   ;;  %v6020_v49 = vunpack.i.h.bf16 %v8820_v50  ;;  %v6015_v57 = vunpack.i.h.bf16 %v8732_v47 }
 0x218   : > { %v3696_v10 = vsel %vm3695_vm0, %v3687_v28, %v6004_v24  ;;  %v6025_v50 = vunpack.i.h.bf16 %v8774_v29  ;;  %vm3731_vm7 = vcmask 719872   ;;  %v6030_v52 = vunpack.i.h.bf16 %v8852_v16  ;;  %v10317_v28 = vld [vmem:[#allocation52_spill] sm:$0xff] }
 0x219   : > { %6267 = vrot.lane.b32.xlu1 %v6266_v35, %s6296_s26  ;;  %v3688_v35 = vsel %vm3686_vm15, %v3679_v17, %v6000_v9  ;;  %v3705_v43 = vsel %vm3704_vm1, %v3696_v10, %v6009_v30  ;;  %v6024_v47 = vunpack.i.l.bf16 %v8774_v29  ;;  %vm3740_vm9 = vcmask 785408   ;;  %v10318_v10 = vld [vmem:[#allocation41_spill] sm:$0xff] }
 0x21a   : > { %4294 = vrot.lane.b32.xlu0 %v10313_v53, %s6284_s30  ;;  %5833 = vmatpush3.bf16.msra.mxu1 %v5830_v26  ;;  %v3697_v4 = vsel %vm3695_vm0, %v3688_v35, %v6005_v31  ;;  %v8896_v32 = vpop.permute.xlu0 %6072  ;;  %v3714_v3 = vsel %vm3713_vm5, %v3705_v43, %v6014_v13  ;;  %vm3749_vm4 = vcmask 850944   ;;  %vm3758_vm3 = vcmask 916480  }
 0x21b   : > { %5835 = vmatprep.subr.bf16.mxu1 %v5834_v0  ;;  %v6033_v38 = vpop.permute.xlu1 %6032  ;;  %v3706_v1 = vsel %vm3704_vm1, %v3697_v4, %v6010_v60  ;;  %v3723_v27 = vsel %vm3722_vm6, %v3714_v3, %v6019_v40  ;;  %v6050_v6 = vunpack.i.h.bf16 %v8793_v63  ;;  %v6049_v30 = vunpack.i.l.bf16 %v8793_v63 }
 0x21c   : > { %v3715_v26 = vsel %vm3713_vm5, %v3706_v1, %v6015_v57  ;;  %v6035_v11 = vunpack.i.h.bf16 %v6033_v38  ;;  %v6034_v56 = vunpack.i.l.bf16 %v6033_v38  ;;  %v3732_v44 = vsel %vm3731_vm7, %v3723_v27, %v6024_v47 }
 0x21d   : > { %4327 = vrot.lane.b32.xlu1 %v10314_v48, %s6285_s12  ;;  %v3724_v20 = vsel %vm3722_vm6, %v3715_v26, %v6020_v49  ;;  %v6054_v58 = vunpack.i.l.bf16 %v8815_v25  ;;  %v6060_v60 = vunpack.i.h.bf16 %v8838_v33  ;;  %v6059_v38 = vunpack.i.l.bf16 %v8838_v33 }
 0x21e   : > { %4360 = vrot.lane.b32.xlu0 %v10316_v39, %s6289_s18  ;;  %5837 = vmatpush3.bf16.msra.mxu1 %v5834_v0  ;;  %v8915_v2 = vpop.permute.xlu0 %6082  ;;  %v3733_v0 = vsel %vm3731_vm7, %v3724_v20, %v6025_v50  ;;  %v6065_v51 = vunpack.i.h.bf16 %v8872_v42  ;;  %v6064_v34 = vunpack.i.l.bf16 %v8872_v42  ;;  %v3645_v35 = vsel %vm3641_vm10, %v10317_v28, %v6050_v6 }
 0x21f   : > { %5839 = vmatprep.subr.bf16.mxu1 %v5838_v7  ;;  %v6038_v62 = vpop.permute.xlu1 %6037  ;;  %v3644_v4 = vsel %vm3641_vm10, %v10318_v10, %v6049_v30  ;;  %v6075_v57 = vunpack.i.h.bf16 %v8896_v32  ;;  %v6074_v3 = vunpack.i.l.bf16 %v8896_v32  ;;  %v6085_v50 = vunpack.i.h.bf16 %v8915_v2 }
 0x220   : > { %v6040_v55 = vunpack.i.h.bf16 %v6038_v62  ;;  %v6039_v61 = vunpack.i.l.bf16 %v6038_v62  ;;  %v3653_v63 = vsel %vm3650_vm11, %v3644_v4, %v6054_v58  ;;  %v6084_v26 = vunpack.i.l.bf16 %v8915_v2 }
 0x221   : > { %v3662_v40 = vsel %vm3659_vm12, %v3653_v63, %v6059_v38 }
 0x222   : > { %4690 = vrot.lane.b32.xlu0 %v8577_v23, %s6291_s22  ;;  %5841 = vmatpush3.bf16.msra.mxu1 %v5838_v7  ;;  %v6055_v7 = vunpack.i.h.bf16 %v8815_v25  ;;  %v3671_v1 = vsel %vm3668_vm13, %v3662_v40, %v6064_v34 }
 0x223   : > { %5843 = vmatprep.subr.bf16.mxu1 %v5842_v15 }
 0x224   : > { %v6088_v24 = vpop.permute.xlu0 %6087  ;;  %v3654_v43 = vsel %vm3650_vm11, %v3645_v35, %v6055_v7 }
 0x225   : > { %v6090_v20 = vunpack.i.h.bf16 %v6088_v24 }
 0x226   : > { %4693 = vrot.lane.b32.xlu0 %v10313_v53, %s6292_s10  ;;  %v3791_v53 = vld [vmem:[%s9840_s3 + $0x78] sm:$0xff]  ;;  %5845 = vmatpush3.bf16.msra.mxu1 %v5842_v15  ;;  %v3663_v15 = vsel %vm3659_vm12, %v3654_v43, %v6060_v60 }
 0x227   : > { %v5846_v18 = vpack.c.bf16 %v3791_v53, %v3790_v22  ;;  %v3672_v42 = vsel %vm3668_vm13, %v3663_v15, %v6065_v51 }
 0x229   : > { %5847 = vmatprep.subr.bf16.mxu1 %v5846_v18 }
 0x22a   : > { %4696 = vrot.lane.b32.xlu0 %v10314_v48, %s6293_s23  ;;  %v6029_v48 = vunpack.i.l.bf16 %v8852_v16  ;;  %v3742_v16 = vsel %vm3740_vm9, %v3733_v0, %v6030_v52  ;;  %5849 = vmatpush3.bf16.msra.mxu1 %v5846_v18  ;;  %v6089_v52 = vunpack.i.l.bf16 %v6088_v24 }
 0x22b   : > { %v3751_v14 = vsel %vm3749_vm4, %v3742_v16, %v6035_v11 }
 0x22c   : > { %v3741_v12 = vsel %vm3740_vm9, %v3732_v44, %v6029_v48  ;;  %v3760_v37 = vsel %vm3758_vm3, %v3751_v14, %v6040_v55 }
 0x22d   : > { %v3750_v41 = vsel %vm3749_vm4, %v3741_v12, %v6034_v56 }
 0x22e   : > { %v6043_v29 = vpop.permute.xlu1 %6042  ;;  %v3759_v9 = vsel %vm3758_vm3, %v3750_v41, %v6039_v61 }
 0x22f   : > { %v6045_v59 = vunpack.i.h.bf16 %v6043_v29  ;;  %v6044_v8 = vunpack.i.l.bf16 %v6043_v29 }
 0x231   : > { %v3768_v5 = vsel %vm3767_vm2, %v3759_v9, %v6044_v8  ;;  %v3769_v31 = vsel %vm3767_vm2, %v3760_v37, %v6045_v59 }
 0x232   : > { %5806 = vmatprep.mubr.f32.mxu1 %v3768_v5 }
 0x233   : > { %5807 = vmatmul.mubr.f32.vlgmr.msra.gmra.mrb[0].mxu1 %v3769_v31  ;;  %v6093_v17 = vpop.permute.xlu0 %6092 }
 0x234   : > { %v6095_v56 = vunpack.i.h.bf16 %v6093_v17  ;;  %v6094_v55 = vunpack.i.l.bf16 %v6093_v17 }
 0x23b   : > { %v6068_v25 = vpop.permute.xlu1 %6067 }
 0x23c   : > { %v6070_v33 = vunpack.i.h.bf16 %v6068_v25  ;;  %v6069_v13 = vunpack.i.l.bf16 %v6068_v25 }
 0x23e   : > { %v3681_v22 = vsel %vm3677_vm14, %v3672_v42, %v6070_v33  ;;  %v3680_v53 = vsel %vm3677_vm14, %v3671_v1, %v6069_v13 }
 0x23f   : > { %v6098_v49 = vpop.permute.xlu0 %6097  ;;  %v3689_v48 = vsel %vm3686_vm15, %v3680_v53, %v6074_v3  ;;  %v3690_v47 = vsel %vm3686_vm15, %v3681_v22, %v6075_v57 }
 0x240   : > { %v6100_v44 = vunpack.i.h.bf16 %v6098_v49  ;;  %v6099_v0 = vunpack.i.l.bf16 %v6098_v49 }
 0x241   : > { %v6078_v62 = vpop.permute.xlu1 %6077 }
 0x242   : > { %v6080_v27 = vunpack.i.h.bf16 %v6078_v62  ;;  %v6079_v18 = vunpack.i.l.bf16 %v6078_v62 }
 0x243   : > { %v6103_v11 = vpop.permute.xlu0 %6102 }
 0x244   : > { %v3698_v61 = vsel %vm3695_vm0, %v3689_v48, %v6079_v18  ;;  %v3699_v32 = vsel %vm3695_vm0, %v3690_v47, %v6080_v27  ;;  %v6105_v8 = vunpack.i.h.bf16 %v6103_v11  ;;  %v6104_v41 = vunpack.i.l.bf16 %v6103_v11  ;;  %v10319_v18 = vld [vmem:[#allocation42_spill] sm:$0xff] }
 0x245   : > { %v3707_v12 = vsel %vm3704_vm1, %v3698_v61, %v6084_v26  ;;  %v3708_v2 = vsel %vm3704_vm1, %v3699_v32, %v6085_v50  ;;  %v6108_v16 = vpop.permute.xlu1 %6107 }
 0x246   : > { %v3716_v29 = vsel %vm3713_vm5, %v3707_v12, %v6089_v52  ;;  %v3717_v59 = vsel %vm3713_vm5, %v3708_v2, %v6090_v20  ;;  %v6110_v37 = vunpack.i.h.bf16 %v6108_v16  ;;  %v6109_v5 = vunpack.i.l.bf16 %v6108_v16 }
 0x247   : > { %v3725_v14 = vsel %vm3722_vm6, %v3716_v29, %v6094_v55  ;;  %v3726_v9 = vsel %vm3722_vm6, %v3717_v59, %v6095_v56 }
 0x248   : > { %v6113_v31 = vpop.permute.xlu0 %6112  ;;  %v3734_v24 = vsel %vm3731_vm7, %v3725_v14, %v6099_v0  ;;  %v3735_v6 = vsel %vm3731_vm7, %v3726_v9, %v6100_v44 }
 0x249   : > { %v6115_v30 = vunpack.i.h.bf16 %v6113_v31  ;;  %v6114_v7 = vunpack.i.l.bf16 %v6113_v31  ;;  %v3743_v58 = vsel %vm3740_vm9, %v3734_v24, %v6104_v41  ;;  %v3744_v17 = vsel %vm3740_vm9, %v3735_v6, %v6105_v8  ;;  %v6118_v60 = vpop.permute.xlu1 %6117 }
 0x24a   : > { %v6120_v38 = vunpack.i.h.bf16 %v6118_v60  ;;  %v6119_v51 = vunpack.i.l.bf16 %v6118_v60  ;;  %v3752_v34 = vsel %vm3749_vm4, %v3743_v58, %v6109_v5  ;;  %v3753_v28 = vsel %vm3749_vm4, %v3744_v17, %v6110_v37 }
 0x24b   : > { %v3761_v10 = vsel %vm3758_vm3, %v3752_v34, %v6114_v7  ;;  %v3762_v4 = vsel %vm3758_vm3, %v3753_v28, %v6115_v30 }
 0x24c   : > { %v6123_v35 = vpop.permute.xlu0 %6122  ;;  %v3770_v63 = vsel %vm3767_vm2, %v3761_v10, %v6119_v51  ;;  %v3771_v43 = vsel %vm3767_vm2, %v3762_v4, %v6120_v38 }
 0x24d   : > { %5809 = vmatprep.mubr.f32.mxu1 %v3770_v63  ;;  %v6125_v53 = vunpack.i.h.bf16 %v6123_v35  ;;  %v6124_v57 = vunpack.i.l.bf16 %v6123_v35 }
 0x24e   : > { %5810 = vmatmul.mubr.f32.gmra.mrb[2].mxu1 %v3771_v43 }
 0x24f   : > { %v6128_v25 = vpop.permute.xlu1 %6127  ;;  %v3647_v27 = vsel %vm3641_vm10, %v8505_v36, %v6125_v53  ;;  %v3646_v20 = vsel %vm3641_vm10, %v10319_v18, %v6124_v57 }
 0x250   : > { %v6133_v40 = vpop.permute.xlu0 %6132  ;;  %v6130_v62 = vunpack.i.h.bf16 %v6128_v25  ;;  %v6129_v50 = vunpack.i.l.bf16 %v6128_v25 }
 0x251   : > { %v6135_v52 = vunpack.i.h.bf16 %v6133_v40  ;;  %v6134_v48 = vunpack.i.l.bf16 %v6133_v40 }
 0x252   : > { %v3656_v11 = vsel %vm3650_vm11, %v3647_v27, %v6130_v62  ;;  %v3655_v56 = vsel %vm3650_vm11, %v3646_v20, %v6129_v50 }
 0x253   : > { %v6138_v15 = vpop.permute.xlu1 %6137  ;;  %v3664_v44 = vsel %vm3659_vm12, %v3655_v56, %v6134_v48  ;;  %v3665_v0 = vsel %vm3659_vm12, %v3656_v11, %v6135_v52 }
 0x254   : > { %v6163_v33 = vpop.permute.xlu0 %6162  ;;  %v6140_v55 = vunpack.i.h.bf16 %v6138_v15  ;;  %v6139_v61 = vunpack.i.l.bf16 %v6138_v15 }
 0x255   : > { %v6165_v35 = vunpack.i.h.bf16 %v6163_v33  ;;  %v6164_v10 = vunpack.i.l.bf16 %v6163_v33 }
 0x256   : > { %v3673_v41 = vsel %vm3668_vm13, %v3664_v44, %v6139_v61  ;;  %v3674_v14 = vsel %vm3668_vm13, %v3665_v0, %v6140_v55 }
 0x257   : > { %v6143_v13 = vpop.permute.xlu1 %6142 }
 0x258   : > { %v8971_v1 = vpop.permute.xlu0 %6172  ;;  %v6145_v12 = vunpack.i.h.bf16 %v6143_v13  ;;  %v6144_v36 = vunpack.i.l.bf16 %v6143_v13 }
 0x259   : > { %v6174_v53 = vunpack.i.l.bf16 %v8971_v1 }
 0x25a   : > { %v3682_v31 = vsel %vm3677_vm14, %v3673_v41, %v6144_v36  ;;  %v3683_v24 = vsel %vm3677_vm14, %v3674_v14, %v6145_v12 }
 0x25b   : > { %v6148_v42 = vpop.permute.xlu1 %6147 }
 0x25c   : > { %v8973_v49 = vpop.permute.xlu0 %6197  ;;  %v6150_v2 = vunpack.i.h.bf16 %v6148_v42  ;;  %v6149_v16 = vunpack.i.l.bf16 %v6148_v42 }
 0x25d   : > { %v6200_v33 = vunpack.i.h.bf16 %v8973_v49  ;;  %v6199_v50 = vunpack.i.l.bf16 %v8973_v49 }
 0x25e   : > { %v3691_v6 = vsel %vm3686_vm15, %v3682_v31, %v6149_v16  ;;  %v3692_v30 = vsel %vm3686_vm15, %v3683_v24, %v6150_v2 }
 0x25f   : > { %v6153_v22 = vpop.permute.xlu1 %6152 }
 0x260   : > { %v6155_v59 = vunpack.i.h.bf16 %v6153_v22  ;;  %v6154_v8 = vunpack.i.l.bf16 %v6153_v22  ;;  %v6175_v22 = vunpack.i.h.bf16 %v8971_v1 }
 0x262   : > { %v3700_v58 = vsel %vm3695_vm0, %v3691_v6, %v6154_v8  ;;  %v3701_v17 = vsel %vm3695_vm0, %v3692_v30, %v6155_v59  ;;  %v3649_v59 = vsel %vm3641_vm10, %v8681_v54, %v6200_v33  ;;  %v3648_v8 = vsel %vm3641_vm10, %v8520_v21, %v6199_v50 }
 0x263   : > { %v8975_v3 = vpop.permute.xlu0 %6202 }
 0x264   : > { %v6205_v20 = vunpack.i.h.bf16 %v8975_v3  ;;  %v6204_v52 = vunpack.i.l.bf16 %v8975_v3 }
 0x265   : > { %v6158_v26 = vpop.permute.xlu1 %6157 }
 0x266   : > { %v6160_v9 = vunpack.i.h.bf16 %v6158_v26  ;;  %v6159_v37 = vunpack.i.l.bf16 %v6158_v26 }
 0x268   : > { %v8981_v47 = vpop.permute.xlu0 %6207  ;;  %v3709_v60 = vsel %vm3704_vm1, %v3700_v58, %v6159_v37  ;;  %v3710_v38 = vsel %vm3704_vm1, %v3701_v17, %v6160_v9  ;;  %v3657_v9 = vsel %vm3650_vm11, %v3648_v8, %v6204_v52  ;;  %v3658_v37 = vsel %vm3650_vm11, %v3649_v59, %v6205_v20 }
 0x269   : > { %v6168_v32 = vpop.permute.xlu1 %6167  ;;  %v3718_v63 = vsel %vm3713_vm5, %v3709_v60, %v6164_v10  ;;  %v3719_v43 = vsel %vm3713_vm5, %v3710_v38, %v6165_v35  ;;  %v6210_v56 = vunpack.i.h.bf16 %v8981_v47  ;;  %v6209_v1 = vunpack.i.l.bf16 %v8981_v47 }
 0x26a   : > { %v6170_v51 = vunpack.i.h.bf16 %v6168_v32  ;;  %v6169_v34 = vunpack.i.l.bf16 %v6168_v32 }
 0x26b   : > { %v3667_v31 = vsel %vm3659_vm12, %v3658_v37, %v6210_v56 }
 0x26c   : > { %v8987_v29 = vpop.permute.xlu0 %6212  ;;  %v3727_v25 = vsel %vm3722_vm6, %v3718_v63, %v6169_v34  ;;  %v3728_v40 = vsel %vm3722_vm6, %v3719_v43, %v6170_v51 }
 0x26d   : > { %v6178_v5 = vpop.permute.xlu1 %6177  ;;  %v3736_v48 = vsel %vm3731_vm7, %v3727_v25, %v6174_v53  ;;  %v3737_v11 = vsel %vm3731_vm7, %v3728_v40, %v6175_v22  ;;  %v6215_v3 = vunpack.i.h.bf16 %v8987_v29  ;;  %v6214_v36 = vunpack.i.l.bf16 %v8987_v29 }
 0x26e   : > { %v6180_v15 = vunpack.i.h.bf16 %v6178_v5  ;;  %v6179_v13 = vunpack.i.l.bf16 %v6178_v5  ;;  %v3666_v5 = vsel %vm3659_vm12, %v3657_v9, %v6209_v1 }
 0x26f   : > { %v3675_v54 = vsel %vm3668_vm13, %v3666_v5, %v6214_v36  ;;  %v3676_v21 = vsel %vm3668_vm13, %v3667_v31, %v6215_v3 }
 0x270   : > { %v8995_v7 = vpop.permute.xlu0 %6222  ;;  %v3745_v55 = vsel %vm3740_vm9, %v3736_v48, %v6179_v13  ;;  %v3746_v61 = vsel %vm3740_vm9, %v3737_v11, %v6180_v15 }
 0x271   : > { %v6183_v28 = vpop.permute.xlu1 %6182 }
 0x272   : > { %v6185_v57 = vunpack.i.h.bf16 %v6183_v28  ;;  %v6184_v62 = vunpack.i.l.bf16 %v6183_v28 }
 0x274   : > { %v9001_v4 = vpop.permute.xlu0 %6227  ;;  %v3754_v0 = vsel %vm3749_vm4, %v3745_v55, %v6184_v62  ;;  %v3755_v12 = vsel %vm3749_vm4, %v3746_v61, %v6185_v57 }
 0x275   : > { %v6188_v42 = vpop.permute.xlu1 %6187  ;;  %v6230_v60 = vunpack.i.h.bf16 %v9001_v4  ;;  %v6229_v38 = vunpack.i.l.bf16 %v9001_v4 }
 0x276   : > { %v6190_v26 = vunpack.i.h.bf16 %v6188_v42  ;;  %v6189_v27 = vunpack.i.l.bf16 %v6188_v42 }
 0x278   : > { %v6243_v18 = vpop.permute.xlu0 %6242  ;;  %v3763_v16 = vsel %vm3758_vm3, %v3754_v0, %v6189_v27  ;;  %v3764_v47 = vsel %vm3758_vm3, %v3755_v12, %v6190_v26  ;;  %v6225_v26 = vunpack.i.h.bf16 %v8995_v7  ;;  %v6224_v27 = vunpack.i.l.bf16 %v8995_v7 }
 0x279   : > { %v6245_v34 = vunpack.i.h.bf16 %v6243_v18  ;;  %v6244_v28 = vunpack.i.l.bf16 %v6243_v18 }
 0x27b   : > { %v6193_v49 = vpop.permute.xlu1 %6192 }
 0x27c   : > { %v6195_v32 = vunpack.i.h.bf16 %v6193_v49  ;;  %v6194_v44 = vunpack.i.l.bf16 %v6193_v49  ;;  %v6248_v2 = vpop.permute.xlu0 %6247 }
 0x27d   : > { %v6250_v63 = vunpack.i.h.bf16 %v6248_v2  ;;  %v6249_v43 = vunpack.i.l.bf16 %v6248_v2 }
 0x27e   : > { %v3772_v41 = vsel %vm3767_vm2, %v3763_v16, %v6194_v44  ;;  %v3773_v14 = vsel %vm3767_vm2, %v3764_v47, %v6195_v32 }
 0x27f   : > { %v6218_v29 = vpop.permute.xlu1 %6217  ;;  %5812 = vmatprep.mubr.f32.mxu1 %v3772_v41  ;;  %v9066_v41 = vld [vmem:[%s9841_s4] ss:$0 sm:$0xff] }
 0x280   : > { %v6220_v24 = vunpack.i.h.bf16 %v6218_v29  ;;  %v6219_v6 = vunpack.i.l.bf16 %v6218_v29  ;;  %5813 = vmatmul.mubr.f32.gmra.mrb[4].mxu1 %v3773_v14  ;;  %v6253_v30 = vpop.permute.xlu0 %6252 }
 0x281   : > { %v6255_v57 = vunpack.i.h.bf16 %v6253_v30  ;;  %v6254_v4 = vunpack.i.l.bf16 %v6253_v30 }
 0x282   : > { %v3685_v58 = vsel %vm3677_vm14, %v3676_v21, %v6220_v24  ;;  %v3684_v17 = vsel %vm3677_vm14, %v3675_v54, %v6219_v6  ;;  %vm10323_vm14 = vcmask 1042434  }
 0x283   : > { %v6233_v51 = vpop.permute.xlu1 %6232  ;;  %v3693_v25 = vsel %vm3686_vm15, %v3684_v17, %v6229_v38  ;;  %v3694_v40 = vsel %vm3686_vm15, %v3685_v58, %v6230_v60  ;;  %v10320_v60 = vld [vmem:[#allocation3_spill] sm:$0xff] }
 0x284   : > { %v6235_v35 = vunpack.i.h.bf16 %v6233_v51  ;;  %v6234_v10 = vunpack.i.l.bf16 %v6233_v51  ;;  %v6258_v15 = vpop.permute.xlu0 %6257 }
 0x285   : > { %v6260_v22 = vunpack.i.h.bf16 %v6258_v15  ;;  %v6259_v53 = vunpack.i.l.bf16 %v6258_v15 }
 0x286   : > { %v3702_v13 = vsel %vm3695_vm0, %v3693_v25, %v6234_v10  ;;  %v3703_v42 = vsel %vm3695_vm0, %v3694_v40, %v6235_v35 }
 0x287   : > { %v3711_v62 = vsel %vm3704_vm1, %v3702_v13, %v6244_v28  ;;  %v3712_v33 = vsel %vm3704_vm1, %v3703_v42, %v6245_v34  ;;  %v6238_v50 = vpop.permute.xlu1 %6237 }
 0x288   : > { %v3720_v18 = vsel %vm3713_vm5, %v3711_v62, %v6249_v43  ;;  %v3721_v20 = vsel %vm3713_vm5, %v3712_v33, %v6250_v63  ;;  %v6240_v11 = vunpack.i.h.bf16 %v6238_v50  ;;  %v6239_v56 = vunpack.i.l.bf16 %v6238_v50  ;;  %v6263_v1 = vpop.permute.xlu0 %6262 }
 0x289   : > { %v3729_v52 = vsel %vm3722_vm6, %v3720_v18, %v6254_v4  ;;  %v3730_v48 = vsel %vm3722_vm6, %v3721_v20, %v6255_v57  ;;  %v6265_v49 = vunpack.i.h.bf16 %v6263_v1  ;;  %v6264_v32 = vunpack.i.l.bf16 %v6263_v1 }
 0x28a   : > { %v3738_v55 = vsel %vm3731_vm7, %v3729_v52, %v6259_v53  ;;  %v3739_v61 = vsel %vm3731_vm7, %v3730_v48, %v6260_v22  ;;  %vm10325_vm5 = vcmask 1043459   ;;  %vm10326_vm7 = vmmov %vm10323_vm14 }
 0x28b   : > { %v6268_v44 = vpop.permute.xlu1 %6267  ;;  %v3747_v7 = vsel %vm3740_vm9, %v3738_v55, %v6224_v27  ;;  %v3748_v0 = vsel %vm3740_vm9, %v3739_v61, %v6225_v26 }
 0x28c   : > { %v6270_v12 = vunpack.i.h.bf16 %v6268_v44  ;;  %v6269_v3 = vunpack.i.l.bf16 %v6268_v44  ;;  %v3756_v36 = vsel %vm3749_vm4, %v3747_v7, %v6239_v56  ;;  %v3757_v2 = vsel %vm3749_vm4, %v3748_v0, %v6240_v11 }
 0x28d   : > { %v3765_v16 = vsel %vm3758_vm3, %v3756_v36, %v6264_v32  ;;  %v3766_v47 = vsel %vm3758_vm3, %v3757_v2, %v6265_v49 }
 0x28e   : > { %v3774_v59 = vsel %vm3767_vm2, %v3765_v16, %v6269_v3  ;;  %v3775_v8 = vsel %vm3767_vm2, %v3766_v47, %v6270_v12  ;;  %vm10321_vm2 = vcmask 1041409  }
 0x28f   : > { %5815 = vmatprep.mubr.f32.mxu1 %v3774_v59  ;;  %vm10322_vm12 = vmmov %vm10321_vm2 }
 0x290   : > { %5816 = vmatmul.mubr.f32.gmra.mrb[6].mxu1 %v3775_v8  ;;  %vm10324_vm0 = vmmov %vm10321_vm2 }
 0x306   : > { %v5808_v14 = vpop.f32.mrb[0].mxu1 }
 0x307   : > { %v3871_v9 = vadd.f32 %v5808_v14, %v9066_v41  ;;  %v3865_v37 = vpop.f32.mrb[1].mxu1 }
 0x308   : > { %v3866_v29 = vadd.f32 %v9066_v41, %v3865_v37 }
 0x309   : > { %vm3905_vm4 = vcmp.gt.f32.partialorder %v3871_v9, 0.0  ;;  %v3913_v5 = vmul.f32 0.2, %v3871_v9 }
 0x30a   : > { %vm3904_vm10 = vcmp.gt.f32.partialorder %v3866_v29, 0.0  ;;  %v3912_v31 = vmul.f32 0.2, %v3866_v29 }
 0x30b   : > { %v3921_v24 = vsel %vm3905_vm4, %v3871_v9, %v3913_v5  ;;  %vm10327_vm4 = vmmov %vm10324_vm0 }
 0x30c   : > { %v3937_v6 = vrot.slane %v3921_v24, 7  ;;  %v3920_v54 = vsel %vm3904_vm10, %v3866_v29, %v3912_v31  ;;  %vm10328_vm10 = vmmov %vm10325_vm5 }
 0x30d   : > { %v3936_v21 = vrot.slane %v3920_v54, 7 }
 0x30e   : > { %v3953_v30 = vsel %vm787_vm8, 0.0, %v3937_v6  ;;  %v3961_v58 = vsel %vm787_vm8, %v3937_v6, 0.0 }
 0x30f   : > { %v4008_v17 = vcombine.high %v3953_v30, %v3953_v30  ;;  %v4015_v38 = vrot.slane %v3953_v30, %v10320_v60  ;;  %v3952_v51 = vsel %vm787_vm8, 0.0, %v3936_v21  ;;  %v3960_v10 = vsel %vm787_vm8, %v3936_v21, 0.0 }
 0x310   : > { %v3984_v34 = vcombine.high %v3952_v51, %v3952_v51  ;;  %v3991_v28 = vrot.slane %v3952_v51, %v10320_v60  ;;  %v4031_v40 = vrot.slane %v3961_v58, %v10320_v60  ;;  %v4007_v2 = vrot.slane %v3960_v10, %v10320_v60 }
 0x311   : > { %v4022_v35 = vrot.slane %v4008_v17, %v10320_v60  ;;  %v4023_v63 = vcombine.high %v4015_v38, %v4015_v38  ;;  %v4240_v25 = vrot.slane %v4015_v38, %v6447_v45  ;;  %v4179_v56 = vrot.slane %v4015_v38, %v6449_v46 }
 0x312   : > { %v3998_v43 = vrot.slane %v3984_v34, %v10320_v60  ;;  %v3999_v15 = vcombine.high %v3991_v28, %v3991_v28  ;;  %v4463_v62 = vrot.slane %v3991_v28, %v6447_v45  ;;  %v4309_v52 = vrot.slane %v4031_v40, %v6449_v46 }
 0x313   : > { %v4024_v13 = vcombine.high %v4022_v35, %v4022_v35  ;;  %v4244_v42 = vrot.slane %v4023_v63, %v6447_v45  ;;  %v4248_v22 = vrot.slane %v4022_v35, %v6447_v45  ;;  %v4183_v53 = vrot.slane %v4023_v63, %v6449_v46 }
 0x314   : > { %v4187_v57 = vrot.slane %v4022_v35, %v6449_v46  ;;  %v4000_v4 = vcombine.high %v3998_v43, %v3998_v43  ;;  %v4467_v33 = vrot.slane %v3999_v15, %v6447_v45  ;;  %v4471_v11 = vrot.slane %v3998_v43, %v6447_v45 }
 0x315   : > { %v4252_v50 = vrot.slane %v4024_v13, %v6447_v45  ;;  %v4285_v26 = vsel %vm10321_vm2, %v4244_v42, %v4240_v25  ;;  %v4191_v27 = vrot.slane %v4024_v13, %v6449_v46  ;;  %v4351_v18 = vsel %vm10322_vm12, %v4248_v22, %v4244_v42  ;;  %vm10329_vm2 = vmmov %vm10326_vm7 }
 0x316   : > { %v4286_v20 = vsel %vm10323_vm14, %v4248_v22, %v4285_v26  ;;  %v4318_v48 = vsel %vm10324_vm0, %v4187_v57, %v4183_v53  ;;  %v4524_v61 = vsel %vm10327_vm4, %v4467_v33, %v4463_v62  ;;  %v4342_v32 = vrot.slane %v4031_v40, %v6447_v45  ;;  %vm10330_vm12 = vmmov %vm10329_vm2 }
 0x317   : > { %v4287_v1 = vsel %vm10325_vm5, %v4252_v50, %v4286_v20  ;;  %v4319_v55 = vsel %vm10326_vm7, %v4191_v27, %v4318_v48  ;;  %v4352_v44 = vsel %vm10329_vm2, %v4252_v50, %v4351_v18  ;;  %v4475_v7 = vrot.slane %v4000_v4, %v6447_v45  ;;  %vm10331_vm14 = vmmov %vm10324_vm0 }
 0x318   : > { %4296 = vrot.lane.b32.xlu0 %v4287_v1, %s6284_s30  ;;  %v4320_v49 = vsel %vm10328_vm10, %v4309_v52, %v4319_v55  ;;  %v4525_v0 = vsel %vm10330_vm12, %v4471_v11, %v4524_v61  ;;  %v4375_v12 = vrot.slane %v3991_v28, %v6449_v46  ;;  %v4379_v3 = vrot.slane %v3999_v15, %v6449_v46  ;;  %vm10332_vm7 = vmmov %vm10324_vm0 }
 0x319   : > { %4329 = vrot.lane.b32.xlu1 %v4320_v49, %s6285_s12  ;;  %v4383_v36 = vrot.slane %v3998_v43, %v6449_v46  ;;  %v4604_v16 = vsel %vm10331_vm14, %v4471_v11, %v4467_v33  ;;  %v4224_v47 = vsel %vm10324_vm0, %v4183_v53, %v4179_v56  ;;  %v4353_v59 = vsel %vm10325_vm5, %v4342_v32, %v4352_v44  ;;  %vm10333_vm4 = vmmov %vm10329_vm2 }
 0x31a   : > { %v4387_v8 = vrot.slane %v4000_v4, %v6449_v46  ;;  %v4436_v14 = vsel %vm10332_vm7, %v4379_v3, %v4375_v12  ;;  %v4225_v9 = vsel %vm10333_vm4, %v4187_v57, %v4224_v47  ;;  %vm10334_vm10 = vmmov %vm10325_vm5  ;;  %v4591_v6 = vrot.slane %v4007_v2, %v6447_v45 }
 0x31b   : > { %v4526_v37 = vsel %vm10334_vm10, %v4475_v7, %v4525_v0  ;;  %v4437_v29 = vsel %vm10329_vm2, %v4383_v36, %v4436_v14  ;;  %vm10335_vm12 = vmmov %vm10325_vm5  ;;  %v4564_v24 = vsel %vm10324_vm0, %v4383_v36, %v4379_v3  ;;  %v4551_v51 = vrot.slane %v4007_v2, %v6449_v46 }
 0x31c   : > { %4362 = vrot.lane.b32.xlu0 %v4353_v59, %s6289_s18  ;;  %v9119_v5 = vsel %vm10335_vm12, %v4191_v27, %v4225_v9  ;;  %vm10336_vm14 = vmmov %vm10329_vm2  ;;  %v4438_v54 = vsel %vm10325_vm5, %v4387_v8, %v4437_v29 }
 0x31d   : > { %4536 = vrot.lane.b32.xlu1 %v4526_v37, %s6292_s10  ;;  %v4605_v31 = vsel %vm10336_vm14, %v4475_v7, %v4604_v16  ;;  %vm10337_vm7 = vmmov %vm10325_vm5 }
 0x31e   : > { %v4606_v30 = vsel %vm10337_vm7, %v4591_v6, %v4605_v31  ;;  %vm10338_vm4 = vmmov %vm10329_vm2 }
 0x31f   : > { %v4565_v58 = vsel %vm10338_vm4, %v4387_v8, %v4564_v24  ;;  %vm10339_vm2 = vmmov %vm10325_vm5 }
 0x320   : > { %4448 = vrot.lane.b32.xlu0 %v4438_v54, %s6291_s22  ;;  %v4566_v35 = vsel %vm10339_vm2, %v4551_v51, %v4565_v58  ;;  %vm10340_vm14 = vmmov %vm10324_vm0 }
 0x321   : > { %v5811_v21 = vpop.f32.mrb[2].mxu1  ;;  %4616 = vrot.lane.b32.xlu1 %v4606_v30, %s6295_s25  ;;  %vm10341_vm5 = vmmov %vm10338_vm4 }
 0x322   : > { %v3881_v17 = vadd.f32 %v5811_v21, %v9066_v41  ;;  %v3875_v38 = vpop.f32.mrb[3].mxu1  ;;  %vm10342_vm7 = vmmov %vm10324_vm0 }
 0x323   : > { %v3876_v34 = vadd.f32 %v9066_v41, %v3875_v38  ;;  %vm10343_vm4 = vmmov %vm10339_vm2 }
 0x324   : > { %vm3907_vm10 = vcmp.gt.f32.partialorder %v3881_v17, 0.0  ;;  %v3915_v28 = vmul.f32 0.2, %v3881_v17  ;;  %4576 = vrot.lane.b32.xlu0 %v4566_v35, %s6293_s23  ;;  %vm10345_vm2 = vmmov %vm10324_vm0 }
 0x325   : > { %vm3906_vm12 = vcmp.gt.f32.partialorder %v3876_v34, 0.0  ;;  %v3914_v10 = vmul.f32 0.2, %v3876_v34 }
 0x326   : > { %v3923_v63 = vsel %vm3907_vm10, %v3881_v17, %v3915_v28  ;;  %vm10344_vm10 = vmmov %vm10341_vm5 }
 0x327   : > { %v3939_v43 = vrot.slane %v3923_v63, 7  ;;  %v3922_v25 = vsel %vm3906_vm12, %v3876_v34, %v3914_v10  ;;  %vm10346_vm12 = vmmov %vm10343_vm4  ;;  %v4762_v10 = vld [vmem:[%s9842_s5 + $0x80] sm:$0xff]  ;;  %v4763_v63 = vld [vmem:[%s9842_s5 + $0x88] sm:$0xff] }
 0x328   : > { %v3938_v40 = vrot.slane %v3922_v25, 7 }
 0x329   : > { %v3955_v15 = vsel %vm787_vm8, 0.0, %v3939_v43  ;;  %v3963_v13 = vsel %vm787_vm8, %v3939_v43, 0.0  ;;  %v4746_v43 = vld [vmem:[%s9842_s5] sm:$0xff] }
 0x32a   : > { %v4056_v42 = vcombine.high %v3955_v15, %v3955_v15  ;;  %v4063_v22 = vrot.slane %v3955_v15, %v10320_v60  ;;  %v3954_v53 = vsel %vm787_vm8, 0.0, %v3938_v40  ;;  %v3962_v57 = vsel %vm787_vm8, %v3938_v40, 0.0  ;;  %v4747_v15 = vld [vmem:[%s9842_s5 + $0x8] sm:$0xff] }
 0x32b   : > { %v4032_v4 = vcombine.high %v3954_v53, %v3954_v53  ;;  %v4039_v62 = vrot.slane %v3954_v53, %v10320_v60  ;;  %v4079_v26 = vrot.slane %v3963_v13, %v10320_v60  ;;  %v9146_v52 = vrot.slane %v3962_v57, %v10320_v60  ;;  %v4764_v13 = vld [vmem:[%s9842_s5 + $0x90] sm:$0xff] }
 0x32c   : > { %v4070_v33 = vrot.slane %v4056_v42, %v10320_v60  ;;  %v4071_v50 = vcombine.high %v4063_v22, %v4063_v22  ;;  %v4256_v18 = vrot.slane %v4063_v22, %v6447_v45  ;;  %v4195_v14 = vrot.slane %v4063_v22, %v6449_v46  ;;  %v4765_v42 = vld [vmem:[%s9842_s5 + $0x98] sm:$0xff]  ;;  %v4748_v57 = vld [vmem:[%s9842_s5 + $0x10] sm:$0xff] }
 0x32d   : > { %v4046_v27 = vrot.slane %v4032_v4, %v10320_v60  ;;  %v4047_v20 = vcombine.high %v4039_v62, %v4039_v62  ;;  %v4313_v36 = vrot.slane %v4079_v26, %v6449_v46  ;;  %v4391_v29 = vrot.slane %v4039_v62, %v6449_v46  ;;  %v4749_v4 = vld [vmem:[%s9842_s5 + $0x18] sm:$0xff] }
 0x32e   : > { %v4072_v48 = vcombine.high %v4070_v33, %v4070_v33  ;;  %v4260_v11 = vrot.slane %v4071_v50, %v6447_v45  ;;  %v4264_v56 = vrot.slane %v4070_v33, %v6447_v45  ;;  %v4199_v1 = vrot.slane %v4071_v50, %v6449_v46 }
 0x32f   : > { %v4203_v55 = vrot.slane %v4070_v33, %v6449_v46  ;;  %v4048_v61 = vcombine.high %v4046_v27, %v4046_v27  ;;  %v4395_v49 = vrot.slane %v4047_v20, %v6449_v46  ;;  %v4399_v32 = vrot.slane %v4046_v27, %v6449_v46 }
 0x330   : > { %v4268_v44 = vrot.slane %v4072_v48, %v6447_v45  ;;  %v4288_v7 = vsel %vm10340_vm14, %v4260_v11, %v4256_v18  ;;  %v4207_v0 = vrot.slane %v4072_v48, %v6449_v46  ;;  %v4354_v12 = vsel %vm10324_vm0, %v4264_v56, %v4260_v11  ;;  %vm10347_vm14 = vmmov %vm10341_vm5  ;;  %v4750_v11 = vld [vmem:[%s9842_s5 + $0x20] sm:$0xff] }
 0x331   : > { %v4289_v3 = vsel %vm10341_vm5, %v4264_v56, %v4288_v7  ;;  %v4321_v2 = vsel %vm10342_vm7, %v4203_v55, %v4199_v1  ;;  %v4403_v16 = vrot.slane %v4048_v61, %v6449_v46  ;;  %v4567_v8 = vsel %vm10345_vm2, %v4399_v32, %v4395_v49  ;;  %vm10348_vm0 = vmmov %vm10341_vm5  ;;  %v4751_v56 = vld [vmem:[%s9842_s5 + $0x28] sm:$0xff] }
 0x332   : > { %v4290_v47 = vsel %vm10343_vm4, %v4268_v44, %v4289_v3  ;;  %v4322_v59 = vsel %vm10344_vm10, %v4207_v0, %v4321_v2  ;;  %v4355_v37 = vsel %vm10347_vm14, %v4268_v44, %v4354_v12  ;;  %v4346_v31 = vrot.slane %v4079_v26, %v6447_v45  ;;  %vm10349_vm5 = vmmov %vm10345_vm2  ;;  %v4767_v26 = vld [vmem:[%s9842_s5 + $0xa8] sm:$0xff]  ;;  %v4753_v12 = vld [vmem:[%s9842_s5 + $0x38] sm:$0xff] }
 0x333   : > { %4298 = vrot.lane.b32.xlu1 %v4290_v47, %s6284_s30  ;;  %v4323_v9 = vsel %vm10346_vm12, %v4313_v36, %v4322_v59  ;;  %v4568_v24 = vsel %vm10348_vm0, %v4403_v16, %v4567_v8  ;;  %v4483_v6 = vrot.slane %v4047_v20, %v6447_v45  ;;  %v4555_v54 = vrot.slane %v9146_v52, %v6449_v46  ;;  %vm10350_vm7 = vmmov %vm10345_vm2 }
 0x334   : > { %4331 = vrot.lane.b32.xlu0 %v4323_v9, %s6285_s12  ;;  %v4439_v21 = vsel %vm10349_vm5, %v4395_v49, %v4391_v29  ;;  %v4227_v30 = vsel %vm10350_vm7, %v4199_v1, %v4195_v14  ;;  %v4356_v58 = vsel %vm10343_vm4, %v4346_v31, %v4355_v37  ;;  %v4479_v17 = vrot.slane %v4039_v62, %v6447_v45  ;;  %vm10351_vm10 = vmmov %vm10348_vm0  ;;  %v4766_v62 = vld [vmem:[%s9842_s5 + $0xa0] sm:$0xff]  ;;  %v4768_v1 = vld [vmem:[%s9842_s5 + $0xb0] sm:$0xff] }
 0x335   : > { %v4228_v38 = vsel %vm10351_vm10, %v4203_v55, %v4227_v30  ;;  %vm10352_vm2 = vmmov %vm10343_vm4  ;;  %v4487_v28 = vrot.slane %v4046_v27, %v6447_v45  ;;  %v5850_v40 = vpack.c.bf16 %v4763_v63, %v4762_v10  ;;  %v5852_v22 = vpack.c.bf16 %v4747_v15, %v4746_v43  ;;  %v4769_v55 = vld [vmem:[%s9842_s5 + $0xb8] sm:$0xff]  ;;  %v4770_v29 = vld [vmem:[%s9842_s5 + $0xc0] sm:$0xff] }
 0x336   : > { %v4569_v51 = vsel %vm10352_vm2, %v4555_v54, %v4568_v24  ;;  %vm10353_vm12 = vmmov %vm10348_vm0  ;;  %v5854_v53 = vpack.c.bf16 %v4765_v42, %v4764_v13  ;;  %v4491_v50 = vrot.slane %v4048_v61, %v6447_v45  ;;  %v5856_v18 = vpack.c.bf16 %v4749_v4, %v4748_v57  ;;  %v4771_v31 = vld [vmem:[%s9842_s5 + $0xc8] sm:$0xff]  ;;  %v4754_v24 = vld [vmem:[%s9842_s5 + $0x40] sm:$0xff] }
 0x337   : > { %4364 = vrot.lane.b32.xlu1 %v4356_v58, %s6289_s18  ;;  %v4440_v34 = vsel %vm10353_vm12, %v4399_v32, %v4439_v21  ;;  %vm10354_vm14 = vmmov %vm10352_vm2  ;;  %5851 = vmatprep.subr.bf16.mxu1 %v5850_v40  ;;  %v5858_v48 = vpack.c.bf16 %v4767_v26, %v4766_v62  ;;  %v5860_v32 = vpack.c.bf16 %v4751_v56, %v4750_v11  ;;  %v4755_v21 = vld [vmem:[%s9842_s5 + $0x48] sm:$0xff] }
 0x338   : > { %v9186_v35 = vsel %vm10354_vm14, %v4207_v0, %v4228_v38  ;;  %4578 = vrot.lane.b32.xlu0 %v4569_v51, %s6293_s23  ;;  %vm10355_vm0 = vmmov %vm10349_vm5  ;;  %5853 = vmatpush3.bf16.msra.mxu1 %v5852_v22  ;;  %v4595_v44 = vrot.slane %v9146_v52, %v6447_v45  ;;  %v5862_v7 = vpack.c.bf16 %v4769_v55, %v4768_v1  ;;  %v4752_v0 = vld [vmem:[%s9842_s5 + $0x30] sm:$0xff] }
 0x339   : > { %v4527_v25 = vsel %vm10355_vm0, %v4483_v6, %v4479_v17  ;;  %vm10356_vm5 = vmmov %vm10352_vm2  ;;  %5855 = vmatprep.subr.bf16.mxu1 %v5854_v53  ;;  %v5864_v36 = vpack.c.bf16 %v4753_v12, %v4752_v0  ;;  %v5866_v54 = vpack.c.bf16 %v4771_v31, %v4770_v29  ;;  %v5868_v17 = vpack.c.bf16 %v4755_v21, %v4754_v24 }
 0x33a   : > { %v4441_v33 = vsel %vm10356_vm5, %v4403_v16, %v4440_v34  ;;  %vm10357_vm7 = vmmov %vm10351_vm10 }
 0x33b   : > { %4450 = vrot.lane.b32.xlu1 %v4441_v33, %s6291_s22  ;;  %v4528_v27 = vsel %vm10357_vm7, %v4487_v28, %v4527_v25  ;;  %vm10358_vm4 = vmmov %vm10355_vm0 }
 0x33c   : > { %v4607_v20 = vsel %vm10358_vm4, %v4487_v28, %v4483_v6  ;;  %vm10359_vm10 = vmmov %vm10352_vm2  ;;  %5857 = vmatpush3.bf16.msra.mxu1 %v5856_v18 }
 0x33d   : > { %v4529_v61 = vsel %vm10359_vm10, %v4491_v50, %v4528_v27  ;;  %vm10360_vm2 = vmmov %vm10357_vm7  ;;  %5859 = vmatprep.subr.bf16.mxu1 %v5858_v48 }
 0x33e   : > { %v4608_v49 = vsel %vm10360_vm2, %v4491_v50, %v4607_v20  ;;  %vm10361_vm12 = vmmov %vm10356_vm5 }
 0x33f   : > { %4538 = vrot.lane.b32.xlu1 %v4529_v61, %s6292_s10  ;;  %v4609_v3 = vsel %vm10361_vm12, %v4595_v44, %v4608_v49  ;;  %vm10362_vm5 = vmmov %vm10358_vm4 }
 0x340   : > { %5861 = vmatpush3.bf16.msra.mxu1 %v5860_v32  ;;  %vm10363_vm7 = vmmov %vm10358_vm4 }
 0x341   : > { %5863 = vmatprep.subr.bf16.mxu1 %v5862_v7  ;;  %vm10364_vm4 = vmmov %vm10360_vm2 }
 0x342   : > { %vm10365_vm10 = vmmov %vm10362_vm5 }
 0x343   : > { %4618 = vrot.lane.b32.xlu1 %v4609_v3, %s6295_s25  ;;  %vm10366_vm2 = vmmov %vm10361_vm12 }
 0x344   : > { %5865 = vmatpush3.bf16.msra.mxu1 %v5864_v36  ;;  %vm10367_vm12 = vmmov %vm10364_vm4 }
 0x345   : > { %5867 = vmatprep.subr.bf16.mxu1 %v5866_v54 }
 0x348   : > { %5869 = vmatpush3.bf16.msra.mxu1 %v5868_v17 }
 0x353   : > { %v5814_v2 = vpop.f32.mrb[4].mxu1 }
 0x354   : > { %v3891_v52 = vadd.f32 %v5814_v2, %v9066_v41  ;;  %v3885_v16 = vpop.f32.mrb[5].mxu1 }
 0x355   : > { %v3886_v47 = vadd.f32 %v9066_v41, %v3885_v16 }
 0x356   : > { %vm3909_vm14 = vcmp.gt.f32.partialorder %v3891_v52, 0.0  ;;  %v3917_v59 = vmul.f32 0.2, %v3891_v52 }
 0x357   : > { %vm3908_vm0 = vcmp.gt.f32.partialorder %v3886_v47, 0.0  ;;  %v3916_v8 = vmul.f32 0.2, %v3886_v47 }
 0x358   : > { %v3925_v14 = vsel %vm3909_vm14, %v3891_v52, %v3917_v59  ;;  %vm10368_vm14 = vmmov %vm10364_vm4 }
 0x359   : > { %v3941_v9 = vrot.slane %v3925_v14, 7  ;;  %v3924_v37 = vsel %vm3908_vm0, %v3886_v47, %v3916_v8  ;;  %vm10369_vm0 = vmmov %vm10366_vm2 }
 0x35a   : > { %v3940_v6 = vrot.slane %v3924_v37, 7 }
 0x35b   : > { %v3957_v30 = vsel %vm787_vm8, 0.0, %v3941_v9  ;;  %v3965_v58 = vsel %vm787_vm8, %v3941_v9, 0.0 }
 0x35c   : > { %v4104_v38 = vcombine.high %v3957_v30, %v3957_v30  ;;  %v9267_v51 = vrot.slane %v3957_v30, %v10320_v60  ;;  %v3956_v34 = vsel %vm787_vm8, 0.0, %v3940_v6  ;;  %v3964_v28 = vsel %vm787_vm8, %v3940_v6, 0.0 }
 0x35d   : > { %v4080_v10 = vcombine.high %v3956_v34, %v3956_v34  ;;  %v4087_v63 = vrot.slane %v3956_v34, %v10320_v60  ;;  %v9273_v43 = vrot.slane %v3965_v58, %v10320_v60  ;;  %v9279_v15 = vrot.slane %v3964_v28, %v10320_v60 }
 0x35e   : > { %v4118_v25 = vrot.slane %v4104_v38, %v10320_v60  ;;  %v4119_v40 = vcombine.high %v9267_v51, %v9267_v51  ;;  %v4272_v42 = vrot.slane %v9267_v51, %v6447_v45 }
 0x35f   : > { %v4094_v13 = vrot.slane %v4080_v10, %v10320_v60  ;;  %v4095_v22 = vcombine.high %v4087_v63, %v4087_v63  ;;  %v4407_v53 = vrot.slane %v4087_v63, %v6449_v46  ;;  %v4350_v33 = vrot.slane %v9273_v43, %v6447_v45 }
 0x360   : > { %v4120_v57 = vcombine.high %v4118_v25, %v4118_v25  ;;  %v4276_v4 = vrot.slane %v4119_v40, %v6447_v45  ;;  %v4280_v62 = vrot.slane %v4118_v25, %v6447_v45  ;;  %v4495_v32 = vrot.slane %v4087_v63, %v6447_v45 }
 0x361   : > { %v4096_v50 = vcombine.high %v4094_v13, %v4094_v13  ;;  %v4411_v26 = vrot.slane %v4095_v22, %v6449_v46  ;;  %v4415_v27 = vrot.slane %v4094_v13, %v6449_v46  ;;  %v4499_v18 = vrot.slane %v4095_v22, %v6447_v45 }
 0x362   : > { %v4284_v20 = vrot.slane %v4120_v57, %v6447_v45  ;;  %v4291_v48 = vsel %vm10362_vm5, %v4276_v4, %v4272_v42  ;;  %v4357_v11 = vsel %vm10363_vm7, %v4280_v62, %v4276_v4  ;;  %v4503_v56 = vrot.slane %v4094_v13, %v6447_v45 }
 0x363   : > { %v5817_v1 = vpop.f32.mrb[6].mxu1  ;;  %v4292_v55 = vsel %vm10364_vm4, %v4280_v62, %v4291_v48  ;;  %v4419_v61 = vrot.slane %v4096_v50, %v6449_v46  ;;  %v4442_v49 = vsel %vm10365_vm10, %v4411_v26, %v4407_v53  ;;  %v4507_v52 = vrot.slane %v4096_v50, %v6447_v45  ;;  %vm10370_vm4 = vmmov %vm10369_vm0 }
 0x364   : > { %v3901_v44 = vadd.f32 %v5817_v1, %v9066_v41  ;;  %v3895_v7 = vpop.f32.mrb[7].mxu1  ;;  %v4293_v0 = vsel %vm10366_vm2, %v4284_v20, %v4292_v55  ;;  %v4443_v12 = vsel %vm10367_vm12, %v4415_v27, %v4442_v49  ;;  %v4358_v3 = vsel %vm10368_vm14, %v4284_v20, %v4357_v11  ;;  %vm10371_vm10 = vmmov %vm10367_vm12 }
 0x365   : > { %v3896_v36 = vadd.f32 %v9066_v41, %v3895_v7  ;;  %4300 = vrot.lane.b32.xlu1 %v4293_v0, %s6284_s30  ;;  %v4444_v2 = vsel %vm10369_vm0, %v4419_v61, %v4443_v12  ;;  %v4530_v16 = vsel %vm10362_vm5, %v4499_v18, %v4495_v32  ;;  %v4359_v59 = vsel %vm10370_vm4, %v4350_v33, %v4358_v3  ;;  %vm10372_vm12 = vmmov %vm10362_vm5 }
 0x366   : > { %vm3911_vm7 = vcmp.gt.f32.partialorder %v3901_v44, 0.0  ;;  %v3919_v47 = vmul.f32 0.2, %v3901_v44  ;;  %4452 = vrot.lane.b32.xlu0 %v4444_v2, %s6291_s22  ;;  %v4531_v8 = vsel %vm10371_vm10, %v4503_v56, %v4530_v16  ;;  %v4559_v41 = vrot.slane %v9279_v15, %v6449_v46  ;;  %vm10373_vm14 = vmmov %vm10371_vm10 }
 0x367   : > { %vm3910_vm2 = vcmp.gt.f32.partialorder %v3896_v36, 0.0  ;;  %v3918_v14 = vmul.f32 0.2, %v3896_v36  ;;  %v4570_v9 = vsel %vm10372_vm12, %v4415_v27, %v4411_v26  ;;  %v9317_v31 = vrot.slane %v4119_v40, %v6449_v46  ;;  %vm10374_vm5 = vmmov %vm10369_vm0 }
 0x368   : > { %v3927_v37 = vsel %vm3911_vm7, %v3901_v44, %v3919_v47  ;;  %v4571_v29 = vsel %vm10373_vm14, %v4419_v61, %v4570_v9  ;;  %v9320_v24 = vrot.slane %v4118_v25, %v6449_v46  ;;  %v4532_v21 = vsel %vm10369_vm0, %v4507_v52, %v4531_v8  ;;  %vm10375_vm7 = vmmov %vm10372_vm12 }
 0x369   : > { %v3943_v6 = vrot.slane %v3927_v37, 7  ;;  %v9322_v54 = vsel %vm3910_vm2, %v3896_v36, %v3918_v14  ;;  %4366 = vrot.lane.b32.xlu1 %v4359_v59, %s6289_s18  ;;  %v9327_v30 = vrot.slane %v4120_v57, %v6449_v46  ;;  %v4572_v17 = vsel %vm10374_vm5, %v4559_v41, %v4571_v29  ;;  %vm10376_vm4 = vmmov %vm10371_vm10 }
 0x36a   : > { %v3942_v58 = vrot.slane %v9322_v54, 7  ;;  %4540 = vrot.lane.b32.xlu0 %v4532_v21, %s6292_s10  ;;  %v4324_v38 = vsel %vm10375_vm7, %v9320_v24, %v9317_v31  ;;  %v4317_v28 = vrot.slane %v9273_v43, %v6449_v46  ;;  %vm10377_vm10 = vmmov %vm10375_vm7  ;;  %v4211_v22 = vrot.slane %v9267_v51, %v6449_v46  ;;  %v4772_v54 = vld [vmem:[%s9842_s5 + $0xd0] sm:$0xff] }
 0x36b   : > { %v3959_v34 = vsel %vm787_vm8, 0.0, %v3943_v6  ;;  %v4325_v10 = vsel %vm10376_vm4, %v9327_v30, %v4324_v38  ;;  %v4610_v63 = vsel %vm10377_vm10, %v4503_v56, %v4499_v18  ;;  %v3967_v25 = vsel %vm787_vm8, %v3943_v6, 0.0  ;;  %vm10378_vm2 = vmmov %vm10369_vm0  ;;  %v4756_v38 = vld [vmem:[%s9842_s5 + $0x50] sm:$0xff] }
 0x36c   : > { %v4152_v40 = vcombine.high %v3959_v34, %v3959_v34  ;;  %v9343_v13 = vrot.slane %v3959_v34, %v10320_v60  ;;  %v3958_v42 = vsel %vm787_vm8, 0.0, %v3942_v58  ;;  %v4326_v43 = vsel %vm10378_vm2, %v4317_v28, %v4325_v10  ;;  %vm10379_vm12 = vmmov %vm10376_vm4  ;;  %v4757_v34 = vld [vmem:[%s9842_s5 + $0x58] sm:$0xff] }
 0x36d   : > { %v4128_v53 = vcombine.high %v3958_v42, %v3958_v42  ;;  %v4135_v57 = vrot.slane %v3958_v42, %v10320_v60  ;;  %4580 = vrot.lane.b32.xlu1 %v4572_v17, %s6293_s23  ;;  %v4599_v62 = vrot.slane %v9279_v15, %v6447_v45  ;;  %v4611_v33 = vsel %vm10379_vm12, %v4507_v52, %v4610_v63  ;;  %vm10380_vm14 = vmmov %vm10369_vm0  ;;  %v4773_v17 = vld [vmem:[%s9842_s5 + $0xd8] sm:$0xff] }
 0x36e   : > { %v4166_v4 = vrot.slane %v4152_v40, %v10320_v60  ;;  %4333 = vrot.lane.b32.xlu0 %v4326_v43, %s6285_s12  ;;  %v4167_v50 = vcombine.high %v9343_v13, %v9343_v13  ;;  %v4651_v26 = vrot.slane %v9343_v13, %v6447_v45  ;;  %v4175_v27 = vrot.slane %v3967_v25, %v10320_v60  ;;  %vm10381_vm0 = vmmov %vm10375_vm7  ;;  %v4774_v25 = vld [vmem:[%s9842_s5 + $0xe0] sm:$0xff]  ;;  %v4775_v40 = vld [vmem:[%s9842_s5 + $0xe8] sm:$0xff] }
 0x36f   : > { %v4142_v51 = vrot.slane %v4128_v53, %v10320_v60  ;;  %v4143_v18 = vcombine.high %v4135_v57, %v4135_v57  ;;  %v4612_v56 = vsel %vm10380_vm14, %v4599_v62, %v4611_v33  ;;  %vm10382_vm5 = vmmov %vm10381_vm0  ;;  %v4423_v3 = vrot.slane %v4135_v57, %v6449_v46  ;;  %v4759_v33 = vld [vmem:[%s9842_s5 + $0x68] sm:$0xff] }
 0x370   : > { %v4168_v20 = vcombine.high %v4166_v4, %v4166_v4  ;;  %v4655_v48 = vrot.slane %v4167_v50, %v6447_v45  ;;  %v4659_v11 = vrot.slane %v4166_v4, %v6447_v45  ;;  %v4635_v15 = vrot.slane %v4167_v50, %v6449_v46  ;;  %vm10383_vm7 = vmmov %vm10376_vm4 }
 0x371   : > { %v4639_v1 = vrot.slane %v4166_v4, %v6449_v46  ;;  %v4673_v55 = vrot.slane %v4175_v27, %v6449_v46  ;;  %v4144_v61 = vcombine.high %v4142_v51, %v4142_v51  ;;  %vm10384_vm4 = vmmov %vm10381_vm0  ;;  %v4427_v36 = vrot.slane %v4143_v18, %v6449_v46 }
 0x372   : > { %4620 = vrot.lane.b32.xlu0 %v4612_v56, %s6295_s25  ;;  %v4663_v49 = vrot.slane %v4168_v20, %v6447_v45  ;;  %v4664_v32 = vsel %vm10381_vm0, %v4655_v48, %v4651_v26  ;;  %v9372_v44 = vrot.slane %v4168_v20, %v6449_v46  ;;  %v4684_v7 = vsel %vm10382_vm5, %v4659_v11, %v4655_v48  ;;  %vm10385_vm10 = vmmov %vm10378_vm2  ;;  %v4776_v26 = vld [vmem:[%s9842_s5 + $0xf0] sm:$0xff] }
 0x373   : > { %v4665_v0 = vsel %vm10383_vm7, %v4659_v11, %v4664_v32  ;;  %v4674_v12 = vsel %vm10384_vm4, %v4639_v1, %v4635_v15  ;;  %vm10386_vm2 = vmmov %vm10383_vm7  ;;  %v4683_v16 = vrot.slane %v4175_v27, %v6447_v45  ;;  %v4431_v47 = vrot.slane %v4142_v51, %v6449_v46 }
 0x374   : > { %v4666_v2 = vsel %vm10385_vm10, %v4663_v49, %v4665_v0  ;;  %v4675_v52 = vsel %vm10386_vm2, %v9372_v44, %v4674_v12  ;;  %vm10387_vm12 = vmmov %vm10385_vm10  ;;  %v4435_v14 = vrot.slane %v4144_v61, %v6449_v46  ;;  %v4445_v41 = vsel %vm10381_vm0, %v4427_v36, %v4423_v3  ;;  %v10406_v12 = vld [vmem:[#allocation7_spill] sm:$0xff]  ;;  %v10408_v3 = vld [vmem:[#allocation8_spill] sm:$0xff] }
 0x375   : > { %4667 = vrot.lane.b32.xlu1 %v4666_v2, %s6284_s30  ;;  %v4676_v59 = vsel %vm10387_vm12, %v4673_v55, %v4675_v52  ;;  %vm10388_vm14 = vmmov %vm10386_vm2  ;;  %v4511_v37 = vrot.slane %v4135_v57, %v6447_v45  ;;  %v4515_v29 = vrot.slane %v4143_v18, %v6447_v45  ;;  %v4519_v6 = vrot.slane %v4142_v51, %v6447_v45 }
 0x376   : > { %v4685_v8 = vsel %vm10388_vm14, %v4663_v49, %v4684_v7  ;;  %4677 = vrot.lane.b32.xlu0 %v4676_v59, %s6285_s12  ;;  %vm10389_vm5 = vmmov %vm10386_vm2  ;;  %v3966_v21 = vsel %vm787_vm8, %v3942_v58, 0.0  ;;  %v4523_v10 = vrot.slane %v4144_v61, %v6447_v45  ;;  %v4631_v42 = vrot.slane %v9343_v13, %v6449_v46  ;;  %v4758_v13 = vld [vmem:[%s9842_s5 + $0x60] sm:$0xff]  ;;  %v4760_v61 = vld [vmem:[%s9842_s5 + $0x70] sm:$0xff] }
 0x377   : > { %v4446_v9 = vsel %vm10389_vm5, %v4431_v47, %v4445_v41  ;;  %vm10390_vm7 = vmmov %vm10385_vm10  ;;  %v5870_v4 = vpack.c.bf16 %v4773_v17, %v4772_v54  ;;  %v5872_v62 = vpack.c.bf16 %v4757_v34, %v4756_v38  ;;  %v5874_v51 = vpack.c.bf16 %v4775_v40, %v4774_v25 }
 0x378   : > { %v4686_v28 = vsel %vm10390_vm7, %v4683_v16, %v4685_v8  ;;  %vm10391_vm4 = vmmov %vm10381_vm0  ;;  %v5876_v48 = vpack.c.bf16 %v4759_v33, %v4758_v13  ;;  %v4328_v16 = vpop.permute.xlu1 %4327 }
 0x379   : > { %v4533_v63 = vsel %vm10391_vm4, %v4515_v29, %v4511_v37  ;;  %vm10392_vm10 = vmmov %vm10381_vm0  ;;  %4687 = vrot.lane.b32.xlu1 %v4686_v28, %s6289_s18  ;;  %5871 = vmatprep.subr.bf16.mxu1 %v5870_v4 }
 0x37a   : > { %v4230_v58 = vsel %vm10392_vm10, %v9317_v31, %v4211_v22  ;;  %vm10393_vm2 = vmmov %vm10390_vm7  ;;  %v4151_v31 = vrot.slane %v3966_v21, %v10320_v60  ;;  %v4644_v20 = vsel %vm10392_vm10, %v4635_v15, %v4631_v42  ;;  %5873 = vmatpush3.bf16.msra.mxu1 %v5872_v62  ;;  %v4761_v15 = vld [vmem:[%s9842_s5 + $0x78] sm:$0xff] }
 0x37b   : > { %v4447_v53 = vsel %vm10393_vm2, %v4435_v14, %v4446_v9  ;;  %vm10394_vm12 = vmmov %vm10389_vm5  ;;  %5875 = vmatprep.subr.bf16.mxu1 %v5874_v51  ;;  %v5880_v32 = vpack.c.bf16 %v4761_v15, %v4760_v61 }
 0x37c   : > { %v4534_v57 = vsel %vm10394_vm12, %v4519_v6, %v4533_v63  ;;  %vm10395_vm14 = vmmov %vm10381_vm0  ;;  %4454 = vrot.lane.b32.xlu0 %v4447_v53, %s6291_s22  ;;  %v4563_v56 = vrot.slane %v4151_v31, %v6449_v46  ;;  %v4603_v7 = vrot.slane %v4151_v31, %v6447_v45 }
 0x37d   : > { %v4573_v43 = vsel %vm10395_vm14, %v4431_v47, %v4427_v36  ;;  %vm10396_vm0 = vmmov %vm10389_vm5  ;;  %v4295_v36 = vpop.permute.xlu0 %4294 }
 0x37e   : > { %v4231_v22 = vsel %vm10396_vm0, %v9320_v24, %v4230_v58  ;;  %vm10397_vm5 = vmmov %vm10393_vm2  ;;  %v4777_v24 = vld [vmem:[%s9842_s5 + $0xf8] sm:$0xff]  ;;  %5877 = vmatpush3.bf16.msra.mxu1 %v5876_v48  ;;  %v4702_v63 = vsel %vm3650_vm11, %v8577_v23, %v4295_v36 }
 0x37f   : > { %v9436_v50 = vsel %vm10397_vm5, %v9327_v30, %v4231_v22  ;;  %vm10398_vm7 = vmmov %vm10393_vm2  ;;  %v5878_v55 = vpack.c.bf16 %v4777_v24, %v4776_v26  ;;  %v4706_v40 = vsel %vm3668_vm13, %v4702_v63, %v4328_v16  ;;  %v5190_v63 = vld [vmem:[%s9844_s7 + $0x98] sm:$0xff] }
 0x380   : > { %v4535_v27 = vsel %vm10398_vm7, %v4523_v10, %v4534_v57  ;;  %vm10399_vm4 = vmmov %vm10396_vm0  ;;  %4699 = vrot.lane.b32.xlu0 %v10316_v39, %s6295_s25 }
 0x381   : > { %v4574_v18 = vsel %vm10399_vm4, %v4435_v14, %v4573_v43  ;;  %4542 = vrot.lane.b32.xlu1 %v4535_v27, %s6292_s10  ;;  %vm10400_vm2 = vmmov %vm10392_vm10  ;;  %5879 = vmatprep.subr.bf16.mxu1 %v5878_v55  ;;  %v4361_v2 = vpop.permute.xlu0 %4360 }
 0x382   : > { %v4613_v30 = vsel %vm10400_vm2, %v4519_v6, %v4515_v29  ;;  %vm10401_vm12 = vmmov %vm10396_vm0  ;;  %5881 = vmatpush3.bf16.msra.mxu1 %v5880_v32  ;;  %v4710_v57 = vsel %vm3686_vm15, %v4706_v40, %v4361_v2  ;;  %v5173_v40 = vld [vmem:[%s9844_s7 + $0x10] sm:$0xff] }
 0x383   : > { %v4645_v11 = vsel %vm10401_vm12, %v4639_v1, %v4644_v20  ;;  %vm10402_vm14 = vmmov %vm10397_vm5 }
 0x384   : > { %v9461_v49 = vsel %vm10402_vm14, %v9372_v44, %v4645_v11  ;;  %vm10403_vm0 = vmmov %vm10397_vm5  ;;  %v10407_v44 = vld [vmem:[#allocation9_spill] sm:$0xff] }
 0x385   : > { %v4575_v1 = vsel %vm10403_vm0, %v4563_v56, %v4574_v18  ;;  %vm10404_vm5 = vmmov %vm10399_vm4  ;;  %v4691_v52 = vpop.permute.xlu0 %4690 }
 0x386   : > { %4582 = vrot.lane.b32.xlu1 %v4575_v1, %s6293_s23  ;;  %v4614_v39 = vsel %vm10404_vm5, %v4523_v10, %v4613_v30  ;;  %vm10405_vm7 = vmmov %vm10403_vm0 }
 0x387   : > { %v4615_v0 = vsel %vm10405_vm7, %v4603_v7, %v4614_v39  ;;  %vm10411_vm4 = vmmov %vm10400_vm2 }
 0x388   : > { %vm10412_vm10 = vmmov %vm10400_vm2 }
 0x389   : > { %v4694_v47 = vpop.permute.xlu0 %4693  ;;  %vm10413_vm14 = vmmov %vm10400_vm2 }
 0x38a   : > { %4622 = vrot.lane.b32.xlu1 %v4615_v0, %s6295_s25  ;;  %vm10414_vm0 = vmmov %vm10400_vm2 }
 0x38b   : > { %v4330_v59 = vpop.permute.xlu1 %4329  ;;  %vm10415_vm5 = vmmov %vm10414_vm0 }
 0x38c   : > { %vm10417_vm7 = vmmov %vm10414_vm0 }
 0x38d   : > { %v4697_v8 = vpop.permute.xlu0 %4696 }
 0x38e   : > { %4983 = vrot.lane.b32.xlu1 %v10406_v12, %s6285_s12 }
 0x38f   : > { %v4537_v14 = vpop.permute.xlu1 %4536 }
 0x391   : > { %v4297_v41 = vpop.permute.xlu0 %4296 }
 0x392   : > { %4994 = vrot.lane.b32.xlu1 %v10407_v44, %s6291_s22  ;;  %v4703_v42 = vsel %vm3650_vm11, %v9119_v5, %v4297_v41 }
 0x393   : > { %v4617_v9 = vpop.permute.xlu1 %4616  ;;  %v4707_v31 = vsel %vm3668_vm13, %v4703_v42, %v4330_v59  ;;  %v5174_v42 = vld [vmem:[%s9844_s7 + $0x18] sm:$0xff] }
 0x395   : > { %v4363_v29 = vpop.permute.xlu0 %4362 }
 0x396   : > { %5005 = vrot.lane.b32.xlu1 %v10408_v3, %s6293_s23  ;;  %v4711_v4 = vsel %vm3686_vm15, %v4707_v31, %v4363_v29 }
 0x399   : > { %v4449_v54 = vpop.permute.xlu0 %4448 }
 0x39a   : > { %v4714_v23 = vsel %vm3704_vm1, %v4710_v57, %v4449_v54  ;;  %v5192_v57 = vld [vmem:[%s9844_s7 + $0xa8] sm:$0xff] }
 0x39b   : > { %v4718_v24 = vsel %vm3722_vm6, %v4714_v23, %v4537_v14 }
 0x39d   : > { %v4577_v17 = vpop.permute.xlu0 %4576 }
 0x3a5   : > { %v4299_v37 = vpop.permute.xlu1 %4298 }
 0x3a6   : > { %v4332_v34 = vpop.permute.xlu0 %4331  ;;  %v4704_v22 = vsel %vm3650_vm11, %v9186_v35, %v4299_v37  ;;  %v4722_v35 = vsel %vm3740_vm9, %v4718_v24, %v4577_v17  ;;  %v5193_v24 = vld [vmem:[%s9844_s7 + $0xb0] sm:$0xff] }
 0x3a7   : > { %v4708_v13 = vsel %vm3668_vm13, %v4704_v22, %v4332_v34  ;;  %v4726_v55 = vsel %vm3758_vm3, %v4722_v35, %v4617_v9  ;;  %v5175_v22 = vld [vmem:[%s9844_s7 + $0x20] sm:$0xff] }
 0x3a9   : > { %v4365_v6 = vpop.permute.xlu1 %4364 }
 0x3aa   : > { %v4579_v10 = vpop.permute.xlu0 %4578  ;;  %v4712_v51 = vsel %vm3686_vm15, %v4708_v13, %v4365_v6  ;;  %v9554_v13 = vld [vmem:[%s9843_s6] ss:$0 sm:$0xff] }
 0x3ad   : > { %v4451_v21 = vpop.permute.xlu1 %4450 }
 0x3ae   : > { %v4715_v62 = vsel %vm3704_vm1, %v4711_v4, %v4451_v21  ;;  %v5176_v4 = vld [vmem:[%s9844_s7 + $0x28] sm:$0xff] }
 0x3af   : > { %v5892_v23 = vpack.c.bf16 %v5176_v4, %v5175_v22  ;;  %v5198_v22 = vld [vmem:[%s9844_s7 + $0xd8] sm:$0xff] }
 0x3b1   : > { %v4539_v38 = vpop.permute.xlu1 %4538 }
 0x3b2   : > { %v4719_v33 = vsel %vm3722_vm6, %v4715_v62, %v4539_v38  ;;  %v5171_v38 = vld [vmem:[%s9844_s7] sm:$0xff] }
 0x3b3   : > { %v4723_v18 = vsel %vm3740_vm9, %v4719_v33, %v4579_v10  ;;  %v5189_v10 = vld [vmem:[%s9844_s7 + $0x90] sm:$0xff] }
 0x3b5   : > { %v4619_v28 = vpop.permute.xlu1 %4618 }
 0x3b6   : > { %v4727_v30 = vsel %vm3758_vm3, %v4723_v18, %v4619_v28  ;;  %v5172_v28 = vld [vmem:[%s9844_s7 + $0x8] sm:$0xff] }
 0x3b7   : > { %v5546_v15 = vcombine.low %v4726_v55, %v4727_v30 }
 0x3d7   : > { %v4301_v58 = vpop.permute.xlu1 %4300 }
 0x3d8   : > { %v4453_v25 = vpop.permute.xlu0 %4452  ;;  %v4705_v2 = vsel %vm3650_vm11, %v9436_v50, %v4301_v58  ;;  %v5884_v58 = vpack.c.bf16 %v5172_v28, %v5171_v38  ;;  %v5219_v38 = vld [vmem:[%s9844_s7 + $0x180] sm:$0xff] }
 0x3d9   : > { %v4716_v27 = vsel %vm3704_vm1, %v4712_v51, %v4453_v25  ;;  %v5886_v25 = vpack.c.bf16 %v5190_v63, %v5189_v10  ;;  %v5203_v63 = vld [vmem:[%s9844_s7 + $0x100] sm:$0xff] }
 0x3db   : > { %v4367_v53 = vpop.permute.xlu1 %4366 }
 0x3dc   : > { %v4541_v43 = vpop.permute.xlu0 %4540 }
 0x3dd   : > { %v4720_v20 = vsel %vm3722_vm6, %v4716_v27, %v4541_v43  ;;  %v5888_v43 = vpack.c.bf16 %v5174_v42, %v5173_v40  ;;  %v5194_v27 = vld [vmem:[%s9844_s7 + $0xb8] sm:$0xff] }
 0x3de   : > { %v5894_v18 = vpack.c.bf16 %v5194_v27, %v5193_v24 }
 0x3df   : > { %v4581_v26 = vpop.permute.xlu1 %4580 }
 0x3e0   : > { %v4334_v5 = vpop.permute.xlu0 %4333  ;;  %v4724_v48 = vsel %vm3740_vm9, %v4720_v20, %v4581_v26 }
 0x3e1   : > { %v4709_v16 = vsel %vm3668_vm13, %v4705_v2, %v4334_v5 }
 0x3e2   : > { %v4713_v14 = vsel %vm3686_vm15, %v4709_v16, %v4367_v53  ;;  %v5191_v53 = vld [vmem:[%s9844_s7 + $0xa0] sm:$0xff] }
 0x3e3   : > { %v5890_v31 = vpack.c.bf16 %v5192_v57, %v5191_v53 }
 0x3e4   : > { %v4621_v11 = vpop.permute.xlu0 %4620 }
 0x3e5   : > { %v4728_v56 = vsel %vm3758_vm3, %v4724_v48, %v4621_v11  ;;  %v5177_v48 = vld [vmem:[%s9844_s7 + $0x30] sm:$0xff]  ;;  %v5178_v11 = vld [vmem:[%s9844_s7 + $0x38] sm:$0xff] }
 0x3e6   : > { %v5547_v61 = vcombine.low %v4727_v30, %v4728_v56 }
 0x3e7   : > { %v4668_v1 = vpop.permute.xlu1 %4667 }
 0x3e8   : > { %v4730_v39 = vsel %vm3650_vm11, %v9461_v49, %v4668_v1  ;;  %4857 = vmatprep.mubr.f32.mxu1 %v5547_v61  ;;  %v4678_v32 = vpop.permute.xlu0 %4677  ;;  %vm4890_vm11 = vcmask 1044480  }
 0x3e9   : > { %4858 = vmatmul.mubr.f32.vlgmr.msra.gmra.mrb[8].mxu1 %v5546_v15  ;;  %v4731_v7 = vsel %vm3668_vm13, %v4730_v39, %v4678_v32 }
 0x3eb   : > { %v4688_v0 = vpop.permute.xlu1 %4687 }
 0x3ec   : > { %v4732_v12 = vsel %vm3686_vm15, %v4731_v7, %v4688_v0  ;;  %vm10409_vm15 = vmmov %vm10400_vm2 }
 0x3ed   : > { %v4733_v44 = vsel %vm3704_vm1, %v4732_v12, %v4691_v52 }
 0x3ee   : > { %v4455_v3 = vpop.permute.xlu0 %4454  ;;  %v4734_v59 = vsel %vm3722_vm6, %v4733_v44, %v4694_v47  ;;  %v5187_v47 = vld [vmem:[%s9844_s7 + $0x80] sm:$0xff] }
 0x3ef   : > { %v4717_v41 = vsel %vm3704_vm1, %v4713_v14, %v4455_v3  ;;  %v4735_v9 = vsel %vm3740_vm9, %v4734_v59, %v4697_v8  ;;  %v5188_v8 = vld [vmem:[%s9844_s7 + $0x88] sm:$0xff] }
 0x3f0   : > { %v5882_v34 = vpack.c.bf16 %v5188_v8, %v5187_v47  ;;  %v5180_v8 = vld [vmem:[%s9844_s7 + $0x48] sm:$0xff] }
 0x3f2   : > { %v4700_v37 = vpop.permute.xlu0 %4699  ;;  %5883 = vmatprep.subr.bf16.mxu0 %v5882_v34  ;;  %v5220_v34 = vld [vmem:[%s9844_s7 + $0x188] sm:$0xff] }
 0x3f3   : > { %v4543_v36 = vpop.permute.xlu1 %4542  ;;  %v4736_v54 = vsel %vm3758_vm3, %v4735_v9, %v4700_v37  ;;  %5885 = vmatpush3.bf16.msra.mxu0 %v5884_v58  ;;  %v5204_v58 = vld [vmem:[%s9844_s7 + $0x108] sm:$0xff] }
 0x3f4   : > { %v4721_v29 = vsel %vm3722_vm6, %v4717_v41, %v4543_v36  ;;  %5887 = vmatprep.subr.bf16.mxu0 %v5886_v25  ;;  %vm10410_vm6 = vmmov %vm10400_vm2  ;;  %v5221_v25 = vld [vmem:[%s9844_s7 + $0x190] sm:$0xff] }
 0x3f7   : > { %5889 = vmatpush3.bf16.msra.mxu0 %v5888_v43  ;;  %v5222_v43 = vld [vmem:[%s9844_s7 + $0x198] sm:$0xff] }
 0x3f8   : > { %v4583_v49 = vpop.permute.xlu1 %4582  ;;  %5891 = vmatprep.subr.bf16.mxu0 %v5890_v31  ;;  %v5197_v31 = vld [vmem:[%s9844_s7 + $0xd0] sm:$0xff]  ;;  %v5918_v24 = vpack.c.bf16 %v5222_v43, %v5221_v25 }
 0x3f9   : > { %v4725_v52 = vsel %vm3740_vm9, %v4721_v29, %v4583_v49  ;;  %v5195_v29 = vld [vmem:[%s9844_s7 + $0xc0] sm:$0xff]  ;;  %v5902_v27 = vpack.c.bf16 %v5198_v22, %v5197_v31 }
 0x3fb   : > { %5893 = vmatpush3.bf16.msra.mxu0 %v5892_v23 }
 0x3fc   : > { %v4623_v6 = vpop.permute.xlu1 %4622  ;;  %5895 = vmatprep.subr.bf16.mxu0 %v5894_v18  ;;  %v5206_v18 = vld [vmem:[%s9844_s7 + $0x118] sm:$0xff] }
 0x3fd   : > { %v4729_v50 = vsel %vm3758_vm3, %v4725_v52, %v4623_v6  ;;  %v5196_v52 = vld [vmem:[%s9844_s7 + $0xc8] sm:$0xff]  ;;  %v5179_v6 = vld [vmem:[%s9844_s7 + $0x40] sm:$0xff] }
 0x3fe   : > { %v5548_v21 = vcombine.low %v4728_v56, %v4729_v50  ;;  %v5549_v17 = vcombine.low %v4729_v50, %v4736_v54  ;;  %v5896_v56 = vpack.c.bf16 %v5178_v11, %v5177_v48  ;;  %v5898_v57 = vpack.c.bf16 %v5196_v52, %v5195_v29 }
 0x400   : > { %4862 = vmatprep.mubr.f32.mxu1 %v5549_v17  ;;  %5897 = vmatpush3.bf16.msra.mxu0 %v5896_v56 }
 0x401   : > { %4863 = vmatmul.mubr.f32.gmra.mrb[10].mxu1 %v5548_v21  ;;  %5899 = vmatprep.subr.bf16.mxu0 %v5898_v57 }
 0x4bc   : > { %v5648_v62 = vpop.f32.mrb[8].mxu1 }
 0x4bd   : > { %v5649_v33 = vpop.f32.mrb[9].mxu1 }
 0x4be   : > { %v5650_v5 = vadd.f32 %v5649_v33, %v5648_v62  ;;  %v5900_v62 = vpack.c.bf16 %v5180_v8, %v5179_v6  ;;  %v5914_v33 = vpack.c.bf16 %v5220_v34, %v5219_v38 }
 0x4c0   : > { %v4860_v51 = vadd.f32 %v5650_v5, %v9554_v13  ;;  %v5181_v5 = vld [vmem:[%s9844_s7 + $0x50] sm:$0xff]  ;;  %5901 = vmatpush3.bf16.msra.mxu0 %v5900_v62  ;;  %5915 = vmatprep.subr.bf16.mxu1 %v5914_v33 }
 0x4c1   : > { %5903 = vmatprep.subr.bf16.mxu0 %v5902_v27  ;;  %v5211_v27 = vld [vmem:[%s9844_s7 + $0x140] sm:$0xff] }
 0x4c2   : > { %vm4868_vm3 = vcmp.gt.f32.partialorder %v4860_v51, 0.0  ;;  %v4870_v26 = vmul.f32 0.2, %v4860_v51 }
 0x4c4   : > { %v4872_v35 = vsel %vm4868_vm3, %v4860_v51, %v4870_v26  ;;  %v5916_v26 = vpack.c.bf16 %v5204_v58, %v5203_v63  ;;  %vm10418_vm3 = vmmov %vm10414_vm0 }
 0x4c5   : > { %v4876_v20 = vcombine.high %v4872_v35, %v4872_v35  ;;  %v4878_v30 = vrot.slane %v4872_v35, 7  ;;  %v5205_v35 = vld [vmem:[%s9844_s7 + $0x110] sm:$0xff] }
 0x4c6   : > { %5917 = vmatpush3.bf16.msra.mxu1 %v5916_v26  ;;  %v5920_v56 = vpack.c.bf16 %v5206_v18, %v5205_v35  ;;  %v5227_v26 = vld [vmem:[%s9844_s7 + $0x1c0] sm:$0xff] }
 0x4c7   : > { %v4879_v55 = vrot.slane %v4876_v20, 7  ;;  %v4886_v61 = vsel %vm787_vm8, 0.0, %v4878_v30  ;;  %v5182_v20 = vld [vmem:[%s9844_s7 + $0x58] sm:$0xff]  ;;  %5919 = vmatprep.subr.bf16.mxu1 %v5918_v24  ;;  %v5228_v24 = vld [vmem:[%s9844_s7 + $0x1c8] sm:$0xff] }
 0x4c8   : > { %v4891_v15 = vsel %vm4890_vm11, %v4886_v61, 0.0  ;;  %v5224_v61 = vld [vmem:[%s9844_s7 + $0x1a8] sm:$0xff] }
 0x4c9   : > { %v4887_v1 = vsel %vm787_vm8, 0.0, %v4879_v55  ;;  %v4906_v39 = vrot.slane %v4891_v15, %v10320_v60  ;;  %v4899_v32 = vcombine.high %v4891_v15, %v4891_v15  ;;  %v5223_v55 = vld [vmem:[%s9844_s7 + $0x1a0] sm:$0xff] }
 0x4ca   : > { %v4892_v7 = vsel %vm4890_vm11, %v4887_v1, 0.0  ;;  %5921 = vmatpush3.bf16.msra.mxu1 %v5920_v56 }
 0x4cb   : > { %v4914_v0 = vcombine.high %v4906_v39, %v4906_v39  ;;  %v4922_v12 = vrot.slane %v4892_v7, %v10320_v60  ;;  %v9576_v44 = vrot.slane %v4899_v32, %v10320_v60  ;;  %v5034_v3 = vrot.slane %v4906_v39, %v6447_v45 }
 0x4cc   : > { %v4915_v36 = vcombine.high %v4892_v7, %v4892_v7  ;;  %v5014_v49 = vrot.slane %v4906_v39, %v6449_v46  ;;  %v5922_v39 = vpack.c.bf16 %v5224_v61, %v5223_v55  ;;  %v5229_v55 = vld [vmem:[%s9844_s7 + $0x1d0] sm:$0xff]  ;;  %v5230_v61 = vld [vmem:[%s9844_s7 + $0x1d8] sm:$0xff] }
 0x4cd   : > { %v5038_v2 = vrot.slane %v4914_v0, %v6447_v45  ;;  %v4930_v16 = vcombine.high %v4922_v12, %v4922_v12  ;;  %v5018_v59 = vrot.slane %v4914_v0, %v6449_v46  ;;  %v4977_v14 = vrot.slane %v4922_v12, %v6447_v45  ;;  %v5207_v0 = vld [vmem:[%s9844_s7 + $0x120] sm:$0xff] }
 0x4ce   : > { %v5058_v41 = vrot.slane %v9576_v44, %v6449_v46  ;;  %v9586_v9 = vrot.slane %v4915_v36, %v10320_v60  ;;  %v4966_v37 = vrot.slane %v4922_v12, %v6449_v46  ;;  %v5074_v23 = vrot.slane %v9576_v44, %v6447_v45  ;;  %v5208_v12 = vld [vmem:[%s9844_s7 + $0x128] sm:$0xff]  ;;  %5923 = vmatprep.subr.bf16.mxu1 %v5922_v39  ;;  %v5213_v39 = vld [vmem:[%s9844_s7 + $0x150] sm:$0xff] }
 0x4cf   : > { %v5047_v50 = vsel %vm10409_vm15, %v5038_v2, %v5034_v3  ;;  %v4981_v21 = vrot.slane %v4930_v16, %v6447_v45  ;;  %v4970_v17 = vrot.slane %v4930_v16, %v6449_v46  ;;  %v9602_v47 = vsel %vm10410_vm6, %v5018_v59, %v5014_v49  ;;  %v5225_v16 = vld [vmem:[%s9844_s7 + $0x1b0] sm:$0xff]  ;;  %vm10420_vm15 = vmmov %vm10414_vm0 }
 0x4d0   : > { %5049 = vrot.lane.b32.xlu1 %v5047_v50, %s6285_s12  ;;  %v4992_v10 = vrot.slane %v9586_v9, %v6449_v46  ;;  %v5063_v4 = vsel %vm10400_vm2, %v5058_v41, %v5018_v59  ;;  %v5003_v11 = vrot.slane %v9586_v9, %v6447_v45  ;;  %v5079_v1 = vsel %vm10414_vm0, %v5074_v23, %v5038_v2  ;;  %v5226_v59 = vld [vmem:[%s9844_s7 + $0x1b8] sm:$0xff]  ;;  %v5199_v41 = vld [vmem:[%s9844_s7 + $0xe0] sm:$0xff]  ;;  %v5200_v9 = vld [vmem:[%s9844_s7 + $0xe8] sm:$0xff] }
 0x4d1   : > { %v4982_v42 = vsel %vm10411_vm4, %v4981_v21, %v4977_v14  ;;  %v9627_v53 = vsel %vm10412_vm10, %v4970_v17, %v4966_v37  ;;  %v5924_v2 = vpack.c.bf16 %v5208_v12, %v5207_v0  ;;  %v5926_v14 = vpack.c.bf16 %v5226_v59, %v5225_v16  ;;  %v5209_v37 = vld [vmem:[%s9844_s7 + $0x130] sm:$0xff]  ;;  %v5210_v50 = vld [vmem:[%s9844_s7 + $0x138] sm:$0xff]  ;;  %vm10421_vm6 = vmmov %vm10414_vm0 }
 0x4d2   : > { %4985 = vrot.lane.b32.xlu0 %v4982_v42, %s6285_s12  ;;  %v4993_v48 = vsel %vm10413_vm14, %v4992_v10, %v4970_v17  ;;  %v5004_v44 = vsel %vm10415_vm5, %v5003_v11, %v4981_v21  ;;  %v5183_v21 = vld [vmem:[%s9844_s7 + $0x60] sm:$0xff]  ;;  %v5184_v17 = vld [vmem:[%s9844_s7 + $0x68] sm:$0xff]  ;;  %v5928_v63 = vpack.c.bf16 %v5210_v50, %v5209_v37  ;;  %vm10422_vm4 = vmmov %vm10414_vm0 }
 0x4d3   : > { %v5908_v38 = vpack.c.bf16 %v5184_v17, %v5183_v21  ;;  %5925 = vmatpush3.bf16.msra.mxu1 %v5924_v2  ;;  %v5232_v16 = vld [vmem:[%s9844_s7 + $0x1e8] sm:$0xff]  ;;  %v5215_v59 = vld [vmem:[%s9844_s7 + $0x160] sm:$0xff]  ;;  %v5233_v37 = vld [vmem:[%s9844_s7 + $0x1f0] sm:$0xff]  ;;  %v4984_v17 = vpop.permute.xlu1 %4983 }
 0x4d4   : > { %v5651_v54 = vpop.f32.mrb[10].mxu1  ;;  %5065 = vrot.lane.b32.xlu1 %v5063_v4, %s6291_s22  ;;  %5927 = vmatprep.subr.bf16.mxu1 %v5926_v14  ;;  %vm10423_vm10 = vmmov %vm10414_vm0 }
 0x4d5   : > { %v5652_v28 = vpop.f32.mrb[11].mxu1 }
 0x4d6   : > { %v5653_v40 = vadd.f32 %v5652_v28, %v5651_v54  ;;  %4996 = vrot.lane.b32.xlu0 %v4993_v48, %s6291_s22  ;;  %v5906_v54 = vpack.c.bf16 %v5200_v9, %v5199_v41 }
 0x4d7   : > { %5929 = vmatpush3.bf16.msra.mxu1 %v5928_v63 }
 0x4d8   : > { %v4865_v51 = vadd.f32 %v5653_v40, %v9554_v13  ;;  %v5904_v13 = vpack.c.bf16 %v5182_v20, %v5181_v5  ;;  %5081 = vrot.lane.b32.xlu1 %v5079_v1, %s6293_s23  ;;  %v5934_v1 = vpack.c.bf16 %v5230_v61, %v5229_v55 }
 0x4da   : > { %vm4869_vm12 = vcmp.gt.f32.partialorder %v4865_v51, 0.0  ;;  %v4871_v30 = vmul.f32 0.2, %v4865_v51  ;;  %5905 = vmatpush3.bf16.msra.mxu0 %v5904_v13  ;;  %5007 = vrot.lane.b32.xlu0 %v5004_v44, %s6293_s23  ;;  %v5930_v13 = vpack.c.bf16 %v5228_v24, %v5227_v26  ;;  %v5185_v44 = vld [vmem:[%s9844_s7 + $0x70] sm:$0xff] }
 0x4db   : > { %5907 = vmatprep.subr.bf16.mxu0 %v5906_v54  ;;  %v5218_v54 = vld [vmem:[%s9844_s7 + $0x178] sm:$0xff] }
 0x4dc   : > { %v4873_v15 = vsel %vm4869_vm12, %v4865_v51, %v4871_v30  ;;  %v5212_v30 = vld [vmem:[%s9844_s7 + $0x148] sm:$0xff]  ;;  %5931 = vmatprep.subr.bf16.mxu1 %v5930_v13 }
 0x4dd   : > { %v4877_v32 = vcombine.high %v4873_v15, %v4873_v15  ;;  %v4880_v7 = vrot.slane %v4873_v15, 7  ;;  %v5932_v48 = vpack.c.bf16 %v5212_v30, %v5211_v27  ;;  %v5201_v15 = vld [vmem:[%s9844_s7 + $0xf0] sm:$0xff] }
 0x4de   : > { %5909 = vmatpush3.bf16.msra.mxu0 %v5908_v38 }
 0x4df   : > { %v4881_v3 = vrot.slane %v4877_v32, 7  ;;  %v4888_v36 = vsel %vm787_vm8, 0.0, %v4880_v7  ;;  %5933 = vmatpush3.bf16.msra.mxu1 %v5932_v48  ;;  %v5214_v32 = vld [vmem:[%s9844_s7 + $0x158] sm:$0xff] }
 0x4e0   : > { %v4893_v49 = vsel %vm4890_vm11, %v4888_v36, 0.0  ;;  %v5936_v12 = vpack.c.bf16 %v5214_v32, %v5213_v39  ;;  %v5231_v36 = vld [vmem:[%s9844_s7 + $0x1e0] sm:$0xff]  ;;  %5935 = vmatprep.subr.bf16.mxu1 %v5934_v1 }
 0x4e1   : > { %v4889_v29 = vsel %vm787_vm8, 0.0, %v4881_v3  ;;  %v4938_v52 = vrot.slane %v4893_v49, %v10320_v60  ;;  %v4931_v6 = vcombine.high %v4893_v49, %v4893_v49  ;;  %vm10416_vm8 = vmmov %vm10414_vm0  ;;  %v5186_v3 = vld [vmem:[%s9844_s7 + $0x78] sm:$0xff]  ;;  %v5216_v49 = vld [vmem:[%s9844_s7 + $0x168] sm:$0xff]  ;;  %v5938_v9 = vpack.c.bf16 %v5232_v16, %v5231_v36 }
 0x4e2   : > { %v4894_v8 = vsel %vm4890_vm11, %v4889_v29, 0.0  ;;  %vm10419_vm11 = vmmov %vm10414_vm0  ;;  %v5912_v2 = vpack.c.bf16 %v5186_v3, %v5185_v44  ;;  %v5234_v29 = vld [vmem:[%s9844_s7 + $0x1f8] sm:$0xff]  ;;  %v5550_v44 = vld [vmem:[%s9845_s8] ss:$0 sm:$0xff] }
 0x4e3   : > { %v4946_v34 = vcombine.high %v4938_v52, %v4938_v52  ;;  %v4954_v28 = vrot.slane %v4894_v8, %v10320_v60  ;;  %v4945_v10 = vrot.slane %v4931_v6, %v10320_v60  ;;  %v5042_v58 = vrot.slane %v4938_v52, %v6447_v45  ;;  %5937 = vmatpush3.bf16.msra.mxu1 %v5936_v12 }
 0x4e4   : > { %v4947_v25 = vcombine.high %v4894_v8, %v4894_v8  ;;  %v5022_v43 = vrot.slane %v4938_v52, %v6449_v46  ;;  %v5940_v52 = vpack.c.bf16 %v5216_v49, %v5215_v59  ;;  %5939 = vmatprep.subr.bf16.mxu1 %v5938_v9  ;;  %v5942_v6 = vpack.c.bf16 %v5234_v29, %v5233_v37  ;;  %v4995_v8 = vpop.permute.xlu1 %4994 }
 0x4e5   : > { %v5046_v40 = vrot.slane %v4946_v34, %v6447_v45  ;;  %v4962_v42 = vcombine.high %v4954_v28, %v4954_v28  ;;  %v5026_v57 = vrot.slane %v4946_v34, %v6449_v46  ;;  %v5100_v31 = vrot.slane %v4954_v28, %v6447_v45 }
 0x4e6   : > { %v5062_v22 = vrot.slane %v4945_v10, %v6449_v46  ;;  %v4961_v4 = vrot.slane %v4947_v25, %v10320_v60  ;;  %v5090_v23 = vrot.slane %v4954_v28, %v6449_v46  ;;  %v5078_v56 = vrot.slane %v4945_v10, %v6447_v45 }
 0x4e7   : > { %v5048_v62 = vsel %vm10416_vm8, %v5046_v40, %v5042_v58  ;;  %v5104_v33 = vrot.slane %v4962_v42, %v6447_v45  ;;  %v5094_v5 = vrot.slane %v4962_v42, %v6449_v46  ;;  %v9719_v51 = vsel %vm10417_vm7, %v5026_v57, %v5022_v43  ;;  %5941 = vmatpush3.bf16.msra.mxu1 %v5940_v52 }
 0x4e8   : > { %5051 = vrot.lane.b32.xlu0 %v5048_v62, %s6285_s12  ;;  %v5120_v18 = vrot.slane %v4961_v4, %v6447_v45  ;;  %v5064_v11 = vsel %vm10420_vm15, %v5062_v22, %v5026_v57  ;;  %v5202_v45 = vld [vmem:[%s9844_s7 + $0xf8] sm:$0xff]  ;;  %v5080_v14 = vsel %vm10422_vm4, %v5078_v56, %v5046_v40  ;;  %v5112_v41 = vrot.slane %v4961_v4, %v6449_v46  ;;  %v5217_v46 = vld [vmem:[%s9844_s7 + $0x170] sm:$0xff]  ;;  %v5006_v38 = vpop.permute.xlu1 %5005 }
 0x4e9   : > { %v5105_v35 = vsel %vm10418_vm3, %v5104_v33, %v5100_v31  ;;  %v9734_v20 = vsel %vm10419_vm11, %v5094_v5, %v5090_v23  ;;  %v5910_v0 = vpack.c.bf16 %v5202_v45, %v5201_v15  ;;  %v5944_v21 = vpack.c.bf16 %v5218_v54, %v5217_v46  ;;  %5943 = vmatprep.subr.bf16.mxu1 %v5942_v6  ;;  %v5554_v54 = vld [vmem:[#allocation2] ss:$0 sm:$0xff] }
 0x4ea   : > { %5106 = vrot.lane.b32.xlu1 %v5105_v35, %s6285_s12  ;;  %v5121_v7 = vsel %vm10421_vm6, %v5120_v18, %v5104_v33  ;;  %v5113_v50 = vsel %vm10423_vm10, %v5112_v41, %v5094_v5  ;;  %v5125_v40 = vsel %vm3668_vm13, %v8559_v19, %v4984_v17  ;;  %v5553_v41 = vld [vmem:[%s9846_s9] ss:$0 sm:$0xff] }
 0x4eb   : > { %5911 = vmatprep.subr.bf16.mxu0 %v5910_v0  ;;  %5945 = vmatpush3.bf16.msra.mxu1 %v5944_v21  ;;  %v5127_v43 = vsel %vm3704_vm1, %v5125_v40, %v4995_v8 }
 0x4ec   : > { %5067 = vrot.lane.b32.xlu0 %v5064_v11, %s6291_s22  ;;  %5913 = vmatpush3.bf16.msra.mxu0 %v5912_v2  ;;  %v5129_v23 = vsel %vm3740_vm9, %v5127_v43, %v5006_v38 }
 0x4ee   : > { %5122 = vrot.lane.b32.xlu1 %v5121_v7, %s6293_s23 }
 0x4f0   : > { %5083 = vrot.lane.b32.xlu0 %v5080_v14, %s6293_s23 }
 0x4f4   : > { %5114 = vrot.lane.b32.xlu0 %v5113_v50, %s6291_s22 }
 0x542   : > { %v5050_v28 = vpop.permute.xlu1 %5049 }
 0x543   : > { %v5131_v57 = vsel %vm3668_vm13, %v9602_v47, %v5050_v28 }
 0x544   : > { %v4986_v34 = vpop.permute.xlu0 %4985 }
 0x545   : > { %v5126_v62 = vsel %vm3668_vm13, %v9627_v53, %v4986_v34 }
 0x546   : > { %v5066_v63 = vpop.permute.xlu1 %5065 }
 0x547   : > { %v5133_v31 = vsel %vm3704_vm1, %v5131_v57, %v5066_v63 }
 0x548   : > { %v4997_v10 = vpop.permute.xlu0 %4996 }
 0x549   : > { %v5128_v5 = vsel %vm3704_vm1, %v5126_v62, %v4997_v10 }
 0x54a   : > { %v5082_v42 = vpop.permute.xlu1 %5081 }
 0x54b   : > { %v5135_v4 = vsel %vm3740_vm9, %v5133_v31, %v5082_v42 }
 0x54c   : > { %v5008_v58 = vpop.permute.xlu0 %5007  ;;  %v5145_v26 = vcombine.low %v5129_v23, %v5135_v4 }
 0x54d   : > { %v5130_v27 = vsel %vm3740_vm9, %v5128_v5, %v5008_v58 }
 0x54e   : > { %v5153_v13 = vrot.slane %v5145_v26, %v10320_v60 }
 0x55a   : > { %v5052_v25 = vpop.permute.xlu0 %5051 }
 0x55b   : > { %v5132_v33 = vsel %vm3668_vm13, %v9719_v51, %v5052_v25 }
 0x55c   : > { %v5107_v19 = vpop.permute.xlu1 %5106 }
 0x55d   : > { %v5137_v53 = vsel %vm3668_vm13, %v9734_v20, %v5107_v19 }
 0x55e   : > { %v5068_v22 = vpop.permute.xlu0 %5067 }
 0x55f   : > { %v5134_v47 = vsel %vm3704_vm1, %v5132_v33, %v5068_v22 }
 0x560   : > { %v5123_v48 = vpop.permute.xlu1 %5122 }
 0x562   : > { %v5084_v24 = vpop.permute.xlu0 %5083 }
 0x563   : > { %v5136_v35 = vsel %vm3740_vm9, %v5134_v47, %v5084_v24 }
 0x564   : > { %v5146_v18 = vcombine.low %v5130_v27, %v5136_v35 }
 0x566   : > { %v5160_v30 = vrot.slane %v5146_v18, %v10320_v60  ;;  %v5115_v51 = vpop.permute.xlu0 %5114 }
 0x567   : > { %v5138_v11 = vsel %vm3704_vm1, %v5137_v53, %v5115_v51  ;;  %vm5427_vm1 = vcmask 517120  }
 0x568   : > { %v5551_v56 = vcombine.low %v5153_v13, %v5160_v30  ;;  %v5139_v55 = vsel %vm3740_vm9, %v5138_v11, %v5123_v48  ;;  %vm5443_vm9 = vcmask 1024  }
 0x569   : > { %v5162_v61 = vcombine.low %v5139_v55, %v5129_v23 }
 0x56a   : > { %v5250_v15 = vrot.slane %v5551_v56, %v10320_v60 }
 0x56b   : > { %v5169_v1 = vrot.slane %v5162_v61, %v10320_v60 }
 0x56c   : > { %v5258_v45 = vcombine.high %v5250_v15, %v5250_v15 }
 0x56d   : > { %v5552_v39 = vcombine.low %v5160_v30, %v5169_v1 }
 0x56e   : > { %5328 = vmatprep.mubr.f32.mxu0 %v5258_v45 }
 0x56f   : > { %5329 = vmatmul.mubr.f32.vlgmr.msra.gmra.mrb[32].mxu0 %v5250_v15  ;;  %v5257_v20 = vrot.slane %v5552_v39, %v10320_v60 }
 0x571   : > { %v5259_v32 = vcombine.high %v5257_v20, %v5257_v20 }
 0x573   : > { %5398 = vmatprep.mubr.f32.mxu1 %v5259_v32 }
 0x574   : > { %5399 = vmatmul.mubr.f32.vlgmr.msra.gmra.mrb[12].mxu1 %v5257_v20 }
 0x642   : > { %v5686_v7 = vpop.f32.mrb[32].mxu0 }
 0x643   : > { %v5687_v0 = vpop.f32.mrb[33].mxu0 }
 0x644   : > { %v5688_v12 = vadd.f32 %v5687_v0, %v5686_v7 }
 0x646   : > { %v5331_v2 = vadd.f32 %v5688_v12, %v5550_v44 }
 0x647   : > { %v5721_v3 = vpop.f32.mrb[12].mxu1 }
 0x648   : > { %v5722_v36 = vpop.f32.mrb[13].mxu1 }
 0x649   : > { %v5723_v16 = vadd.f32 %v5722_v36, %v5721_v3 }
 0x64b   : > { %v5401_v59 = vadd.f32 %v5723_v16, %v5331_v2 }
 0x64d   : > { %vm5404_vm13 = vcmp.gt.f32.partialorder %v5401_v59, 0.0  ;;  %v5405_v49 = vmul.f32 0.2, %v5401_v59 }
 0x64f   : > { %v5406_v14 = vsel %vm5404_vm13, %v5401_v59, %v5405_v49 }
 0x650   : > { %v5414_v9 = vrot.slane %v5406_v14, %v10320_v60 }
 0x652   : > { %v5425_v37 = vmul.f32 %v5553_v41, %v5414_v9  ;;  %v5415_v29 = vcombine.high %v5414_v9, %v5414_v9 }
 0x654   : > { %v5428_v52 = vsel %vm5427_vm1, %v5425_v37, 0.0  ;;  %v5426_v6 = vmul.f32 %v5553_v41, %v5415_v29 }
 0x655   : > { %5429 = vadd.xlane.f32.xlu0 %v5428_v52 }
 0x656   : > { %v5431_v46 = vsel %vm5427_vm1, %v5426_v6, 0.0 }
 0x657   : > { %5432 = vadd.xlane.f32.xlu1 %v5431_v46 }
 0x6e2   : > { %v5430_v50 = vpop.xlane.xlu0 %5429 }
 0x6e3   : > { %v5441_v21 = vadd.f32 %v5554_v54, %v5430_v50 }
 0x6e4   : > { %v5433_v17 = vpop.xlane.xlu1 %5432 }
 0x6e5   : > { %5444 = vst.msk [vmem:[%s388_s16] sm:$0x3] %vm5443_vm9, %v5441_v21  ;;  %v5442_v60 = vadd.f32 %v5554_v54, %v5433_v17 }
 0x6e7   : > { %5445 = vst.msk [vmem:[%s388_s16 + $0x2] sm:$0x3] %vm5443_vm9, %v5442_v60 }
 0x6e8 PF: > { %s23_s19 = sadd.s32 1, %s6278_s19  }
 0x6e9   : > { %p20_p4 = scmp.ge.s32.totalorder %s23_s19, 4  }
 0x6eb   :  { %22 = sbr.rel (!%p20_p4) target bundleno = 3 (0x3), region = 94 }

</bundles_post_ra>
